<compile_context>
chip_gen: v5e
topology: v5e:2x2
jax: 0.10.0
libtpu: 0.0.40
codegen_flags: <defaults>
</compile_context>

<pallas_src>
import functools

import jax
import jax.numpy as jnp
from jax.experimental import pallas as pl
from jax.experimental.pallas import tpu as pltpu

_LSTM_CHUNK = 16  # time steps per bilstm grid step (unrolled in-kernel)


def _round_up(n, m):
    return ((n + m - 1) // m) * m


def _vmem_capacity_bytes():
    try:
        info = pltpu.get_tpu_info()
        cap = getattr(info, "vmem_capacity_bytes", None)
        if cap:
            return int(cap)
    except Exception:
        pass
    return 64 * 1024 * 1024  # conservative: v7x physical VMEM


# ----------------------- fused linear (+BN/act/mask) -----------------------

def _fused_linear_kernel(*args, n_in, act, mask_epilogue):
    # y = act(sum_k x_k @ w_k + shift) ; optionally the OpenUnmix output
    # epilogue:  relu(out_scale * y + out_mean) * mix
    xs = args[:n_in]
    ws = args[n_in:2 * n_in]
    shift_ref = args[2 * n_in]
    pos = 2 * n_in + 1
    if mask_epilogue:
        mix_ref, oscale_ref, omean_ref = args[pos:pos + 3]
        pos += 3
    o_ref = args[pos]

    acc = jnp.dot(xs[0][...].astype(jnp.bfloat16), ws[0][...],
                  preferred_element_type=jnp.float32)
    for x_ref, w_ref in zip(xs[1:], ws[1:]):
        acc += jnp.dot(x_ref[...].astype(jnp.bfloat16), w_ref[...],
                       preferred_element_type=jnp.float32)
    y = acc + shift_ref[...]
    if act == "tanh":
        y = jnp.tanh(y)
    elif act == "relu":
        y = jnp.maximum(y, 0.0)
    if mask_epilogue:
        y = jnp.maximum(oscale_ref[...] * y + omean_ref[...], 0.0) * mix_ref[...]
    o_ref[...] = y.astype(o_ref.dtype)


def fused_linear(xs, ws, shift, *, act="none", out_dtype=jnp.float32,
                 mix=None, out_scale=None, out_mean=None, row_tile=512):
    """xs: list of (N, K_i); ws: list of (K_i, M) bf16; shift: (M,) f32."""
    assert len(xs) == len(ws)
    N = xs[0].shape[0]
    M = ws[0].shape[1]
    mask_epilogue = mix is not None

    vmem_cap = _vmem_capacity_bytes()
    budget = min(vmem_cap // 2, 64 * 1024 * 1024)

    # Honest per-row-tile VMEM footprint: double-buffered input / output / mix
    # tiles plus (double-buffered) resident weight chunks.
    in_row = sum(int(x.shape[1]) * x.dtype.itemsize for x in xs)
    out_row = M * jnp.dtype(out_dtype).itemsize
    mix_row = M * mix.dtype.itemsize if mask_epilogue else 0
    per_row = 2 * (in_row + out_row + mix_row)
    w_bytes = 2 * sum(int(w.shape[0]) * int(w.shape[1]) * w.dtype.itemsize
                      for w in ws)
    avail = max(budget - w_bytes - (2 << 20), 8 * per_row)
    cap_rows = max(8, ((avail // per_row) // 8) * 8)

    # Keep >= 2 row tiles when N is large enough so v7x's two TensorCores both
    # get work (dimension_semantics=("parallel",)).
    half_n = max(128, _round_up(pl.cdiv(N, 2), 8))
    TM = max(8, min(row_tile, cap_rows, half_n, _round_up(N, 8)))
    grid = (pl.cdiv(N, TM),)

    in_specs = [pl.BlockSpec((TM, x.shape[1]), lambda i: (i, 0)) for x in xs]
    in_specs += [pl.BlockSpec((w.shape[0], M), lambda i: (0, 0)) for w in ws]
    in_specs += [pl.BlockSpec((1, M), lambda i: (0, 0))]
    args = list(xs) + list(ws) + [shift.reshape(1, M)]

    if mask_epilogue:
        in_specs += [pl.BlockSpec((TM, M), lambda i: (i, 0)),
                     pl.BlockSpec((1, M), lambda i: (0, 0)),
                     pl.BlockSpec((1, M), lambda i: (0, 0))]
        args += [mix, out_scale.reshape(1, M), out_mean.reshape(1, M)]

    kernel = functools.partial(_fused_linear_kernel, n_in=len(xs), act=act,
                               mask_epilogue=mask_epilogue)
    return pl.pallas_call(
        kernel,
        out_shape=jax.ShapeDtypeStruct((N, M), out_dtype),
        grid=grid,
        in_specs=in_specs,
        out_specs=pl.BlockSpec((TM, M), lambda i: (i, 0)),
        compiler_params=pltpu.CompilerParams(
            dimension_semantics=("parallel",),
            vmem_limit_bytes=min(int(vmem_cap * 3 // 4), 112 * 1024 * 1024)),
    )(*args)


# --------------------------- fused bi-LSTM core ----------------------------

def _bilstm_kernel(gxf_ref, gxb_ref, whh_ref, of_ref, ob_ref,
                   hf_sc, cf_sc, hb_sc, cb_sc, *, chunk, h_half):
    # Single grid axis over time-chunks; both directions are processed in the
    # same step (two independent recurrences interleaved -> good on 1-TC
    # v5e/v6e and hides MXU/EUP latency everywhere).  The forward direction
    # reads/writes time-block tb ascending; the backward direction reads/
    # writes time-block (nb-1-tb) walking the chunk in reverse.
    @pl.when(pl.program_id(0) == 0)
    def _():
        hf_sc[...] = jnp.zeros_like(hf_sc)
        cf_sc[...] = jnp.zeros_like(cf_sc)
        hb_sc[...] = jnp.zeros_like(hb_sc)
        cb_sc[...] = jnp.zeros_like(cb_sc)

    whh_f = whh_ref[0]          # (h_half, 4*h_half) bf16, resident
    whh_b = whh_ref[1]

    def cell(gates, c):
        # torch gate order i, f, g, o.  Slices are lane-aligned for the real
        # model (h_half = 256); the toy config (h_half = 16) still lowers.
        i = jax.nn.sigmoid(gates[:, 0:h_half])
        f = jax.nn.sigmoid(gates[:, h_half:2 * h_half])
        g = jnp.tanh(gates[:, 2 * h_half:3 * h_half])
        o = jax.nn.sigmoid(gates[:, 3 * h_half:4 * h_half])
        c = f * c + i * g
        return o * jnp.tanh(c), c

    def step(j, carry):
        hf, cf, hb, cb = carry
        sb = chunk - 1 - j
        gf = gxf_ref[j].astype(jnp.float32) + jnp.dot(
            hf.astype(jnp.bfloat16), whh_f, preferred_element_type=jnp.float32)
        gb = gxb_ref[sb].astype(jnp.float32) + jnp.dot(
            hb.astype(jnp.bfloat16), whh_b, preferred_element_type=jnp.float32)
        hf, cf = cell(gf, cf)
        hb, cb = cell(gb, cb)
        of_ref[j] = hf.astype(of_ref.dtype)
        ob_ref[sb] = hb.astype(ob_ref.dtype)
        return hf, cf, hb, cb

    hf, cf, hb, cb = jax.lax.fori_loop(
        0, chunk, step, (hf_sc[...], cf_sc[...], hb_sc[...], cb_sc[...]),
        unroll=True)
    hf_sc[...] = hf
    cf_sc[...] = cf
    hb_sc[...] = hb
    cb_sc[...] = cb


def bilstm(gxf, gxb, whh, chunk):
    """gxf/gxb: (Tp, B, 4*h_half) precomputed x@W_ih+b per direction (bf16);
    gxf is end-padded, gxb is start-padded so padded steps come after all real
    steps for their direction.  whh: (2, h_half, 4*h_half) bf16.
    Returns (h_fwd, h_bwd) each (Tp, B, h_half) bf16 (bwd in natural time)."""
    Tp, B, G = gxf.shape
    h_half = G // 4
    nb = Tp // chunk

    kernel = functools.partial(_bilstm_kernel, chunk=chunk, h_half=h_half)
    out_sds = jax.ShapeDtypeStruct((Tp, B, h_half), jnp.bfloat16)
    return pl.pallas_call(
        kernel,
        out_shape=(out_sds, out_sds),
        grid=(nb,),
        in_specs=[
            pl.BlockSpec((chunk, B, G), lambda tb: (tb, 0, 0)),
            pl.BlockSpec((chunk, B, G), lambda tb: (nb - 1 - tb, 0, 0)),
            pl.BlockSpec((2, h_half, G), lambda tb: (0, 0, 0)),
        ],
        out_specs=[
            pl.BlockSpec((chunk, B, h_half), lambda tb: (tb, 0, 0)),
            pl.BlockSpec((chunk, B, h_half), lambda tb: (nb - 1 - tb, 0, 0)),
        ],
        scratch_shapes=[pltpu.VMEM((B, h_half), jnp.float32)] * 4,
        compiler_params=pltpu.CompilerParams(
            dimension_semantics=("arbitrary",)),
    )(gxf, gxb, whh)


# ------------------------------- parameters --------------------------------

def bn_fold(gamma, beta, mean, var, eps=1e-5):
    scale = gamma / jnp.sqrt(var + eps)
    shift = beta - mean * scale
    return scale, shift


def init_params(key, nb_bins, nb_channels, hidden_size, nb_layers, max_bin=None):
    nb_output_bins = nb_bins
    nb_bins_in = max_bin if max_bin else nb_bins
    H = hidden_size
    h_half = H // 2
    C = nb_channels
    bf16 = jnp.bfloat16
    keys = iter(jax.random.split(key, 128))

    def nrm(shape, s=0.1):
        return s * jax.random.normal(next(keys), shape, dtype=jnp.float32)

    def bn_params(n):
        gamma = 1.0 + 0.1 * jax.random.normal(next(keys), (n,), dtype=jnp.float32)
        beta = 0.1 * jax.random.normal(next(keys), (n,), dtype=jnp.float32)
        mean = 0.1 * jax.random.normal(next(keys), (n,), dtype=jnp.float32)
        var = jax.random.uniform(next(keys), (n,), minval=0.5, maxval=1.5,
                                 dtype=jnp.float32)
        return bn_fold(gamma, beta, mean, var)

    # fc1 / bn1 — fold input_mean/input_scale (torch defaults) and bn1 scale
    # into the effective weight; bn1 shift absorbs the mean term.
    fc1_w = nrm((H, nb_bins_in * C))                       # torch (out, in)
    bn1_scale, bn1_shift = bn_params(H)
    input_mean = jnp.zeros((nb_bins_in,), jnp.float32)
    input_scale = jnp.ones((nb_bins_in,), jnp.float32)
    m_t = jnp.tile(input_mean, C)                          # feature order (chan, bin)
    s_t = jnp.tile(input_scale, C)
    w1t = fc1_w.T                                          # (C*bins, H)
    w1_eff = (s_t[:, None] * w1t) * bn1_scale[None, :]
    shift1 = ((m_t * s_t) @ w1t) * bn1_scale + bn1_shift

    # bi-LSTM stack: W_ih of both directions fused column-wise ([fwd | bwd]),
    # split by input feature chunk; W_hh stacked per direction.
    lstm = []
    for layer_idx in range(nb_layers):
        in_chunks = [H] if layer_idx == 0 else [h_half, h_half]
        in_size = sum(in_chunks)
        wih_t, whh_t, bias = [], [], []
        for _d in range(2):                                # 0 = fwd, 1 = bwd
            w_ih = nrm((4 * h_half, in_size))
            w_hh = nrm((4 * h_half, h_half))
            b_ih = nrm((4 * h_half,))
            b_hh = nrm((4 * h_half,))
            wih_t.append(w_ih.T)                           # (in_size, 4*h_half)
            whh_t.append(w_hh.T)                           # (h_half, 4*h_half)
            bias.append(b_ih + b_hh)
        chunks, off = [], 0
        for ck in in_chunks:                               # match [fwd | bwd] feats
            chunks.append(jnp.concatenate(
                [wih_t[0][off:off + ck], wih_t[1][off:off + ck]],
                axis=1).astype(bf16))                      # (ck, 8*h_half)
            off += ck
        lstm.append(dict(
            wih=chunks,
            b=jnp.concatenate(bias),                       # (8*h_half,)
            whh=jnp.stack(whh_t, 0).astype(bf16),          # (2, h_half, 4*h_half)
        ))

    # fc2 / bn2 — weight split to match [h1 | lstm_fwd | lstm_bwd] (no concat).
    fc2_w = nrm((H, 2 * H))
    bn2_scale, bn2_shift = bn_params(H)
    w2t = fc2_w.T * bn2_scale[None, :]                     # (2H, H)
    fc2_chunks = [w2t[0:H].astype(bf16),
                  w2t[H:H + h_half].astype(bf16),
                  w2t[H + h_half:2 * H].astype(bf16)]

    # fc3 / bn3 — scale folded into weight; mask epilogue handled in-kernel.
    fc3_w = nrm((nb_output_bins * C, H))
    bn3_scale, bn3_shift = bn_params(nb_output_bins * C)
    w3t = (fc3_w.T * bn3_scale[None, :]).astype(bf16)      # (H, C*bins)

    output_scale = jnp.ones((nb_output_bins,), jnp.float32)
    output_mean = jnp.ones((nb_output_bins,), jnp.float32)

    return dict(
        nb_bins=nb_bins_in, nb_output_bins=nb_output_bins,
        hidden_size=H, nb_channels=C,
        fc1_w=[w1_eff.astype(bf16)], fc1_shift=shift1,
        lstm=lstm,
        fc2_w=fc2_chunks, fc2_shift=bn2_shift,
        fc3_w=[w3t], fc3_shift=bn3_shift,
        out_scale_t=jnp.tile(output_scale, C),
        out_mean_t=jnp.tile(output_mean, C),
    )


# -------------------------------- forward ----------------------------------

def openunmix_forward(params, x):
    """x: (nb_samples, nb_channels, nb_bins, nb_frames) -> same shape."""
    x = jnp.transpose(x, (3, 0, 1, 2)).astype(jnp.float32)    # (T, B, C, bins)
    T, B, C, nb_out_bins = x.shape
    H = params["hidden_size"]
    h_half = H // 2
    G = 4 * h_half
    nb_bins = params["nb_bins"]

    mix2 = x.reshape(T * B, C * nb_out_bins)
    x_flat = x[..., :nb_bins].reshape(T * B, C * nb_bins)

    # fc1 + bn1 + tanh (input normalization + BN scale folded into the weight);
    # bf16 intermediate to halve HBM traffic for the downstream consumers.
    # TODO(synk): fc1 LHS is cast to bf16 at the MXU (f32 accumulation) — keep
    # an eye on high-dynamic-range spectrogram bins.
    h1 = fused_linear([x_flat], params["fc1_w"], params["fc1_shift"],
                      act="tanh", out_dtype=jnp.bfloat16)

    # time chunking for the recurrence (pad to a chunk multiple, fwd end-padded
    # / bwd start-padded so padding is always processed after all real steps).
    chunk = _LSTM_CHUNK if T >= _LSTM_CHUNK else T
    Tp = _round_up(T, chunk)
    pd = Tp - T

    feats = [h1]
    for layer in params["lstm"]:
        # One fused projection for both directions: activations read once,
        # lane-dense 8*h_half output, no HBM stack of gx.
        gx = fused_linear(feats, layer["wih"], layer["b"],
                          out_dtype=jnp.bfloat16)            # (T*B, 2G)
        gx = gx.reshape(T, B, 2, G)
        gxf = gx[:, :, 0, :]
        gxb = gx[:, :, 1, :]
        if pd:
            gxf = jnp.pad(gxf, ((0, pd), (0, 0), (0, 0)))
            gxb = jnp.pad(gxb, ((pd, 0), (0, 0), (0, 0)))
        hf, hb = bilstm(gxf, gxb, layer["whh"], chunk)       # (Tp, B, h_half)
        feats = [hf[:T].reshape(T * B, h_half),
                 hb[pd:].reshape(T * B, h_half)]
        # TODO(synk): inter-layer dropout (p=0.4) omitted — eval/inference.

    # skip connection + fc2/bn2/relu; the concat is expressed as summed
    # partial matmuls over [h1 | lstm_fwd | lstm_bwd].
    h2 = fused_linear([h1] + feats, params["fc2_w"], params["fc2_shift"],
                      act="relu", out_dtype=jnp.bfloat16)

    # fc3/bn3 + output affine + relu + mix-mask, all in one kernel epilogue.
    y = fused_linear([h2], params["fc3_w"], params["fc3_shift"], act="none",
                     mix=mix2, out_scale=params["out_scale_t"],
                     out_mean=params["out_mean_t"], out_dtype=jnp.float32)
    y = y.reshape(T, B, C, nb_out_bins)
    return jnp.transpose(y, (1, 2, 3, 0))                    # (B, C, bins, T)


# --------------------------------- main -------------------------------------

if __name__ == "__main__":
    nb_bins, nb_channels, hidden_size, nb_layers = 16, 2, 32, 3
    batch, frames = 2, 8

    key = jax.random.PRNGKey(0)
    kp, kx = jax.random.split(key)
    params = init_params(kp, nb_bins, nb_channels, hidden_size, nb_layers)

    x = jax.random.uniform(kx, (batch, nb_channels, nb_bins, frames),
                           dtype=jnp.float32)

    fwd = jax.jit(lambda inp: openunmix_forward(params, inp))
    out = fwd(x)
    jax.block_until_ready(out)
    assert out.shape == (batch, nb_channels, nb_bins, frames)
    assert bool(jnp.all(jnp.isfinite(out)))
    print("KERNEL_OK")
</pallas_src>

<mosaic_0001>
module attributes {stable_mosaic.version = 11 : i64} {
  func.func @_fused_linear_kernel(%arg0: i32, %arg1: memref<16x32xf32, #tpu.memory_space<vmem>>, %arg2: memref<32x32xbf16, #tpu.memory_space<vmem>>, %arg3: memref<1x32xf32, #tpu.memory_space<vmem>>, %arg4: memref<16x32xbf16, #tpu.memory_space<vmem>>) attributes {dimension_semantics = [#tpu.dimension_semantics<parallel>], iteration_bounds = array<i64: 1>, scalar_prefetch = 0 : i64, scratch_operands = 0 : i64, tpu.core_type = #tpu.core_type<tc>, window_params = [{transform_indices = @transform_0, window_bounds = array<i64: 16, 32>}, {pipeline_mode = #tpu.pipeline_mode<synchronous>, transform_indices = @transform_1, window_bounds = array<i64: 32, 32>}, {pipeline_mode = #tpu.pipeline_mode<synchronous>, transform_indices = @transform_2, window_bounds = array<i64: 1, 32>}, {transform_indices = @transform_3, window_bounds = array<i64: 16, 32>}]} {
    %c0 = arith.constant 0 : index
    %c0_0 = arith.constant 0 : index
    %0 = vector.load %arg1[%c0, %c0_0] : memref<16x32xf32, #tpu.memory_space<vmem>>, vector<16x32xf32>
    %1 = arith.truncf %0 : vector<16x32xf32> to vector<16x32xbf16>
    %c0_1 = arith.constant 0 : index
    %c0_2 = arith.constant 0 : index
    %2 = vector.load %arg2[%c0_1, %c0_2] : memref<32x32xbf16, #tpu.memory_space<vmem>>, vector<32x32xbf16>
    %cst = arith.constant dense<0.000000e+00> : vector<16x32xf32>
    %3 = tpu.matmul %1, %2, %cst {dimension_numbers = #tpu.dot_dimension_numbers<[1], [0], [0], [1], [0, 0, 1, 1], [], []>} : vector<16x32xbf16>, vector<32x32xbf16>, vector<16x32xf32> -> vector<16x32xf32>
    %c0_3 = arith.constant 0 : index
    %c0_4 = arith.constant 0 : index
    %4 = vector.load %arg3[%c0_3, %c0_4] : memref<1x32xf32, #tpu.memory_space<vmem>>, vector<1x32xf32>
    %5 = vector.broadcast %4 : vector<1x32xf32> to vector<16x32xf32>
    %6 = arith.addf %3, %5 : vector<16x32xf32>
    %7 = math.tanh %6 : vector<16x32xf32>
    %8 = arith.truncf %7 : vector<16x32xf32> to vector<16x32xbf16>
    %c0_5 = arith.constant 0 : index
    %c0_6 = arith.constant 0 : index
    %9 = vector.load %arg4[%c0_5, %c0_6] : memref<16x32xbf16, #tpu.memory_space<vmem>>, vector<16x32xbf16>
    tpu.vector_store %arg4[%c0_5, %c0_6], %8 {strides = array<i32>} : memref<16x32xbf16, #tpu.memory_space<vmem>>, vector<16x32xbf16>,
    return
  }
  func.func @transform_0(%arg0: i32) -> (i32, i32) {
    %c0_i32 = arith.constant 0 : i32
    %c0_i32_0 = arith.constant 0 : i32
    return %arg0, %c0_i32 : i32, i32
  }
  func.func @transform_1(%arg0: i32) -> (i32, i32) {
    %c0_i32 = arith.constant 0 : i32
    %c0_i32_0 = arith.constant 0 : i32
    %c0_i32_1 = arith.constant 0 : i32
    return %c0_i32, %c0_i32_0 : i32, i32
  }
  func.func @transform_2(%arg0: i32) -> (i32, i32) {
    %c0_i32 = arith.constant 0 : i32
    %c0_i32_0 = arith.constant 0 : i32
    %c0_i32_1 = arith.constant 0 : i32
    return %c0_i32, %c0_i32_0 : i32, i32
  }
  func.func @transform_3(%arg0: i32) -> (i32, i32) {
    %c0_i32 = arith.constant 0 : i32
    %c0_i32_0 = arith.constant 0 : i32
    return %arg0, %c0_i32 : i32, i32
  }
}

module attributes {stable_mosaic.version = 11 : i64} {
  func.func @_fused_linear_kernel(%arg0: i32, %arg1: memref<16x32xbf16, #tpu.memory_space<vmem>>, %arg2: memref<32x128xbf16, #tpu.memory_space<vmem>>, %arg3: memref<1x128xf32, #tpu.memory_space<vmem>>, %arg4: memref<16x128xbf16, #tpu.memory_space<vmem>>) attributes {dimension_semantics = [#tpu.dimension_semantics<parallel>], iteration_bounds = array<i64: 1>, scalar_prefetch = 0 : i64, scratch_operands = 0 : i64, tpu.core_type = #tpu.core_type<tc>, window_params = [{transform_indices = @transform_0, window_bounds = array<i64: 16, 32>}, {pipeline_mode = #tpu.pipeline_mode<synchronous>, transform_indices = @transform_1, window_bounds = array<i64: 32, 128>}, {pipeline_mode = #tpu.pipeline_mode<synchronous>, transform_indices = @transform_2, window_bounds = array<i64: 1, 128>}, {transform_indices = @transform_3, window_bounds = array<i64: 16, 128>}]} {
    %c0 = arith.constant 0 : index
    %c0_0 = arith.constant 0 : index
    %0 = vector.load %arg1[%c0, %c0_0] : memref<16x32xbf16, #tpu.memory_space<vmem>>, vector<16x32xbf16>
    %c0_1 = arith.constant 0 : index
    %c0_2 = arith.constant 0 : index
    %1 = vector.load %arg2[%c0_1, %c0_2] : memref<32x128xbf16, #tpu.memory_space<vmem>>, vector<32x128xbf16>
    %cst = arith.constant dense<0.000000e+00> : vector<16x128xf32>
    %2 = tpu.matmul %0, %1, %cst {dimension_numbers = #tpu.dot_dimension_numbers<[1], [0], [0], [1], [0, 0, 1, 1], [], []>} : vector<16x32xbf16>, vector<32x128xbf16>, vector<16x128xf32> -> vector<16x128xf32>
    %c0_3 = arith.constant 0 : index
    %c0_4 = arith.constant 0 : index
    %3 = vector.load %arg3[%c0_3, %c0_4] : memref<1x128xf32, #tpu.memory_space<vmem>>, vector<1x128xf32>
    %4 = vector.broadcast %3 : vector<1x128xf32> to vector<16x128xf32>
    %5 = arith.addf %2, %4 : vector<16x128xf32>
    %6 = arith.truncf %5 : vector<16x128xf32> to vector<16x128xbf16>
    %c0_5 = arith.constant 0 : index
    %c0_6 = arith.constant 0 : index
    %7 = vector.load %arg4[%c0_5, %c0_6] : memref<16x128xbf16, #tpu.memory_space<vmem>>, vector<16x128xbf16>
    tpu.vector_store %arg4[%c0_5, %c0_6], %6 {strides = array<i32>} : memref<16x128xbf16, #tpu.memory_space<vmem>>, vector<16x128xbf16>,
    return
  }
  func.func @transform_0(%arg0: i32) -> (i32, i32) {
    %c0_i32 = arith.constant 0 : i32
    %c0_i32_0 = arith.constant 0 : i32
    return %arg0, %c0_i32 : i32, i32
  }
  func.func @transform_1(%arg0: i32) -> (i32, i32) {
    %c0_i32 = arith.constant 0 : i32
    %c0_i32_0 = arith.constant 0 : i32
    %c0_i32_1 = arith.constant 0 : i32
    return %c0_i32, %c0_i32_0 : i32, i32
  }
  func.func @transform_2(%arg0: i32) -> (i32, i32) {
    %c0_i32 = arith.constant 0 : i32
    %c0_i32_0 = arith.constant 0 : i32
    %c0_i32_1 = arith.constant 0 : i32
    return %c0_i32, %c0_i32_0 : i32, i32
  }
  func.func @transform_3(%arg0: i32) -> (i32, i32) {
    %c0_i32 = arith.constant 0 : i32
    %c0_i32_0 = arith.constant 0 : i32
    return %arg0, %c0_i32 : i32, i32
  }
}

module attributes {stable_mosaic.version = 11 : i64} {
  func.func @_fused_linear_kernel(%arg0: i32, %arg1: memref<16x16xbf16, #tpu.memory_space<vmem>>, %arg2: memref<16x16xbf16, #tpu.memory_space<vmem>>, %arg3: memref<16x128xbf16, #tpu.memory_space<vmem>>, %arg4: memref<16x128xbf16, #tpu.memory_space<vmem>>, %arg5: memref<1x128xf32, #tpu.memory_space<vmem>>, %arg6: memref<16x128xbf16, #tpu.memory_space<vmem>>) attributes {dimension_semantics = [#tpu.dimension_semantics<parallel>], iteration_bounds = array<i64: 1>, scalar_prefetch = 0 : i64, scratch_operands = 0 : i64, tpu.core_type = #tpu.core_type<tc>, window_params = [{transform_indices = @transform_0, window_bounds = array<i64: 16, 16>}, {transform_indices = @transform_1, window_bounds = array<i64: 16, 16>}, {pipeline_mode = #tpu.pipeline_mode<synchronous>, transform_indices = @transform_2, window_bounds = array<i64: 16, 128>}, {pipeline_mode = #tpu.pipeline_mode<synchronous>, transform_indices = @transform_3, window_bounds = array<i64: 16, 128>}, {pipeline_mode = #tpu.pipeline_mode<synchronous>, transform_indices = @transform_4, window_bounds = array<i64: 1, 128>}, {transform_indices = @transform_5, window_bounds = array<i64: 16, 128>}]} {
    %c0 = arith.constant 0 : index
    %c0_0 = arith.constant 0 : index
    %0 = vector.load %arg1[%c0, %c0_0] : memref<16x16xbf16, #tpu.memory_space<vmem>>, vector<16x16xbf16>
    %c0_1 = arith.constant 0 : index
    %c0_2 = arith.constant 0 : index
    %1 = vector.load %arg3[%c0_1, %c0_2] : memref<16x128xbf16, #tpu.memory_space<vmem>>, vector<16x128xbf16>
    %cst = arith.constant dense<0.000000e+00> : vector<16x128xf32>
    %2 = tpu.matmul %0, %1, %cst {dimension_numbers = #tpu.dot_dimension_numbers<[1], [0], [0], [1], [0, 0, 1, 1], [], []>} : vector<16x16xbf16>, vector<16x128xbf16>, vector<16x128xf32> -> vector<16x128xf32>
    %c0_3 = arith.constant 0 : index
    %c0_4 = arith.constant 0 : index
    %3 = vector.load %arg2[%c0_3, %c0_4] : memref<16x16xbf16, #tpu.memory_space<vmem>>, vector<16x16xbf16>
    %c0_5 = arith.constant 0 : index
    %c0_6 = arith.constant 0 : index
    %4 = vector.load %arg4[%c0_5, %c0_6] : memref<16x128xbf16, #tpu.memory_space<vmem>>, vector<16x128xbf16>
    %cst_7 = arith.constant dense<0.000000e+00> : vector<16x128xf32>
    %5 = tpu.matmul %3, %4, %cst_7 {dimension_numbers = #tpu.dot_dimension_numbers<[1], [0], [0], [1], [0, 0, 1, 1], [], []>} : vector<16x16xbf16>, vector<16x128xbf16>, vector<16x128xf32> -> vector<16x128xf32>
    %6 = arith.addf %2, %5 : vector<16x128xf32>
    %c0_8 = arith.constant 0 : index
    %c0_9 = arith.constant 0 : index
    %7 = vector.load %arg5[%c0_8, %c0_9] : memref<1x128xf32, #tpu.memory_space<vmem>>, vector<1x128xf32>
    %8 = vector.broadcast %7 : vector<1x128xf32> to vector<16x128xf32>
    %9 = arith.addf %6, %8 : vector<16x128xf32>
    %10 = arith.truncf %9 : vector<16x128xf32> to vector<16x128xbf16>
    %c0_10 = arith.constant 0 : index
    %c0_11 = arith.constant 0 : index
    %11 = vector.load %arg6[%c0_10, %c0_11] : memref<16x128xbf16, #tpu.memory_space<vmem>>, vector<16x128xbf16>
    tpu.vector_store %arg6[%c0_10, %c0_11], %10 {strides = array<i32>} : memref<16x128xbf16, #tpu.memory_space<vmem>>, vector<16x128xbf16>,
    return
  }
  func.func @transform_0(%arg0: i32) -> (i32, i32) {
    %c0_i32 = arith.constant 0 : i32
    %c0_i32_0 = arith.constant 0 : i32
    return %arg0, %c0_i32 : i32, i32
  }
  func.func @transform_1(%arg0: i32) -> (i32, i32) {
    %c0_i32 = arith.constant 0 : i32
    %c0_i32_0 = arith.constant 0 : i32
    return %arg0, %c0_i32 : i32, i32
  }
  func.func @transform_2(%arg0: i32) -> (i32, i32) {
    %c0_i32 = arith.constant 0 : i32
    %c0_i32_0 = arith.constant 0 : i32
    %c0_i32_1 = arith.constant 0 : i32
    return %c0_i32, %c0_i32_0 : i32, i32
  }
  func.func @transform_3(%arg0: i32) -> (i32, i32) {
    %c0_i32 = arith.constant 0 : i32
    %c0_i32_0 = arith.constant 0 : i32
    %c0_i32_1 = arith.constant 0 : i32
    return %c0_i32, %c0_i32_0 : i32, i32
  }
  func.func @transform_4(%arg0: i32) -> (i32, i32) {
    %c0_i32 = arith.constant 0 : i32
    %c0_i32_0 = arith.constant 0 : i32
    %c0_i32_1 = arith.constant 0 : i32
    return %c0_i32, %c0_i32_0 : i32, i32
  }
  func.func @transform_5(%arg0: i32) -> (i32, i32) {
    %c0_i32 = arith.constant 0 : i32
    %c0_i32_0 = arith.constant 0 : i32
    return %arg0, %c0_i32 : i32, i32
  }
}

module attributes {stable_mosaic.version = 11 : i64} {
  func.func @_fused_linear_kernel(%arg0: i32, %arg1: memref<16x32xbf16, #tpu.memory_space<vmem>>, %arg2: memref<32x32xbf16, #tpu.memory_space<vmem>>, %arg3: memref<1x32xf32, #tpu.memory_space<vmem>>, %arg4: memref<16x32xf32, #tpu.memory_space<vmem>>, %arg5: memref<1x32xf32, #tpu.memory_space<vmem>>, %arg6: memref<1x32xf32, #tpu.memory_space<vmem>>, %arg7: memref<16x32xf32, #tpu.memory_space<vmem>>) attributes {dimension_semantics = [#tpu.dimension_semantics<parallel>], iteration_bounds = array<i64: 1>, scalar_prefetch = 0 : i64, scratch_operands = 0 : i64, tpu.core_type = #tpu.core_type<tc>, window_params = [{transform_indices = @transform_0, window_bounds = array<i64: 16, 32>}, {pipeline_mode = #tpu.pipeline_mode<synchronous>, transform_indices = @transform_1, window_bounds = array<i64: 32, 32>}, {pipeline_mode = #tpu.pipeline_mode<synchronous>, transform_indices = @transform_2, window_bounds = array<i64: 1, 32>}, {transform_indices = @transform_3, window_bounds = array<i64: 16, 32>}, {pipeline_mode = #tpu.pipeline_mode<synchronous>, transform_indices = @transform_4, window_bounds = array<i64: 1, 32>}, {pipeline_mode = #tpu.pipeline_mode<synchronous>, transform_indices = @transform_5, window_bounds = array<i64: 1, 32>}, {transform_indices = @transform_6, window_bounds = array<i64: 16, 32>}]} {
    %c0 = arith.constant 0 : index
    %c0_0 = arith.constant 0 : index
    %0 = vector.load %arg1[%c0, %c0_0] : memref<16x32xbf16, #tpu.memory_space<vmem>>, vector<16x32xbf16>
    %c0_1 = arith.constant 0 : index
    %c0_2 = arith.constant 0 : index
    %1 = vector.load %arg2[%c0_1, %c0_2] : memref<32x32xbf16, #tpu.memory_space<vmem>>, vector<32x32xbf16>
    %cst = arith.constant dense<0.000000e+00> : vector<16x32xf32>
    %2 = tpu.matmul %0, %1, %cst {dimension_numbers = #tpu.dot_dimension_numbers<[1], [0], [0], [1], [0, 0, 1, 1], [], []>} : vector<16x32xbf16>, vector<32x32xbf16>, vector<16x32xf32> -> vector<16x32xf32>
    %c0_3 = arith.constant 0 : index
    %c0_4 = arith.constant 0 : index
    %3 = vector.load %arg3[%c0_3, %c0_4] : memref<1x32xf32, #tpu.memory_space<vmem>>, vector<1x32xf32>
    %4 = vector.broadcast %3 : vector<1x32xf32> to vector<16x32xf32>
    %5 = arith.addf %2, %4 : vector<16x32xf32>
    %c0_5 = arith.constant 0 : index
    %c0_6 = arith.constant 0 : index
    %6 = vector.load %arg5[%c0_5, %c0_6] : memref<1x32xf32, #tpu.memory_space<vmem>>, vector<1x32xf32>
    %7 = vector.broadcast %6 : vector<1x32xf32> to vector<16x32xf32>
    %8 = arith.mulf %7, %5 : vector<16x32xf32>
    %c0_7 = arith.constant 0 : index
    %c0_8 = arith.constant 0 : index
    %9 = vector.load %arg6[%c0_7, %c0_8] : memref<1x32xf32, #tpu.memory_space<vmem>>, vector<1x32xf32>
    %10 = vector.broadcast %9 : vector<1x32xf32> to vector<16x32xf32>
    %11 = arith.addf %8, %10 : vector<16x32xf32>
    %cst_9 = arith.constant 0.000000e+00 : f32
    %12 = vector.broadcast %cst_9 : f32 to vector<16x32xf32>
    %13 = arith.maximumf %11, %12 : vector<16x32xf32>
    %c0_10 = arith.constant 0 : index
    %c0_11 = arith.constant 0 : index
    %14 = vector.load %arg4[%c0_10, %c0_11] : memref<16x32xf32, #tpu.memory_space<vmem>>, vector<16x32xf32>
    %15 = arith.mulf %13, %14 : vector<16x32xf32>
    %c0_12 = arith.constant 0 : index
    %c0_13 = arith.constant 0 : index
    %16 = vector.load %arg7[%c0_12, %c0_13] : memref<16x32xf32, #tpu.memory_space<vmem>>, vector<16x32xf32>
    tpu.vector_store %arg7[%c0_12, %c0_13], %15 {strides = array<i32>} : memref<16x32xf32, #tpu.memory_space<vmem>>, vector<16x32xf32>,
    return
  }
  func.func @transform_0(%arg0: i32) -> (i32, i32) {
    %c0_i32 = arith.constant 0 : i32
    %c0_i32_0 = arith.constant 0 : i32
    return %arg0, %c0_i32 : i32, i32
  }
  func.func @transform_1(%arg0: i32) -> (i32, i32) {
    %c0_i32 = arith.constant 0 : i32
    %c0_i32_0 = arith.constant 0 : i32
    %c0_i32_1 = arith.constant 0 : i32
    return %c0_i32, %c0_i32_0 : i32, i32
  }
  func.func @transform_2(%arg0: i32) -> (i32, i32) {
    %c0_i32 = arith.constant 0 : i32
    %c0_i32_0 = arith.constant 0 : i32
    %c0_i32_1 = arith.constant 0 : i32
    return %c0_i32, %c0_i32_0 : i32, i32
  }
  func.func @transform_3(%arg0: i32) -> (i32, i32) {
    %c0_i32 = arith.constant 0 : i32
    %c0_i32_0 = arith.constant 0 : i32
    return %arg0, %c0_i32 : i32, i32
  }
  func.func @transform_4(%arg0: i32) -> (i32, i32) {
    %c0_i32 = arith.constant 0 : i32
    %c0_i32_0 = arith.constant 0 : i32
    %c0_i32_1 = arith.constant 0 : i32
    return %c0_i32, %c0_i32_0 : i32, i32
  }
  func.func @transform_5(%arg0: i32) -> (i32, i32) {
    %c0_i32 = arith.constant 0 : i32
    %c0_i32_0 = arith.constant 0 : i32
    %c0_i32_1 = arith.constant 0 : i32
    return %c0_i32, %c0_i32_0 : i32, i32
  }
  func.func @transform_6(%arg0: i32) -> (i32, i32) {
    %c0_i32 = arith.constant 0 : i32
    %c0_i32_0 = arith.constant 0 : i32
    return %arg0, %c0_i32 : i32, i32
  }
}

module attributes {stable_mosaic.version = 11 : i64} {
  func.func @_fused_linear_kernel(%arg0: i32, %arg1: memref<16x32xbf16, #tpu.memory_space<vmem>>, %arg2: memref<16x16xbf16, #tpu.memory_space<vmem>>, %arg3: memref<16x16xbf16, #tpu.memory_space<vmem>>, %arg4: memref<32x32xbf16, #tpu.memory_space<vmem>>, %arg5: memref<16x32xbf16, #tpu.memory_space<vmem>>, %arg6: memref<16x32xbf16, #tpu.memory_space<vmem>>, %arg7: memref<1x32xf32, #tpu.memory_space<vmem>>, %arg8: memref<16x32xbf16, #tpu.memory_space<vmem>>) attributes {dimension_semantics = [#tpu.dimension_semantics<parallel>], iteration_bounds = array<i64: 1>, scalar_prefetch = 0 : i64, scratch_operands = 0 : i64, tpu.core_type = #tpu.core_type<tc>, window_params = [{transform_indices = @transform_0, window_bounds = array<i64: 16, 32>}, {transform_indices = @transform_1, window_bounds = array<i64: 16, 16>}, {transform_indices = @transform_2, window_bounds = array<i64: 16, 16>}, {pipeline_mode = #tpu.pipeline_mode<synchronous>, transform_indices = @transform_3, window_bounds = array<i64: 32, 32>}, {pipeline_mode = #tpu.pipeline_mode<synchronous>, transform_indices = @transform_4, window_bounds = array<i64: 16, 32>}, {pipeline_mode = #tpu.pipeline_mode<synchronous>, transform_indices = @transform_5, window_bounds = array<i64: 16, 32>}, {pipeline_mode = #tpu.pipeline_mode<synchronous>, transform_indices = @transform_6, window_bounds = array<i64: 1, 32>}, {transform_indices = @transform_7, window_bounds = array<i64: 16, 32>}]} {
    %c0 = arith.constant 0 : index
    %c0_0 = arith.constant 0 : index
    %0 = vector.load %arg1[%c0, %c0_0] : memref<16x32xbf16, #tpu.memory_space<vmem>>, vector<16x32xbf16>
    %c0_1 = arith.constant 0 : index
    %c0_2 = arith.constant 0 : index
    %1 = vector.load %arg4[%c0_1, %c0_2] : memref<32x32xbf16, #tpu.memory_space<vmem>>, vector<32x32xbf16>
    %cst = arith.constant dense<0.000000e+00> : vector<16x32xf32>
    %2 = tpu.matmul %0, %1, %cst {dimension_numbers = #tpu.dot_dimension_numbers<[1], [0], [0], [1], [0, 0, 1, 1], [], []>} : vector<16x32xbf16>, vector<32x32xbf16>, vector<16x32xf32> -> vector<16x32xf32>
    %c0_3 = arith.constant 0 : index
    %c0_4 = arith.constant 0 : index
    %3 = vector.load %arg2[%c0_3, %c0_4] : memref<16x16xbf16, #tpu.memory_space<vmem>>, vector<16x16xbf16>
    %c0_5 = arith.constant 0 : index
    %c0_6 = arith.constant 0 : index
    %4 = vector.load %arg5[%c0_5, %c0_6] : memref<16x32xbf16, #tpu.memory_space<vmem>>, vector<16x32xbf16>
    %cst_7 = arith.constant dense<0.000000e+00> : vector<16x32xf32>
    %5 = tpu.matmul %3, %4, %cst_7 {dimension_numbers = #tpu.dot_dimension_numbers<[1], [0], [0], [1], [0, 0, 1, 1], [], []>} : vector<16x16xbf16>, vector<16x32xbf16>, vector<16x32xf32> -> vector<16x32xf32>
    %6 = arith.addf %2, %5 : vector<16x32xf32>
    %c0_8 = arith.constant 0 : index
    %c0_9 = arith.constant 0 : index
    %7 = vector.load %arg3[%c0_8, %c0_9] : memref<16x16xbf16, #tpu.memory_space<vmem>>, vector<16x16xbf16>
    %c0_10 = arith.constant 0 : index
    %c0_11 = arith.constant 0 : index
    %8 = vector.load %arg6[%c0_10, %c0_11] : memref<16x32xbf16, #tpu.memory_space<vmem>>, vector<16x32xbf16>
    %cst_12 = arith.constant dense<0.000000e+00> : vector<16x32xf32>
    %9 = tpu.matmul %7, %8, %cst_12 {dimension_numbers = #tpu.dot_dimension_numbers<[1], [0], [0], [1], [0, 0, 1, 1], [], []>} : vector<16x16xbf16>, vector<16x32xbf16>, vector<16x32xf32> -> vector<16x32xf32>
    %10 = arith.addf %6, %9 : vector<16x32xf32>
    %c0_13 = arith.constant 0 : index
    %c0_14 = arith.constant 0 : index
    %11 = vector.load %arg7[%c0_13, %c0_14] : memref<1x32xf32, #tpu.memory_space<vmem>>, vector<1x32xf32>
    %12 = vector.broadcast %11 : vector<1x32xf32> to vector<16x32xf32>
    %13 = arith.addf %10, %12 : vector<16x32xf32>
    %cst_15 = arith.constant 0.000000e+00 : f32
    %14 = vector.broadcast %cst_15 : f32 to vector<16x32xf32>
    %15 = arith.maximumf %13, %14 : vector<16x32xf32>
    %16 = arith.truncf %15 : vector<16x32xf32> to vector<16x32xbf16>
    %c0_16 = arith.constant 0 : index
    %c0_17 = arith.constant 0 : index
    %17 = vector.load %arg8[%c0_16, %c0_17] : memref<16x32xbf16, #tpu.memory_space<vmem>>, vector<16x32xbf16>
    tpu.vector_store %arg8[%c0_16, %c0_17], %16 {strides = array<i32>} : memref<16x32xbf16, #tpu.memory_space<vmem>>, vector<16x32xbf16>,
    return
  }
  func.func @transform_0(%arg0: i32) -> (i32, i32) {
    %c0_i32 = arith.constant 0 : i32
    %c0_i32_0 = arith.constant 0 : i32
    return %arg0, %c0_i32 : i32, i32
  }
  func.func @transform_1(%arg0: i32) -> (i32, i32) {
    %c0_i32 = arith.constant 0 : i32
    %c0_i32_0 = arith.constant 0 : i32
    return %arg0, %c0_i32 : i32, i32
  }
  func.func @transform_2(%arg0: i32) -> (i32, i32) {
    %c0_i32 = arith.constant 0 : i32
    %c0_i32_0 = arith.constant 0 : i32
    return %arg0, %c0_i32 : i32, i32
  }
  func.func @transform_3(%arg0: i32) -> (i32, i32) {
    %c0_i32 = arith.constant 0 : i32
    %c0_i32_0 = arith.constant 0 : i32
    %c0_i32_1 = arith.constant 0 : i32
    return %c0_i32, %c0_i32_0 : i32, i32
  }
  func.func @transform_4(%arg0: i32) -> (i32, i32) {
    %c0_i32 = arith.constant 0 : i32
    %c0_i32_0 = arith.constant 0 : i32
    %c0_i32_1 = arith.constant 0 : i32
    return %c0_i32, %c0_i32_0 : i32, i32
  }
  func.func @transform_5(%arg0: i32) -> (i32, i32) {
    %c0_i32 = arith.constant 0 : i32
    %c0_i32_0 = arith.constant 0 : i32
    %c0_i32_1 = arith.constant 0 : i32
    return %c0_i32, %c0_i32_0 : i32, i32
  }
  func.func @transform_6(%arg0: i32) -> (i32, i32) {
    %c0_i32 = arith.constant 0 : i32
    %c0_i32_0 = arith.constant 0 : i32
    %c0_i32_1 = arith.constant 0 : i32
    return %c0_i32, %c0_i32_0 : i32, i32
  }
  func.func @transform_7(%arg0: i32) -> (i32, i32) {
    %c0_i32 = arith.constant 0 : i32
    %c0_i32_0 = arith.constant 0 : i32
    return %arg0, %c0_i32 : i32, i32
  }
}

module attributes {stable_mosaic.version = 11 : i64} {
  func.func @_bilstm_kernel(%arg0: i32, %arg1: memref<8x2x64xbf16, #tpu.memory_space<vmem>>, %arg2: memref<8x2x64xbf16, #tpu.memory_space<vmem>>, %arg3: memref<2x16x64xbf16, #tpu.memory_space<vmem>>, %arg4: memref<8x2x16xbf16, #tpu.memory_space<vmem>>, %arg5: memref<8x2x16xbf16, #tpu.memory_space<vmem>>, %arg6: memref<2x16xf32, #tpu.memory_space<vmem>>, %arg7: memref<2x16xf32, #tpu.memory_space<vmem>>, %arg8: memref<2x16xf32, #tpu.memory_space<vmem>>, %arg9: memref<2x16xf32, #tpu.memory_space<vmem>>) attributes {dimension_semantics = [#tpu.dimension_semantics<arbitrary>], iteration_bounds = array<i64: 1>, scalar_prefetch = 0 : i64, scratch_operands = 4 : i64, tpu.core_type = #tpu.core_type<tc>, window_params = [{transform_indices = @transform_0, window_bounds = array<i64: 8, 2, 64>}, {transform_indices = @transform_1, window_bounds = array<i64: 8, 2, 64>}, {pipeline_mode = #tpu.pipeline_mode<synchronous>, transform_indices = @transform_2, window_bounds = array<i64: 2, 16, 64>}, {transform_indices = @transform_3, window_bounds = array<i64: 8, 2, 16>}, {transform_indices = @transform_4, window_bounds = array<i64: 8, 2, 16>}]} {
    %c0_i32 = arith.constant 0 : i32
    %0 = arith.cmpi eq, %arg0, %c0_i32 : i32
    %1 = arith.extui %0 : i1 to i32
    %c0_i32_0 = arith.constant 0 : i32
    %2 = arith.cmpi ne, %1, %c0_i32_0 : i32
    scf.if %2 {
      %cst_157 = arith.constant 0.000000e+00 : f32
      %615 = vector.broadcast %cst_157 : f32 to vector<2x16xf32>
      %c0_158 = arith.constant 0 : index
      %c0_159 = arith.constant 0 : index
      %616 = vector.load %arg6[%c0_158, %c0_159] : memref<2x16xf32, #tpu.memory_space<vmem>>, vector<2x16xf32>
      tpu.vector_store %arg6[%c0_158, %c0_159], %615 {strides = array<i32>} : memref<2x16xf32, #tpu.memory_space<vmem>>, vector<2x16xf32>,
      %cst_160 = arith.constant 0.000000e+00 : f32
      %617 = vector.broadcast %cst_160 : f32 to vector<2x16xf32>
      %c0_161 = arith.constant 0 : index
      %c0_162 = arith.constant 0 : index
      %618 = vector.load %arg7[%c0_161, %c0_162] : memref<2x16xf32, #tpu.memory_space<vmem>>, vector<2x16xf32>
      tpu.vector_store %arg7[%c0_161, %c0_162], %617 {strides = array<i32>} : memref<2x16xf32, #tpu.memory_space<vmem>>, vector<2x16xf32>,
      %cst_163 = arith.constant 0.000000e+00 : f32
      %619 = vector.broadcast %cst_163 : f32 to vector<2x16xf32>
      %c0_164 = arith.constant 0 : index
      %c0_165 = arith.constant 0 : index
      %620 = vector.load %arg8[%c0_164, %c0_165] : memref<2x16xf32, #tpu.memory_space<vmem>>, vector<2x16xf32>
      tpu.vector_store %arg8[%c0_164, %c0_165], %619 {strides = array<i32>} : memref<2x16xf32, #tpu.memory_space<vmem>>, vector<2x16xf32>,
      %cst_166 = arith.constant 0.000000e+00 : f32
      %621 = vector.broadcast %cst_166 : f32 to vector<2x16xf32>
      %c0_167 = arith.constant 0 : index
      %c0_168 = arith.constant 0 : index
      %622 = vector.load %arg9[%c0_167, %c0_168] : memref<2x16xf32, #tpu.memory_space<vmem>>, vector<2x16xf32>
      tpu.vector_store %arg9[%c0_167, %c0_168], %621 {strides = array<i32>} : memref<2x16xf32, #tpu.memory_space<vmem>>, vector<2x16xf32>,
    } else {
    }
    %c0 = arith.constant 0 : index
    %c0_1 = arith.constant 0 : index
    %c0_2 = arith.constant 0 : index
    %3 = vector.load %arg3[%c0, %c0_1, %c0_2] : memref<2x16x64xbf16, #tpu.memory_space<vmem>>, vector<1x16x64xbf16>
    %4 = vector.shape_cast %3 : vector<1x16x64xbf16> to vector<16x64xbf16>
    %c1 = arith.constant 1 : index
    %c0_3 = arith.constant 0 : index
    %c0_4 = arith.constant 0 : index
    %5 = vector.load %arg3[%c1, %c0_3, %c0_4] : memref<2x16x64xbf16, #tpu.memory_space<vmem>>, vector<1x16x64xbf16>
    %6 = vector.shape_cast %5 : vector<1x16x64xbf16> to vector<16x64xbf16>
    %c0_5 = arith.constant 0 : index
    %c0_6 = arith.constant 0 : index
    %7 = vector.load %arg6[%c0_5, %c0_6] : memref<2x16xf32, #tpu.memory_space<vmem>>, vector<2x16xf32>
    %c0_7 = arith.constant 0 : index
    %c0_8 = arith.constant 0 : index
    %8 = vector.load %arg7[%c0_7, %c0_8] : memref<2x16xf32, #tpu.memory_space<vmem>>, vector<2x16xf32>
    %c0_9 = arith.constant 0 : index
    %c0_10 = arith.constant 0 : index
    %9 = vector.load %arg8[%c0_9, %c0_10] : memref<2x16xf32, #tpu.memory_space<vmem>>, vector<2x16xf32>
    %c0_11 = arith.constant 0 : index
    %c0_12 = arith.constant 0 : index
    %10 = vector.load %arg9[%c0_11, %c0_12] : memref<2x16xf32, #tpu.memory_space<vmem>>, vector<2x16xf32>
    %c0_i32_13 = arith.constant 0 : i32
    %c7_i32 = arith.constant 7 : i32
    %11 = arith.subi %c7_i32, %c0_i32_13 : i32
    %12 = arith.index_cast %c0_i32_13 : i32 to index
    %c0_14 = arith.constant 0 : index
    %c0_15 = arith.constant 0 : index
    %13 = vector.load %arg1[%12, %c0_14, %c0_15] : memref<8x2x64xbf16, #tpu.memory_space<vmem>>, vector<1x2x64xbf16>
    %14 = vector.shape_cast %13 : vector<1x2x64xbf16> to vector<2x64xbf16>
    %15 = arith.extf %14 : vector<2x64xbf16> to vector<2x64xf32>
    %16 = arith.truncf %7 : vector<2x16xf32> to vector<2x16xbf16>
    %cst = arith.constant dense<0.000000e+00> : vector<2x64xf32>
    %17 = tpu.matmul %16, %4, %cst {dimension_numbers = #tpu.dot_dimension_numbers<[1], [0], [0], [1], [0, 0, 1, 1], [], []>} : vector<2x16xbf16>, vector<16x64xbf16>, vector<2x64xf32> -> vector<2x64xf32>
    %18 = arith.addf %15, %17 : vector<2x64xf32>
    %19 = arith.index_cast %11 : i32 to index
    %c0_16 = arith.constant 0 : index
    %c0_17 = arith.constant 0 : index
    %20 = vector.load %arg2[%19, %c0_16, %c0_17] : memref<8x2x64xbf16, #tpu.memory_space<vmem>>, vector<1x2x64xbf16>
    %21 = vector.shape_cast %20 : vector<1x2x64xbf16> to vector<2x64xbf16>
    %22 = arith.extf %21 : vector<2x64xbf16> to vector<2x64xf32>
    %23 = arith.truncf %9 : vector<2x16xf32> to vector<2x16xbf16>
    %cst_18 = arith.constant dense<0.000000e+00> : vector<2x64xf32>
    %24 = tpu.matmul %23, %6, %cst_18 {dimension_numbers = #tpu.dot_dimension_numbers<[1], [0], [0], [1], [0, 0, 1, 1], [], []>} : vector<2x16xbf16>, vector<16x64xbf16>, vector<2x64xf32> -> vector<2x64xf32>
    %25 = arith.addf %22, %24 : vector<2x64xf32>
    %26 = vector.extract_strided_slice %18 {offsets = [0, 0], sizes = [2, 16], strides = [1, 1]} : vector<2x64xf32> to vector<2x16xf32>
    %27 = arith.negf %26 : vector<2x16xf32>
    %28 = math.exp %27 : vector<2x16xf32>
    %cst_19 = arith.constant 1.000000e+00 : f32
    %29 = vector.broadcast %cst_19 : f32 to vector<2x16xf32>
    %30 = arith.addf %29, %28 : vector<2x16xf32>
    %31 = arith.divf %29, %30 : vector<2x16xf32>
    %32 = vector.extract_strided_slice %18 {offsets = [0, 16], sizes = [2, 16], strides = [1, 1]} : vector<2x64xf32> to vector<2x16xf32>
    %33 = arith.negf %32 : vector<2x16xf32>
    %34 = math.exp %33 : vector<2x16xf32>
    %cst_20 = arith.constant 1.000000e+00 : f32
    %35 = vector.broadcast %cst_20 : f32 to vector<2x16xf32>
    %36 = arith.addf %35, %34 : vector<2x16xf32>
    %37 = arith.divf %35, %36 : vector<2x16xf32>
    %38 = vector.extract_strided_slice %18 {offsets = [0, 32], sizes = [2, 16], strides = [1, 1]} : vector<2x64xf32> to vector<2x16xf32>
    %39 = math.tanh %38 : vector<2x16xf32>
    %40 = vector.extract_strided_slice %18 {offsets = [0, 48], sizes = [2, 16], strides = [1, 1]} : vector<2x64xf32> to vector<2x16xf32>
    %41 = arith.negf %40 : vector<2x16xf32>
    %42 = math.exp %41 : vector<2x16xf32>
    %cst_21 = arith.constant 1.000000e+00 : f32
    %43 = vector.broadcast %cst_21 : f32 to vector<2x16xf32>
    %44 = arith.addf %43, %42 : vector<2x16xf32>
    %45 = arith.divf %43, %44 : vector<2x16xf32>
    %46 = arith.mulf %37, %8 : vector<2x16xf32>
    %47 = arith.mulf %31, %39 : vector<2x16xf32>
    %48 = arith.addf %46, %47 : vector<2x16xf32>
    %49 = math.tanh %48 : vector<2x16xf32>
    %50 = arith.mulf %45, %49 : vector<2x16xf32>
    %51 = vector.extract_strided_slice %25 {offsets = [0, 0], sizes = [2, 16], strides = [1, 1]} : vector<2x64xf32> to vector<2x16xf32>
    %52 = arith.negf %51 : vector<2x16xf32>
    %53 = math.exp %52 : vector<2x16xf32>
    %cst_22 = arith.constant 1.000000e+00 : f32
    %54 = vector.broadcast %cst_22 : f32 to vector<2x16xf32>
    %55 = arith.addf %54, %53 : vector<2x16xf32>
    %56 = arith.divf %54, %55 : vector<2x16xf32>
    %57 = vector.extract_strided_slice %25 {offsets = [0, 16], sizes = [2, 16], strides = [1, 1]} : vector<2x64xf32> to vector<2x16xf32>
    %58 = arith.negf %57 : vector<2x16xf32>
    %59 = math.exp %58 : vector<2x16xf32>
    %cst_23 = arith.constant 1.000000e+00 : f32
    %60 = vector.broadcast %cst_23 : f32 to vector<2x16xf32>
    %61 = arith.addf %60, %59 : vector<2x16xf32>
    %62 = arith.divf %60, %61 : vector<2x16xf32>
    %63 = vector.extract_strided_slice %25 {offsets = [0, 32], sizes = [2, 16], strides = [1, 1]} : vector<2x64xf32> to vector<2x16xf32>
    %64 = math.tanh %63 : vector<2x16xf32>
    %65 = vector.extract_strided_slice %25 {offsets = [0, 48], sizes = [2, 16], strides = [1, 1]} : vector<2x64xf32> to vector<2x16xf32>
    %66 = arith.negf %65 : vector<2x16xf32>
    %67 = math.exp %66 : vector<2x16xf32>
    %cst_24 = arith.constant 1.000000e+00 : f32
    %68 = vector.broadcast %cst_24 : f32 to vector<2x16xf32>
    %69 = arith.addf %68, %67 : vector<2x16xf32>
    %70 = arith.divf %68, %69 : vector<2x16xf32>
    %71 = arith.mulf %62, %10 : vector<2x16xf32>
    %72 = arith.mulf %56, %64 : vector<2x16xf32>
    %73 = arith.addf %71, %72 : vector<2x16xf32>
    %74 = math.tanh %73 : vector<2x16xf32>
    %75 = arith.mulf %70, %74 : vector<2x16xf32>
    %76 = arith.truncf %50 : vector<2x16xf32> to vector<2x16xbf16>
    %77 = arith.index_cast %c0_i32_13 : i32 to index
    %c0_25 = arith.constant 0 : index
    %c0_26 = arith.constant 0 : index
    %78 = vector.load %arg4[%77, %c0_25, %c0_26] : memref<8x2x16xbf16, #tpu.memory_space<vmem>>, vector<1x2x16xbf16>
    %79 = vector.shape_cast %78 : vector<1x2x16xbf16> to vector<2x16xbf16>
    %80 = vector.shape_cast %76 : vector<2x16xbf16> to vector<1x2x16xbf16>
    tpu.vector_store %arg4[%77, %c0_25, %c0_26], %80 {strides = array<i32>} : memref<8x2x16xbf16, #tpu.memory_space<vmem>>, vector<1x2x16xbf16>,
    %81 = arith.truncf %75 : vector<2x16xf32> to vector<2x16xbf16>
    %82 = arith.index_cast %11 : i32 to index
    %c0_27 = arith.constant 0 : index
    %c0_28 = arith.constant 0 : index
    %83 = vector.load %arg5[%82, %c0_27, %c0_28] : memref<8x2x16xbf16, #tpu.memory_space<vmem>>, vector<1x2x16xbf16>
    %84 = vector.shape_cast %83 : vector<1x2x16xbf16> to vector<2x16xbf16>
    %85 = vector.shape_cast %81 : vector<2x16xbf16> to vector<1x2x16xbf16>
    tpu.vector_store %arg5[%82, %c0_27, %c0_28], %85 {strides = array<i32>} : memref<8x2x16xbf16, #tpu.memory_space<vmem>>, vector<1x2x16xbf16>,
    %c1_i32 = arith.constant 1 : i32
    %c7_i32_29 = arith.constant 7 : i32
    %86 = arith.subi %c7_i32_29, %c1_i32 : i32
    %87 = arith.index_cast %c1_i32 : i32 to index
    %c0_30 = arith.constant 0 : index
    %c0_31 = arith.constant 0 : index
    %88 = vector.load %arg1[%87, %c0_30, %c0_31] : memref<8x2x64xbf16, #tpu.memory_space<vmem>>, vector<1x2x64xbf16>
    %89 = vector.shape_cast %88 : vector<1x2x64xbf16> to vector<2x64xbf16>
    %90 = arith.extf %89 : vector<2x64xbf16> to vector<2x64xf32>
    %91 = arith.truncf %50 : vector<2x16xf32> to vector<2x16xbf16>
    %cst_32 = arith.constant dense<0.000000e+00> : vector<2x64xf32>
    %92 = tpu.matmul %91, %4, %cst_32 {dimension_numbers = #tpu.dot_dimension_numbers<[1], [0], [0], [1], [0, 0, 1, 1], [], []>} : vector<2x16xbf16>, vector<16x64xbf16>, vector<2x64xf32> -> vector<2x64xf32>
    %93 = arith.addf %90, %92 : vector<2x64xf32>
    %94 = arith.index_cast %86 : i32 to index
    %c0_33 = arith.constant 0 : index
    %c0_34 = arith.constant 0 : index
    %95 = vector.load %arg2[%94, %c0_33, %c0_34] : memref<8x2x64xbf16, #tpu.memory_space<vmem>>, vector<1x2x64xbf16>
    %96 = vector.shape_cast %95 : vector<1x2x64xbf16> to vector<2x64xbf16>
    %97 = arith.extf %96 : vector<2x64xbf16> to vector<2x64xf32>
    %98 = arith.truncf %75 : vector<2x16xf32> to vector<2x16xbf16>
    %cst_35 = arith.constant dense<0.000000e+00> : vector<2x64xf32>
    %99 = tpu.matmul %98, %6, %cst_35 {dimension_numbers = #tpu.dot_dimension_numbers<[1], [0], [0], [1], [0, 0, 1, 1], [], []>} : vector<2x16xbf16>, vector<16x64xbf16>, vector<2x64xf32> -> vector<2x64xf32>
    %100 = arith.addf %97, %99 : vector<2x64xf32>
    %101 = vector.extract_strided_slice %93 {offsets = [0, 0], sizes = [2, 16], strides = [1, 1]} : vector<2x64xf32> to vector<2x16xf32>
    %102 = arith.negf %101 : vector<2x16xf32>
    %103 = math.exp %102 : vector<2x16xf32>
    %cst_36 = arith.constant 1.000000e+00 : f32
    %104 = vector.broadcast %cst_36 : f32 to vector<2x16xf32>
    %105 = arith.addf %104, %103 : vector<2x16xf32>
    %106 = arith.divf %104, %105 : vector<2x16xf32>
    %107 = vector.extract_strided_slice %93 {offsets = [0, 16], sizes = [2, 16], strides = [1, 1]} : vector<2x64xf32> to vector<2x16xf32>
    %108 = arith.negf %107 : vector<2x16xf32>
    %109 = math.exp %108 : vector<2x16xf32>
    %cst_37 = arith.constant 1.000000e+00 : f32
    %110 = vector.broadcast %cst_37 : f32 to vector<2x16xf32>
    %111 = arith.addf %110, %109 : vector<2x16xf32>
    %112 = arith.divf %110, %111 : vector<2x16xf32>
    %113 = vector.extract_strided_slice %93 {offsets = [0, 32], sizes = [2, 16], strides = [1, 1]} : vector<2x64xf32> to vector<2x16xf32>
    %114 = math.tanh %113 : vector<2x16xf32>
    %115 = vector.extract_strided_slice %93 {offsets = [0, 48], sizes = [2, 16], strides = [1, 1]} : vector<2x64xf32> to vector<2x16xf32>
    %116 = arith.negf %115 : vector<2x16xf32>
    %117 = math.exp %116 : vector<2x16xf32>
    %cst_38 = arith.constant 1.000000e+00 : f32
    %118 = vector.broadcast %cst_38 : f32 to vector<2x16xf32>
    %119 = arith.addf %118, %117 : vector<2x16xf32>
    %120 = arith.divf %118, %119 : vector<2x16xf32>
    %121 = arith.mulf %112, %48 : vector<2x16xf32>
    %122 = arith.mulf %106, %114 : vector<2x16xf32>
    %123 = arith.addf %121, %122 : vector<2x16xf32>
    %124 = math.tanh %123 : vector<2x16xf32>
    %125 = arith.mulf %120, %124 : vector<2x16xf32>
    %126 = vector.extract_strided_slice %100 {offsets = [0, 0], sizes = [2, 16], strides = [1, 1]} : vector<2x64xf32> to vector<2x16xf32>
    %127 = arith.negf %126 : vector<2x16xf32>
    %128 = math.exp %127 : vector<2x16xf32>
    %cst_39 = arith.constant 1.000000e+00 : f32
    %129 = vector.broadcast %cst_39 : f32 to vector<2x16xf32>
    %130 = arith.addf %129, %128 : vector<2x16xf32>
    %131 = arith.divf %129, %130 : vector<2x16xf32>
    %132 = vector.extract_strided_slice %100 {offsets = [0, 16], sizes = [2, 16], strides = [1, 1]} : vector<2x64xf32> to vector<2x16xf32>
    %133 = arith.negf %132 : vector<2x16xf32>
    %134 = math.exp %133 : vector<2x16xf32>
    %cst_40 = arith.constant 1.000000e+00 : f32
    %135 = vector.broadcast %cst_40 : f32 to vector<2x16xf32>
    %136 = arith.addf %135, %134 : vector<2x16xf32>
    %137 = arith.divf %135, %136 : vector<2x16xf32>
    %138 = vector.extract_strided_slice %100 {offsets = [0, 32], sizes = [2, 16], strides = [1, 1]} : vector<2x64xf32> to vector<2x16xf32>
    %139 = math.tanh %138 : vector<2x16xf32>
    %140 = vector.extract_strided_slice %100 {offsets = [0, 48], sizes = [2, 16], strides = [1, 1]} : vector<2x64xf32> to vector<2x16xf32>
    %141 = arith.negf %140 : vector<2x16xf32>
    %142 = math.exp %141 : vector<2x16xf32>
    %cst_41 = arith.constant 1.000000e+00 : f32
    %143 = vector.broadcast %cst_41 : f32 to vector<2x16xf32>
    %144 = arith.addf %143, %142 : vector<2x16xf32>
    %145 = arith.divf %143, %144 : vector<2x16xf32>
    %146 = arith.mulf %137, %73 : vector<2x16xf32>
    %147 = arith.mulf %131, %139 : vector<2x16xf32>
    %148 = arith.addf %146, %147 : vector<2x16xf32>
    %149 = math.tanh %148 : vector<2x16xf32>
    %150 = arith.mulf %145, %149 : vector<2x16xf32>
    %151 = arith.truncf %125 : vector<2x16xf32> to vector<2x16xbf16>
    %152 = arith.index_cast %c1_i32 : i32 to index
    %c0_42 = arith.constant 0 : index
    %c0_43 = arith.constant 0 : index
    %153 = vector.load %arg4[%152, %c0_42, %c0_43] : memref<8x2x16xbf16, #tpu.memory_space<vmem>>, vector<1x2x16xbf16>
    %154 = vector.shape_cast %153 : vector<1x2x16xbf16> to vector<2x16xbf16>
    %155 = vector.shape_cast %151 : vector<2x16xbf16> to vector<1x2x16xbf16>
    tpu.vector_store %arg4[%152, %c0_42, %c0_43], %155 {strides = array<i32>} : memref<8x2x16xbf16, #tpu.memory_space<vmem>>, vector<1x2x16xbf16>,
    %156 = arith.truncf %150 : vector<2x16xf32> to vector<2x16xbf16>
    %157 = arith.index_cast %86 : i32 to index
    %c0_44 = arith.constant 0 : index
    %c0_45 = arith.constant 0 : index
    %158 = vector.load %arg5[%157, %c0_44, %c0_45] : memref<8x2x16xbf16, #tpu.memory_space<vmem>>, vector<1x2x16xbf16>
    %159 = vector.shape_cast %158 : vector<1x2x16xbf16> to vector<2x16xbf16>
    %160 = vector.shape_cast %156 : vector<2x16xbf16> to vector<1x2x16xbf16>
    tpu.vector_store %arg5[%157, %c0_44, %c0_45], %160 {strides = array<i32>} : memref<8x2x16xbf16, #tpu.memory_space<vmem>>, vector<1x2x16xbf16>,
    %c2_i32 = arith.constant 2 : i32
    %c7_i32_46 = arith.constant 7 : i32
    %161 = arith.subi %c7_i32_46, %c2_i32 : i32
    %162 = arith.index_cast %c2_i32 : i32 to index
    %c0_47 = arith.constant 0 : index
    %c0_48 = arith.constant 0 : index
    %163 = vector.load %arg1[%162, %c0_47, %c0_48] : memref<8x2x64xbf16, #tpu.memory_space<vmem>>, vector<1x2x64xbf16>
    %164 = vector.shape_cast %163 : vector<1x2x64xbf16> to vector<2x64xbf16>
    %165 = arith.extf %164 : vector<2x64xbf16> to vector<2x64xf32>
    %166 = arith.truncf %125 : vector<2x16xf32> to vector<2x16xbf16>
    %cst_49 = arith.constant dense<0.000000e+00> : vector<2x64xf32>
    %167 = tpu.matmul %166, %4, %cst_49 {dimension_numbers = #tpu.dot_dimension_numbers<[1], [0], [0], [1], [0, 0, 1, 1], [], []>} : vector<2x16xbf16>, vector<16x64xbf16>, vector<2x64xf32> -> vector<2x64xf32>
    %168 = arith.addf %165, %167 : vector<2x64xf32>
    %169 = arith.index_cast %161 : i32 to index
    %c0_50 = arith.constant 0 : index
    %c0_51 = arith.constant 0 : index
    %170 = vector.load %arg2[%169, %c0_50, %c0_51] : memref<8x2x64xbf16, #tpu.memory_space<vmem>>, vector<1x2x64xbf16>
    %171 = vector.shape_cast %170 : vector<1x2x64xbf16> to vector<2x64xbf16>
    %172 = arith.extf %171 : vector<2x64xbf16> to vector<2x64xf32>
    %173 = arith.truncf %150 : vector<2x16xf32> to vector<2x16xbf16>
    %cst_52 = arith.constant dense<0.000000e+00> : vector<2x64xf32>
    %174 = tpu.matmul %173, %6, %cst_52 {dimension_numbers = #tpu.dot_dimension_numbers<[1], [0], [0], [1], [0, 0, 1, 1], [], []>} : vector<2x16xbf16>, vector<16x64xbf16>, vector<2x64xf32> -> vector<2x64xf32>
    %175 = arith.addf %172, %174 : vector<2x64xf32>
    %176 = vector.extract_strided_slice %168 {offsets = [0, 0], sizes = [2, 16], strides = [1, 1]} : vector<2x64xf32> to vector<2x16xf32>
    %177 = arith.negf %176 : vector<2x16xf32>
    %178 = math.exp %177 : vector<2x16xf32>
    %cst_53 = arith.constant 1.000000e+00 : f32
    %179 = vector.broadcast %cst_53 : f32 to vector<2x16xf32>
    %180 = arith.addf %179, %178 : vector<2x16xf32>
    %181 = arith.divf %179, %180 : vector<2x16xf32>
    %182 = vector.extract_strided_slice %168 {offsets = [0, 16], sizes = [2, 16], strides = [1, 1]} : vector<2x64xf32> to vector<2x16xf32>
    %183 = arith.negf %182 : vector<2x16xf32>
    %184 = math.exp %183 : vector<2x16xf32>
    %cst_54 = arith.constant 1.000000e+00 : f32
    %185 = vector.broadcast %cst_54 : f32 to vector<2x16xf32>
    %186 = arith.addf %185, %184 : vector<2x16xf32>
    %187 = arith.divf %185, %186 : vector<2x16xf32>
    %188 = vector.extract_strided_slice %168 {offsets = [0, 32], sizes = [2, 16], strides = [1, 1]} : vector<2x64xf32> to vector<2x16xf32>
    %189 = math.tanh %188 : vector<2x16xf32>
    %190 = vector.extract_strided_slice %168 {offsets = [0, 48], sizes = [2, 16], strides = [1, 1]} : vector<2x64xf32> to vector<2x16xf32>
    %191 = arith.negf %190 : vector<2x16xf32>
    %192 = math.exp %191 : vector<2x16xf32>
    %cst_55 = arith.constant 1.000000e+00 : f32
    %193 = vector.broadcast %cst_55 : f32 to vector<2x16xf32>
    %194 = arith.addf %193, %192 : vector<2x16xf32>
    %195 = arith.divf %193, %194 : vector<2x16xf32>
    %196 = arith.mulf %187, %123 : vector<2x16xf32>
    %197 = arith.mulf %181, %189 : vector<2x16xf32>
    %198 = arith.addf %196, %197 : vector<2x16xf32>
    %199 = math.tanh %198 : vector<2x16xf32>
    %200 = arith.mulf %195, %199 : vector<2x16xf32>
    %201 = vector.extract_strided_slice %175 {offsets = [0, 0], sizes = [2, 16], strides = [1, 1]} : vector<2x64xf32> to vector<2x16xf32>
    %202 = arith.negf %201 : vector<2x16xf32>
    %203 = math.exp %202 : vector<2x16xf32>
    %cst_56 = arith.constant 1.000000e+00 : f32
    %204 = vector.broadcast %cst_56 : f32 to vector<2x16xf32>
    %205 = arith.addf %204, %203 : vector<2x16xf32>
    %206 = arith.divf %204, %205 : vector<2x16xf32>
    %207 = vector.extract_strided_slice %175 {offsets = [0, 16], sizes = [2, 16], strides = [1, 1]} : vector<2x64xf32> to vector<2x16xf32>
    %208 = arith.negf %207 : vector<2x16xf32>
    %209 = math.exp %208 : vector<2x16xf32>
    %cst_57 = arith.constant 1.000000e+00 : f32
    %210 = vector.broadcast %cst_57 : f32 to vector<2x16xf32>
    %211 = arith.addf %210, %209 : vector<2x16xf32>
    %212 = arith.divf %210, %211 : vector<2x16xf32>
    %213 = vector.extract_strided_slice %175 {offsets = [0, 32], sizes = [2, 16], strides = [1, 1]} : vector<2x64xf32> to vector<2x16xf32>
    %214 = math.tanh %213 : vector<2x16xf32>
    %215 = vector.extract_strided_slice %175 {offsets = [0, 48], sizes = [2, 16], strides = [1, 1]} : vector<2x64xf32> to vector<2x16xf32>
    %216 = arith.negf %215 : vector<2x16xf32>
    %217 = math.exp %216 : vector<2x16xf32>
    %cst_58 = arith.constant 1.000000e+00 : f32
    %218 = vector.broadcast %cst_58 : f32 to vector<2x16xf32>
    %219 = arith.addf %218, %217 : vector<2x16xf32>
    %220 = arith.divf %218, %219 : vector<2x16xf32>
    %221 = arith.mulf %212, %148 : vector<2x16xf32>
    %222 = arith.mulf %206, %214 : vector<2x16xf32>
    %223 = arith.addf %221, %222 : vector<2x16xf32>
    %224 = math.tanh %223 : vector<2x16xf32>
    %225 = arith.mulf %220, %224 : vector<2x16xf32>
    %226 = arith.truncf %200 : vector<2x16xf32> to vector<2x16xbf16>
    %227 = arith.index_cast %c2_i32 : i32 to index
    %c0_59 = arith.constant 0 : index
    %c0_60 = arith.constant 0 : index
    %228 = vector.load %arg4[%227, %c0_59, %c0_60] : memref<8x2x16xbf16, #tpu.memory_space<vmem>>, vector<1x2x16xbf16>
    %229 = vector.shape_cast %228 : vector<1x2x16xbf16> to vector<2x16xbf16>
    %230 = vector.shape_cast %226 : vector<2x16xbf16> to vector<1x2x16xbf16>
    tpu.vector_store %arg4[%227, %c0_59, %c0_60], %230 {strides = array<i32>} : memref<8x2x16xbf16, #tpu.memory_space<vmem>>, vector<1x2x16xbf16>,
    %231 = arith.truncf %225 : vector<2x16xf32> to vector<2x16xbf16>
    %232 = arith.index_cast %161 : i32 to index
    %c0_61 = arith.constant 0 : index
    %c0_62 = arith.constant 0 : index
    %233 = vector.load %arg5[%232, %c0_61, %c0_62] : memref<8x2x16xbf16, #tpu.memory_space<vmem>>, vector<1x2x16xbf16>
    %234 = vector.shape_cast %233 : vector<1x2x16xbf16> to vector<2x16xbf16>
    %235 = vector.shape_cast %231 : vector<2x16xbf16> to vector<1x2x16xbf16>
    tpu.vector_store %arg5[%232, %c0_61, %c0_62], %235 {strides = array<i32>} : memref<8x2x16xbf16, #tpu.memory_space<vmem>>, vector<1x2x16xbf16>,
    %c3_i32 = arith.constant 3 : i32
    %c7_i32_63 = arith.constant 7 : i32
    %236 = arith.subi %c7_i32_63, %c3_i32 : i32
    %237 = arith.index_cast %c3_i32 : i32 to index
    %c0_64 = arith.constant 0 : index
    %c0_65 = arith.constant 0 : index
    %238 = vector.load %arg1[%237, %c0_64, %c0_65] : memref<8x2x64xbf16, #tpu.memory_space<vmem>>, vector<1x2x64xbf16>
    %239 = vector.shape_cast %238 : vector<1x2x64xbf16> to vector<2x64xbf16>
    %240 = arith.extf %239 : vector<2x64xbf16> to vector<2x64xf32>
    %241 = arith.truncf %200 : vector<2x16xf32> to vector<2x16xbf16>
    %cst_66 = arith.constant dense<0.000000e+00> : vector<2x64xf32>
    %242 = tpu.matmul %241, %4, %cst_66 {dimension_numbers = #tpu.dot_dimension_numbers<[1], [0], [0], [1], [0, 0, 1, 1], [], []>} : vector<2x16xbf16>, vector<16x64xbf16>, vector<2x64xf32> -> vector<2x64xf32>
    %243 = arith.addf %240, %242 : vector<2x64xf32>
    %244 = arith.index_cast %236 : i32 to index
    %c0_67 = arith.constant 0 : index
    %c0_68 = arith.constant 0 : index
    %245 = vector.load %arg2[%244, %c0_67, %c0_68] : memref<8x2x64xbf16, #tpu.memory_space<vmem>>, vector<1x2x64xbf16>
    %246 = vector.shape_cast %245 : vector<1x2x64xbf16> to vector<2x64xbf16>
    %247 = arith.extf %246 : vector<2x64xbf16> to vector<2x64xf32>
    %248 = arith.truncf %225 : vector<2x16xf32> to vector<2x16xbf16>
    %cst_69 = arith.constant dense<0.000000e+00> : vector<2x64xf32>
    %249 = tpu.matmul %248, %6, %cst_69 {dimension_numbers = #tpu.dot_dimension_numbers<[1], [0], [0], [1], [0, 0, 1, 1], [], []>} : vector<2x16xbf16>, vector<16x64xbf16>, vector<2x64xf32> -> vector<2x64xf32>
    %250 = arith.addf %247, %249 : vector<2x64xf32>
    %251 = vector.extract_strided_slice %243 {offsets = [0, 0], sizes = [2, 16], strides = [1, 1]} : vector<2x64xf32> to vector<2x16xf32>
    %252 = arith.negf %251 : vector<2x16xf32>
    %253 = math.exp %252 : vector<2x16xf32>
    %cst_70 = arith.constant 1.000000e+00 : f32
    %254 = vector.broadcast %cst_70 : f32 to vector<2x16xf32>
    %255 = arith.addf %254, %253 : vector<2x16xf32>
    %256 = arith.divf %254, %255 : vector<2x16xf32>
    %257 = vector.extract_strided_slice %243 {offsets = [0, 16], sizes = [2, 16], strides = [1, 1]} : vector<2x64xf32> to vector<2x16xf32>
    %258 = arith.negf %257 : vector<2x16xf32>
    %259 = math.exp %258 : vector<2x16xf32>
    %cst_71 = arith.constant 1.000000e+00 : f32
    %260 = vector.broadcast %cst_71 : f32 to vector<2x16xf32>
    %261 = arith.addf %260, %259 : vector<2x16xf32>
    %262 = arith.divf %260, %261 : vector<2x16xf32>
    %263 = vector.extract_strided_slice %243 {offsets = [0, 32], sizes = [2, 16], strides = [1, 1]} : vector<2x64xf32> to vector<2x16xf32>
    %264 = math.tanh %263 : vector<2x16xf32>
    %265 = vector.extract_strided_slice %243 {offsets = [0, 48], sizes = [2, 16], strides = [1, 1]} : vector<2x64xf32> to vector<2x16xf32>
    %266 = arith.negf %265 : vector<2x16xf32>
    %267 = math.exp %266 : vector<2x16xf32>
    %cst_72 = arith.constant 1.000000e+00 : f32
    %268 = vector.broadcast %cst_72 : f32 to vector<2x16xf32>
    %269 = arith.addf %268, %267 : vector<2x16xf32>
    %270 = arith.divf %268, %269 : vector<2x16xf32>
    %271 = arith.mulf %262, %198 : vector<2x16xf32>
    %272 = arith.mulf %256, %264 : vector<2x16xf32>
    %273 = arith.addf %271, %272 : vector<2x16xf32>
    %274 = math.tanh %273 : vector<2x16xf32>
    %275 = arith.mulf %270, %274 : vector<2x16xf32>
    %276 = vector.extract_strided_slice %250 {offsets = [0, 0], sizes = [2, 16], strides = [1, 1]} : vector<2x64xf32> to vector<2x16xf32>
    %277 = arith.negf %276 : vector<2x16xf32>
    %278 = math.exp %277 : vector<2x16xf32>
    %cst_73 = arith.constant 1.000000e+00 : f32
    %279 = vector.broadcast %cst_73 : f32 to vector<2x16xf32>
    %280 = arith.addf %279, %278 : vector<2x16xf32>
    %281 = arith.divf %279, %280 : vector<2x16xf32>
    %282 = vector.extract_strided_slice %250 {offsets = [0, 16], sizes = [2, 16], strides = [1, 1]} : vector<2x64xf32> to vector<2x16xf32>
    %283 = arith.negf %282 : vector<2x16xf32>
    %284 = math.exp %283 : vector<2x16xf32>
    %cst_74 = arith.constant 1.000000e+00 : f32
    %285 = vector.broadcast %cst_74 : f32 to vector<2x16xf32>
    %286 = arith.addf %285, %284 : vector<2x16xf32>
    %287 = arith.divf %285, %286 : vector<2x16xf32>
    %288 = vector.extract_strided_slice %250 {offsets = [0, 32], sizes = [2, 16], strides = [1, 1]} : vector<2x64xf32> to vector<2x16xf32>
    %289 = math.tanh %288 : vector<2x16xf32>
    %290 = vector.extract_strided_slice %250 {offsets = [0, 48], sizes = [2, 16], strides = [1, 1]} : vector<2x64xf32> to vector<2x16xf32>
    %291 = arith.negf %290 : vector<2x16xf32>
    %292 = math.exp %291 : vector<2x16xf32>
    %cst_75 = arith.constant 1.000000e+00 : f32
    %293 = vector.broadcast %cst_75 : f32 to vector<2x16xf32>
    %294 = arith.addf %293, %292 : vector<2x16xf32>
    %295 = arith.divf %293, %294 : vector<2x16xf32>
    %296 = arith.mulf %287, %223 : vector<2x16xf32>
    %297 = arith.mulf %281, %289 : vector<2x16xf32>
    %298 = arith.addf %296, %297 : vector<2x16xf32>
    %299 = math.tanh %298 : vector<2x16xf32>
    %300 = arith.mulf %295, %299 : vector<2x16xf32>
    %301 = arith.truncf %275 : vector<2x16xf32> to vector<2x16xbf16>
    %302 = arith.index_cast %c3_i32 : i32 to index
    %c0_76 = arith.constant 0 : index
    %c0_77 = arith.constant 0 : index
    %303 = vector.load %arg4[%302, %c0_76, %c0_77] : memref<8x2x16xbf16, #tpu.memory_space<vmem>>, vector<1x2x16xbf16>
    %304 = vector.shape_cast %303 : vector<1x2x16xbf16> to vector<2x16xbf16>
    %305 = vector.shape_cast %301 : vector<2x16xbf16> to vector<1x2x16xbf16>
    tpu.vector_store %arg4[%302, %c0_76, %c0_77], %305 {strides = array<i32>} : memref<8x2x16xbf16, #tpu.memory_space<vmem>>, vector<1x2x16xbf16>,
    %306 = arith.truncf %300 : vector<2x16xf32> to vector<2x16xbf16>
    %307 = arith.index_cast %236 : i32 to index
    %c0_78 = arith.constant 0 : index
    %c0_79 = arith.constant 0 : index
    %308 = vector.load %arg5[%307, %c0_78, %c0_79] : memref<8x2x16xbf16, #tpu.memory_space<vmem>>, vector<1x2x16xbf16>
    %309 = vector.shape_cast %308 : vector<1x2x16xbf16> to vector<2x16xbf16>
    %310 = vector.shape_cast %306 : vector<2x16xbf16> to vector<1x2x16xbf16>
    tpu.vector_store %arg5[%307, %c0_78, %c0_79], %310 {strides = array<i32>} : memref<8x2x16xbf16, #tpu.memory_space<vmem>>, vector<1x2x16xbf16>,
    %c4_i32 = arith.constant 4 : i32
    %c7_i32_80 = arith.constant 7 : i32
    %311 = arith.subi %c7_i32_80, %c4_i32 : i32
    %312 = arith.index_cast %c4_i32 : i32 to index
    %c0_81 = arith.constant 0 : index
    %c0_82 = arith.constant 0 : index
    %313 = vector.load %arg1[%312, %c0_81, %c0_82] : memref<8x2x64xbf16, #tpu.memory_space<vmem>>, vector<1x2x64xbf16>
    %314 = vector.shape_cast %313 : vector<1x2x64xbf16> to vector<2x64xbf16>
    %315 = arith.extf %314 : vector<2x64xbf16> to vector<2x64xf32>
    %316 = arith.truncf %275 : vector<2x16xf32> to vector<2x16xbf16>
    %cst_83 = arith.constant dense<0.000000e+00> : vector<2x64xf32>
    %317 = tpu.matmul %316, %4, %cst_83 {dimension_numbers = #tpu.dot_dimension_numbers<[1], [0], [0], [1], [0, 0, 1, 1], [], []>} : vector<2x16xbf16>, vector<16x64xbf16>, vector<2x64xf32> -> vector<2x64xf32>
    %318 = arith.addf %315, %317 : vector<2x64xf32>
    %319 = arith.index_cast %311 : i32 to index
    %c0_84 = arith.constant 0 : index
    %c0_85 = arith.constant 0 : index
    %320 = vector.load %arg2[%319, %c0_84, %c0_85] : memref<8x2x64xbf16, #tpu.memory_space<vmem>>, vector<1x2x64xbf16>
    %321 = vector.shape_cast %320 : vector<1x2x64xbf16> to vector<2x64xbf16>
    %322 = arith.extf %321 : vector<2x64xbf16> to vector<2x64xf32>
    %323 = arith.truncf %300 : vector<2x16xf32> to vector<2x16xbf16>
    %cst_86 = arith.constant dense<0.000000e+00> : vector<2x64xf32>
    %324 = tpu.matmul %323, %6, %cst_86 {dimension_numbers = #tpu.dot_dimension_numbers<[1], [0], [0], [1], [0, 0, 1, 1], [], []>} : vector<2x16xbf16>, vector<16x64xbf16>, vector<2x64xf32> -> vector<2x64xf32>
    %325 = arith.addf %322, %324 : vector<2x64xf32>
    %326 = vector.extract_strided_slice %318 {offsets = [0, 0], sizes = [2, 16], strides = [1, 1]} : vector<2x64xf32> to vector<2x16xf32>
    %327 = arith.negf %326 : vector<2x16xf32>
    %328 = math.exp %327 : vector<2x16xf32>
    %cst_87 = arith.constant 1.000000e+00 : f32
    %329 = vector.broadcast %cst_87 : f32 to vector<2x16xf32>
    %330 = arith.addf %329, %328 : vector<2x16xf32>
    %331 = arith.divf %329, %330 : vector<2x16xf32>
    %332 = vector.extract_strided_slice %318 {offsets = [0, 16], sizes = [2, 16], strides = [1, 1]} : vector<2x64xf32> to vector<2x16xf32>
    %333 = arith.negf %332 : vector<2x16xf32>
    %334 = math.exp %333 : vector<2x16xf32>
    %cst_88 = arith.constant 1.000000e+00 : f32
    %335 = vector.broadcast %cst_88 : f32 to vector<2x16xf32>
    %336 = arith.addf %335, %334 : vector<2x16xf32>
    %337 = arith.divf %335, %336 : vector<2x16xf32>
    %338 = vector.extract_strided_slice %318 {offsets = [0, 32], sizes = [2, 16], strides = [1, 1]} : vector<2x64xf32> to vector<2x16xf32>
    %339 = math.tanh %338 : vector<2x16xf32>
    %340 = vector.extract_strided_slice %318 {offsets = [0, 48], sizes = [2, 16], strides = [1, 1]} : vector<2x64xf32> to vector<2x16xf32>
    %341 = arith.negf %340 : vector<2x16xf32>
    %342 = math.exp %341 : vector<2x16xf32>
    %cst_89 = arith.constant 1.000000e+00 : f32
    %343 = vector.broadcast %cst_89 : f32 to vector<2x16xf32>
    %344 = arith.addf %343, %342 : vector<2x16xf32>
    %345 = arith.divf %343, %344 : vector<2x16xf32>
    %346 = arith.mulf %337, %273 : vector<2x16xf32>
    %347 = arith.mulf %331, %339 : vector<2x16xf32>
    %348 = arith.addf %346, %347 : vector<2x16xf32>
    %349 = math.tanh %348 : vector<2x16xf32>
    %350 = arith.mulf %345, %349 : vector<2x16xf32>
    %351 = vector.extract_strided_slice %325 {offsets = [0, 0], sizes = [2, 16], strides = [1, 1]} : vector<2x64xf32> to vector<2x16xf32>
    %352 = arith.negf %351 : vector<2x16xf32>
    %353 = math.exp %352 : vector<2x16xf32>
    %cst_90 = arith.constant 1.000000e+00 : f32
    %354 = vector.broadcast %cst_90 : f32 to vector<2x16xf32>
    %355 = arith.addf %354, %353 : vector<2x16xf32>
    %356 = arith.divf %354, %355 : vector<2x16xf32>
    %357 = vector.extract_strided_slice %325 {offsets = [0, 16], sizes = [2, 16], strides = [1, 1]} : vector<2x64xf32> to vector<2x16xf32>
    %358 = arith.negf %357 : vector<2x16xf32>
    %359 = math.exp %358 : vector<2x16xf32>
    %cst_91 = arith.constant 1.000000e+00 : f32
    %360 = vector.broadcast %cst_91 : f32 to vector<2x16xf32>
    %361 = arith.addf %360, %359 : vector<2x16xf32>
    %362 = arith.divf %360, %361 : vector<2x16xf32>
    %363 = vector.extract_strided_slice %325 {offsets = [0, 32], sizes = [2, 16], strides = [1, 1]} : vector<2x64xf32> to vector<2x16xf32>
    %364 = math.tanh %363 : vector<2x16xf32>
    %365 = vector.extract_strided_slice %325 {offsets = [0, 48], sizes = [2, 16], strides = [1, 1]} : vector<2x64xf32> to vector<2x16xf32>
    %366 = arith.negf %365 : vector<2x16xf32>
    %367 = math.exp %366 : vector<2x16xf32>
    %cst_92 = arith.constant 1.000000e+00 : f32
    %368 = vector.broadcast %cst_92 : f32 to vector<2x16xf32>
    %369 = arith.addf %368, %367 : vector<2x16xf32>
    %370 = arith.divf %368, %369 : vector<2x16xf32>
    %371 = arith.mulf %362, %298 : vector<2x16xf32>
    %372 = arith.mulf %356, %364 : vector<2x16xf32>
    %373 = arith.addf %371, %372 : vector<2x16xf32>
    %374 = math.tanh %373 : vector<2x16xf32>
    %375 = arith.mulf %370, %374 : vector<2x16xf32>
    %376 = arith.truncf %350 : vector<2x16xf32> to vector<2x16xbf16>
    %377 = arith.index_cast %c4_i32 : i32 to index
    %c0_93 = arith.constant 0 : index
    %c0_94 = arith.constant 0 : index
    %378 = vector.load %arg4[%377, %c0_93, %c0_94] : memref<8x2x16xbf16, #tpu.memory_space<vmem>>, vector<1x2x16xbf16>
    %379 = vector.shape_cast %378 : vector<1x2x16xbf16> to vector<2x16xbf16>
    %380 = vector.shape_cast %376 : vector<2x16xbf16> to vector<1x2x16xbf16>
    tpu.vector_store %arg4[%377, %c0_93, %c0_94], %380 {strides = array<i32>} : memref<8x2x16xbf16, #tpu.memory_space<vmem>>, vector<1x2x16xbf16>,
    %381 = arith.truncf %375 : vector<2x16xf32> to vector<2x16xbf16>
    %382 = arith.index_cast %311 : i32 to index
    %c0_95 = arith.constant 0 : index
    %c0_96 = arith.constant 0 : index
    %383 = vector.load %arg5[%382, %c0_95, %c0_96] : memref<8x2x16xbf16, #tpu.memory_space<vmem>>, vector<1x2x16xbf16>
    %384 = vector.shape_cast %383 : vector<1x2x16xbf16> to vector<2x16xbf16>
    %385 = vector.shape_cast %381 : vector<2x16xbf16> to vector<1x2x16xbf16>
    tpu.vector_store %arg5[%382, %c0_95, %c0_96], %385 {strides = array<i32>} : memref<8x2x16xbf16, #tpu.memory_space<vmem>>, vector<1x2x16xbf16>,
    %c5_i32 = arith.constant 5 : i32
    %c7_i32_97 = arith.constant 7 : i32
    %386 = arith.subi %c7_i32_97, %c5_i32 : i32
    %387 = arith.index_cast %c5_i32 : i32 to index
    %c0_98 = arith.constant 0 : index
    %c0_99 = arith.constant 0 : index
    %388 = vector.load %arg1[%387, %c0_98, %c0_99] : memref<8x2x64xbf16, #tpu.memory_space<vmem>>, vector<1x2x64xbf16>
    %389 = vector.shape_cast %388 : vector<1x2x64xbf16> to vector<2x64xbf16>
    %390 = arith.extf %389 : vector<2x64xbf16> to vector<2x64xf32>
    %391 = arith.truncf %350 : vector<2x16xf32> to vector<2x16xbf16>
    %cst_100 = arith.constant dense<0.000000e+00> : vector<2x64xf32>
    %392 = tpu.matmul %391, %4, %cst_100 {dimension_numbers = #tpu.dot_dimension_numbers<[1], [0], [0], [1], [0, 0, 1, 1], [], []>} : vector<2x16xbf16>, vector<16x64xbf16>, vector<2x64xf32> -> vector<2x64xf32>
    %393 = arith.addf %390, %392 : vector<2x64xf32>
    %394 = arith.index_cast %386 : i32 to index
    %c0_101 = arith.constant 0 : index
    %c0_102 = arith.constant 0 : index
    %395 = vector.load %arg2[%394, %c0_101, %c0_102] : memref<8x2x64xbf16, #tpu.memory_space<vmem>>, vector<1x2x64xbf16>
    %396 = vector.shape_cast %395 : vector<1x2x64xbf16> to vector<2x64xbf16>
    %397 = arith.extf %396 : vector<2x64xbf16> to vector<2x64xf32>
    %398 = arith.truncf %375 : vector<2x16xf32> to vector<2x16xbf16>
    %cst_103 = arith.constant dense<0.000000e+00> : vector<2x64xf32>
    %399 = tpu.matmul %398, %6, %cst_103 {dimension_numbers = #tpu.dot_dimension_numbers<[1], [0], [0], [1], [0, 0, 1, 1], [], []>} : vector<2x16xbf16>, vector<16x64xbf16>, vector<2x64xf32> -> vector<2x64xf32>
    %400 = arith.addf %397, %399 : vector<2x64xf32>
    %401 = vector.extract_strided_slice %393 {offsets = [0, 0], sizes = [2, 16], strides = [1, 1]} : vector<2x64xf32> to vector<2x16xf32>
    %402 = arith.negf %401 : vector<2x16xf32>
    %403 = math.exp %402 : vector<2x16xf32>
    %cst_104 = arith.constant 1.000000e+00 : f32
    %404 = vector.broadcast %cst_104 : f32 to vector<2x16xf32>
    %405 = arith.addf %404, %403 : vector<2x16xf32>
    %406 = arith.divf %404, %405 : vector<2x16xf32>
    %407 = vector.extract_strided_slice %393 {offsets = [0, 16], sizes = [2, 16], strides = [1, 1]} : vector<2x64xf32> to vector<2x16xf32>
    %408 = arith.negf %407 : vector<2x16xf32>
    %409 = math.exp %408 : vector<2x16xf32>
    %cst_105 = arith.constant 1.000000e+00 : f32
    %410 = vector.broadcast %cst_105 : f32 to vector<2x16xf32>
    %411 = arith.addf %410, %409 : vector<2x16xf32>
    %412 = arith.divf %410, %411 : vector<2x16xf32>
    %413 = vector.extract_strided_slice %393 {offsets = [0, 32], sizes = [2, 16], strides = [1, 1]} : vector<2x64xf32> to vector<2x16xf32>
    %414 = math.tanh %413 : vector<2x16xf32>
    %415 = vector.extract_strided_slice %393 {offsets = [0, 48], sizes = [2, 16], strides = [1, 1]} : vector<2x64xf32> to vector<2x16xf32>
    %416 = arith.negf %415 : vector<2x16xf32>
    %417 = math.exp %416 : vector<2x16xf32>
    %cst_106 = arith.constant 1.000000e+00 : f32
    %418 = vector.broadcast %cst_106 : f32 to vector<2x16xf32>
    %419 = arith.addf %418, %417 : vector<2x16xf32>
    %420 = arith.divf %418, %419 : vector<2x16xf32>
    %421 = arith.mulf %412, %348 : vector<2x16xf32>
    %422 = arith.mulf %406, %414 : vector<2x16xf32>
    %423 = arith.addf %421, %422 : vector<2x16xf32>
    %424 = math.tanh %423 : vector<2x16xf32>
    %425 = arith.mulf %420, %424 : vector<2x16xf32>
    %426 = vector.extract_strided_slice %400 {offsets = [0, 0], sizes = [2, 16], strides = [1, 1]} : vector<2x64xf32> to vector<2x16xf32>
    %427 = arith.negf %426 : vector<2x16xf32>
    %428 = math.exp %427 : vector<2x16xf32>
    %cst_107 = arith.constant 1.000000e+00 : f32
    %429 = vector.broadcast %cst_107 : f32 to vector<2x16xf32>
    %430 = arith.addf %429, %428 : vector<2x16xf32>
    %431 = arith.divf %429, %430 : vector<2x16xf32>
    %432 = vector.extract_strided_slice %400 {offsets = [0, 16], sizes = [2, 16], strides = [1, 1]} : vector<2x64xf32> to vector<2x16xf32>
    %433 = arith.negf %432 : vector<2x16xf32>
    %434 = math.exp %433 : vector<2x16xf32>
    %cst_108 = arith.constant 1.000000e+00 : f32
    %435 = vector.broadcast %cst_108 : f32 to vector<2x16xf32>
    %436 = arith.addf %435, %434 : vector<2x16xf32>
    %437 = arith.divf %435, %436 : vector<2x16xf32>
    %438 = vector.extract_strided_slice %400 {offsets = [0, 32], sizes = [2, 16], strides = [1, 1]} : vector<2x64xf32> to vector<2x16xf32>
    %439 = math.tanh %438 : vector<2x16xf32>
    %440 = vector.extract_strided_slice %400 {offsets = [0, 48], sizes = [2, 16], strides = [1, 1]} : vector<2x64xf32> to vector<2x16xf32>
    %441 = arith.negf %440 : vector<2x16xf32>
    %442 = math.exp %441 : vector<2x16xf32>
    %cst_109 = arith.constant 1.000000e+00 : f32
    %443 = vector.broadcast %cst_109 : f32 to vector<2x16xf32>
    %444 = arith.addf %443, %442 : vector<2x16xf32>
    %445 = arith.divf %443, %444 : vector<2x16xf32>
    %446 = arith.mulf %437, %373 : vector<2x16xf32>
    %447 = arith.mulf %431, %439 : vector<2x16xf32>
    %448 = arith.addf %446, %447 : vector<2x16xf32>
    %449 = math.tanh %448 : vector<2x16xf32>
    %450 = arith.mulf %445, %449 : vector<2x16xf32>
    %451 = arith.truncf %425 : vector<2x16xf32> to vector<2x16xbf16>
    %452 = arith.index_cast %c5_i32 : i32 to index
    %c0_110 = arith.constant 0 : index
    %c0_111 = arith.constant 0 : index
    %453 = vector.load %arg4[%452, %c0_110, %c0_111] : memref<8x2x16xbf16, #tpu.memory_space<vmem>>, vector<1x2x16xbf16>
    %454 = vector.shape_cast %453 : vector<1x2x16xbf16> to vector<2x16xbf16>
    %455 = vector.shape_cast %451 : vector<2x16xbf16> to vector<1x2x16xbf16>
    tpu.vector_store %arg4[%452, %c0_110, %c0_111], %455 {strides = array<i32>} : memref<8x2x16xbf16, #tpu.memory_space<vmem>>, vector<1x2x16xbf16>,
    %456 = arith.truncf %450 : vector<2x16xf32> to vector<2x16xbf16>
    %457 = arith.index_cast %386 : i32 to index
    %c0_112 = arith.constant 0 : index
    %c0_113 = arith.constant 0 : index
    %458 = vector.load %arg5[%457, %c0_112, %c0_113] : memref<8x2x16xbf16, #tpu.memory_space<vmem>>, vector<1x2x16xbf16>
    %459 = vector.shape_cast %458 : vector<1x2x16xbf16> to vector<2x16xbf16>
    %460 = vector.shape_cast %456 : vector<2x16xbf16> to vector<1x2x16xbf16>
    tpu.vector_store %arg5[%457, %c0_112, %c0_113], %460 {strides = array<i32>} : memref<8x2x16xbf16, #tpu.memory_space<vmem>>, vector<1x2x16xbf16>,
    %c6_i32 = arith.constant 6 : i32
    %c7_i32_114 = arith.constant 7 : i32
    %461 = arith.subi %c7_i32_114, %c6_i32 : i32
    %462 = arith.index_cast %c6_i32 : i32 to index
    %c0_115 = arith.constant 0 : index
    %c0_116 = arith.constant 0 : index
    %463 = vector.load %arg1[%462, %c0_115, %c0_116] : memref<8x2x64xbf16, #tpu.memory_space<vmem>>, vector<1x2x64xbf16>
    %464 = vector.shape_cast %463 : vector<1x2x64xbf16> to vector<2x64xbf16>
    %465 = arith.extf %464 : vector<2x64xbf16> to vector<2x64xf32>
    %466 = arith.truncf %425 : vector<2x16xf32> to vector<2x16xbf16>
    %cst_117 = arith.constant dense<0.000000e+00> : vector<2x64xf32>
    %467 = tpu.matmul %466, %4, %cst_117 {dimension_numbers = #tpu.dot_dimension_numbers<[1], [0], [0], [1], [0, 0, 1, 1], [], []>} : vector<2x16xbf16>, vector<16x64xbf16>, vector<2x64xf32> -> vector<2x64xf32>
    %468 = arith.addf %465, %467 : vector<2x64xf32>
    %469 = arith.index_cast %461 : i32 to index
    %c0_118 = arith.constant 0 : index
    %c0_119 = arith.constant 0 : index
    %470 = vector.load %arg2[%469, %c0_118, %c0_119] : memref<8x2x64xbf16, #tpu.memory_space<vmem>>, vector<1x2x64xbf16>
    %471 = vector.shape_cast %470 : vector<1x2x64xbf16> to vector<2x64xbf16>
    %472 = arith.extf %471 : vector<2x64xbf16> to vector<2x64xf32>
    %473 = arith.truncf %450 : vector<2x16xf32> to vector<2x16xbf16>
    %cst_120 = arith.constant dense<0.000000e+00> : vector<2x64xf32>
    %474 = tpu.matmul %473, %6, %cst_120 {dimension_numbers = #tpu.dot_dimension_numbers<[1], [0], [0], [1], [0, 0, 1, 1], [], []>} : vector<2x16xbf16>, vector<16x64xbf16>, vector<2x64xf32> -> vector<2x64xf32>
    %475 = arith.addf %472, %474 : vector<2x64xf32>
    %476 = vector.extract_strided_slice %468 {offsets = [0, 0], sizes = [2, 16], strides = [1, 1]} : vector<2x64xf32> to vector<2x16xf32>
    %477 = arith.negf %476 : vector<2x16xf32>
    %478 = math.exp %477 : vector<2x16xf32>
    %cst_121 = arith.constant 1.000000e+00 : f32
    %479 = vector.broadcast %cst_121 : f32 to vector<2x16xf32>
    %480 = arith.addf %479, %478 : vector<2x16xf32>
    %481 = arith.divf %479, %480 : vector<2x16xf32>
    %482 = vector.extract_strided_slice %468 {offsets = [0, 16], sizes = [2, 16], strides = [1, 1]} : vector<2x64xf32> to vector<2x16xf32>
    %483 = arith.negf %482 : vector<2x16xf32>
    %484 = math.exp %483 : vector<2x16xf32>
    %cst_122 = arith.constant 1.000000e+00 : f32
    %485 = vector.broadcast %cst_122 : f32 to vector<2x16xf32>
    %486 = arith.addf %485, %484 : vector<2x16xf32>
    %487 = arith.divf %485, %486 : vector<2x16xf32>
    %488 = vector.extract_strided_slice %468 {offsets = [0, 32], sizes = [2, 16], strides = [1, 1]} : vector<2x64xf32> to vector<2x16xf32>
    %489 = math.tanh %488 : vector<2x16xf32>
    %490 = vector.extract_strided_slice %468 {offsets = [0, 48], sizes = [2, 16], strides = [1, 1]} : vector<2x64xf32> to vector<2x16xf32>
    %491 = arith.negf %490 : vector<2x16xf32>
    %492 = math.exp %491 : vector<2x16xf32>
    %cst_123 = arith.constant 1.000000e+00 : f32
    %493 = vector.broadcast %cst_123 : f32 to vector<2x16xf32>
    %494 = arith.addf %493, %492 : vector<2x16xf32>
    %495 = arith.divf %493, %494 : vector<2x16xf32>
    %496 = arith.mulf %487, %423 : vector<2x16xf32>
    %497 = arith.mulf %481, %489 : vector<2x16xf32>
    %498 = arith.addf %496, %497 : vector<2x16xf32>
    %499 = math.tanh %498 : vector<2x16xf32>
    %500 = arith.mulf %495, %499 : vector<2x16xf32>
    %501 = vector.extract_strided_slice %475 {offsets = [0, 0], sizes = [2, 16], strides = [1, 1]} : vector<2x64xf32> to vector<2x16xf32>
    %502 = arith.negf %501 : vector<2x16xf32>
    %503 = math.exp %502 : vector<2x16xf32>
    %cst_124 = arith.constant 1.000000e+00 : f32
    %504 = vector.broadcast %cst_124 : f32 to vector<2x16xf32>
    %505 = arith.addf %504, %503 : vector<2x16xf32>
    %506 = arith.divf %504, %505 : vector<2x16xf32>
    %507 = vector.extract_strided_slice %475 {offsets = [0, 16], sizes = [2, 16], strides = [1, 1]} : vector<2x64xf32> to vector<2x16xf32>
    %508 = arith.negf %507 : vector<2x16xf32>
    %509 = math.exp %508 : vector<2x16xf32>
    %cst_125 = arith.constant 1.000000e+00 : f32
    %510 = vector.broadcast %cst_125 : f32 to vector<2x16xf32>
    %511 = arith.addf %510, %509 : vector<2x16xf32>
    %512 = arith.divf %510, %511 : vector<2x16xf32>
    %513 = vector.extract_strided_slice %475 {offsets = [0, 32], sizes = [2, 16], strides = [1, 1]} : vector<2x64xf32> to vector<2x16xf32>
    %514 = math.tanh %513 : vector<2x16xf32>
    %515 = vector.extract_strided_slice %475 {offsets = [0, 48], sizes = [2, 16], strides = [1, 1]} : vector<2x64xf32> to vector<2x16xf32>
    %516 = arith.negf %515 : vector<2x16xf32>
    %517 = math.exp %516 : vector<2x16xf32>
    %cst_126 = arith.constant 1.000000e+00 : f32
    %518 = vector.broadcast %cst_126 : f32 to vector<2x16xf32>
    %519 = arith.addf %518, %517 : vector<2x16xf32>
    %520 = arith.divf %518, %519 : vector<2x16xf32>
    %521 = arith.mulf %512, %448 : vector<2x16xf32>
    %522 = arith.mulf %506, %514 : vector<2x16xf32>
    %523 = arith.addf %521, %522 : vector<2x16xf32>
    %524 = math.tanh %523 : vector<2x16xf32>
    %525 = arith.mulf %520, %524 : vector<2x16xf32>
    %526 = arith.truncf %500 : vector<2x16xf32> to vector<2x16xbf16>
    %527 = arith.index_cast %c6_i32 : i32 to index
    %c0_127 = arith.constant 0 : index
    %c0_128 = arith.constant 0 : index
    %528 = vector.load %arg4[%527, %c0_127, %c0_128] : memref<8x2x16xbf16, #tpu.memory_space<vmem>>, vector<1x2x16xbf16>
    %529 = vector.shape_cast %528 : vector<1x2x16xbf16> to vector<2x16xbf16>
    %530 = vector.shape_cast %526 : vector<2x16xbf16> to vector<1x2x16xbf16>
    tpu.vector_store %arg4[%527, %c0_127, %c0_128], %530 {strides = array<i32>} : memref<8x2x16xbf16, #tpu.memory_space<vmem>>, vector<1x2x16xbf16>,
    %531 = arith.truncf %525 : vector<2x16xf32> to vector<2x16xbf16>
    %532 = arith.index_cast %461 : i32 to index
    %c0_129 = arith.constant 0 : index
    %c0_130 = arith.constant 0 : index
    %533 = vector.load %arg5[%532, %c0_129, %c0_130] : memref<8x2x16xbf16, #tpu.memory_space<vmem>>, vector<1x2x16xbf16>
    %534 = vector.shape_cast %533 : vector<1x2x16xbf16> to vector<2x16xbf16>
    %535 = vector.shape_cast %531 : vector<2x16xbf16> to vector<1x2x16xbf16>
    tpu.vector_store %arg5[%532, %c0_129, %c0_130], %535 {strides = array<i32>} : memref<8x2x16xbf16, #tpu.memory_space<vmem>>, vector<1x2x16xbf16>,
    %c7_i32_131 = arith.constant 7 : i32
    %c7_i32_132 = arith.constant 7 : i32
    %536 = arith.subi %c7_i32_132, %c7_i32_131 : i32
    %537 = arith.index_cast %c7_i32_131 : i32 to index
    %c0_133 = arith.constant 0 : index
    %c0_134 = arith.constant 0 : index
    %538 = vector.load %arg1[%537, %c0_133, %c0_134] : memref<8x2x64xbf16, #tpu.memory_space<vmem>>, vector<1x2x64xbf16>
    %539 = vector.shape_cast %538 : vector<1x2x64xbf16> to vector<2x64xbf16>
    %540 = arith.extf %539 : vector<2x64xbf16> to vector<2x64xf32>
    %541 = arith.truncf %500 : vector<2x16xf32> to vector<2x16xbf16>
    %cst_135 = arith.constant dense<0.000000e+00> : vector<2x64xf32>
    %542 = tpu.matmul %541, %4, %cst_135 {dimension_numbers = #tpu.dot_dimension_numbers<[1], [0], [0], [1], [0, 0, 1, 1], [], []>} : vector<2x16xbf16>, vector<16x64xbf16>, vector<2x64xf32> -> vector<2x64xf32>
    %543 = arith.addf %540, %542 : vector<2x64xf32>
    %544 = arith.index_cast %536 : i32 to index
    %c0_136 = arith.constant 0 : index
    %c0_137 = arith.constant 0 : index
    %545 = vector.load %arg2[%544, %c0_136, %c0_137] : memref<8x2x64xbf16, #tpu.memory_space<vmem>>, vector<1x2x64xbf16>
    %546 = vector.shape_cast %545 : vector<1x2x64xbf16> to vector<2x64xbf16>
    %547 = arith.extf %546 : vector<2x64xbf16> to vector<2x64xf32>
    %548 = arith.truncf %525 : vector<2x16xf32> to vector<2x16xbf16>
    %cst_138 = arith.constant dense<0.000000e+00> : vector<2x64xf32>
    %549 = tpu.matmul %548, %6, %cst_138 {dimension_numbers = #tpu.dot_dimension_numbers<[1], [0], [0], [1], [0, 0, 1, 1], [], []>} : vector<2x16xbf16>, vector<16x64xbf16>, vector<2x64xf32> -> vector<2x64xf32>
    %550 = arith.addf %547, %549 : vector<2x64xf32>
    %551 = vector.extract_strided_slice %543 {offsets = [0, 0], sizes = [2, 16], strides = [1, 1]} : vector<2x64xf32> to vector<2x16xf32>
    %552 = arith.negf %551 : vector<2x16xf32>
    %553 = math.exp %552 : vector<2x16xf32>
    %cst_139 = arith.constant 1.000000e+00 : f32
    %554 = vector.broadcast %cst_139 : f32 to vector<2x16xf32>
    %555 = arith.addf %554, %553 : vector<2x16xf32>
    %556 = arith.divf %554, %555 : vector<2x16xf32>
    %557 = vector.extract_strided_slice %543 {offsets = [0, 16], sizes = [2, 16], strides = [1, 1]} : vector<2x64xf32> to vector<2x16xf32>
    %558 = arith.negf %557 : vector<2x16xf32>
    %559 = math.exp %558 : vector<2x16xf32>
    %cst_140 = arith.constant 1.000000e+00 : f32
    %560 = vector.broadcast %cst_140 : f32 to vector<2x16xf32>
    %561 = arith.addf %560, %559 : vector<2x16xf32>
    %562 = arith.divf %560, %561 : vector<2x16xf32>
    %563 = vector.extract_strided_slice %543 {offsets = [0, 32], sizes = [2, 16], strides = [1, 1]} : vector<2x64xf32> to vector<2x16xf32>
    %564 = math.tanh %563 : vector<2x16xf32>
    %565 = vector.extract_strided_slice %543 {offsets = [0, 48], sizes = [2, 16], strides = [1, 1]} : vector<2x64xf32> to vector<2x16xf32>
    %566 = arith.negf %565 : vector<2x16xf32>
    %567 = math.exp %566 : vector<2x16xf32>
    %cst_141 = arith.constant 1.000000e+00 : f32
    %568 = vector.broadcast %cst_141 : f32 to vector<2x16xf32>
    %569 = arith.addf %568, %567 : vector<2x16xf32>
    %570 = arith.divf %568, %569 : vector<2x16xf32>
    %571 = arith.mulf %562, %498 : vector<2x16xf32>
    %572 = arith.mulf %556, %564 : vector<2x16xf32>
    %573 = arith.addf %571, %572 : vector<2x16xf32>
    %574 = math.tanh %573 : vector<2x16xf32>
    %575 = arith.mulf %570, %574 : vector<2x16xf32>
    %576 = vector.extract_strided_slice %550 {offsets = [0, 0], sizes = [2, 16], strides = [1, 1]} : vector<2x64xf32> to vector<2x16xf32>
    %577 = arith.negf %576 : vector<2x16xf32>
    %578 = math.exp %577 : vector<2x16xf32>
    %cst_142 = arith.constant 1.000000e+00 : f32
    %579 = vector.broadcast %cst_142 : f32 to vector<2x16xf32>
    %580 = arith.addf %579, %578 : vector<2x16xf32>
    %581 = arith.divf %579, %580 : vector<2x16xf32>
    %582 = vector.extract_strided_slice %550 {offsets = [0, 16], sizes = [2, 16], strides = [1, 1]} : vector<2x64xf32> to vector<2x16xf32>
    %583 = arith.negf %582 : vector<2x16xf32>
    %584 = math.exp %583 : vector<2x16xf32>
    %cst_143 = arith.constant 1.000000e+00 : f32
    %585 = vector.broadcast %cst_143 : f32 to vector<2x16xf32>
    %586 = arith.addf %585, %584 : vector<2x16xf32>
    %587 = arith.divf %585, %586 : vector<2x16xf32>
    %588 = vector.extract_strided_slice %550 {offsets = [0, 32], sizes = [2, 16], strides = [1, 1]} : vector<2x64xf32> to vector<2x16xf32>
    %589 = math.tanh %588 : vector<2x16xf32>
    %590 = vector.extract_strided_slice %550 {offsets = [0, 48], sizes = [2, 16], strides = [1, 1]} : vector<2x64xf32> to vector<2x16xf32>
    %591 = arith.negf %590 : vector<2x16xf32>
    %592 = math.exp %591 : vector<2x16xf32>
    %cst_144 = arith.constant 1.000000e+00 : f32
    %593 = vector.broadcast %cst_144 : f32 to vector<2x16xf32>
    %594 = arith.addf %593, %592 : vector<2x16xf32>
    %595 = arith.divf %593, %594 : vector<2x16xf32>
    %596 = arith.mulf %587, %523 : vector<2x16xf32>
    %597 = arith.mulf %581, %589 : vector<2x16xf32>
    %598 = arith.addf %596, %597 : vector<2x16xf32>
    %599 = math.tanh %598 : vector<2x16xf32>
    %600 = arith.mulf %595, %599 : vector<2x16xf32>
    %601 = arith.truncf %575 : vector<2x16xf32> to vector<2x16xbf16>
    %602 = arith.index_cast %c7_i32_131 : i32 to index
    %c0_145 = arith.constant 0 : index
    %c0_146 = arith.constant 0 : index
    %603 = vector.load %arg4[%602, %c0_145, %c0_146] : memref<8x2x16xbf16, #tpu.memory_space<vmem>>, vector<1x2x16xbf16>
    %604 = vector.shape_cast %603 : vector<1x2x16xbf16> to vector<2x16xbf16>
    %605 = vector.shape_cast %601 : vector<2x16xbf16> to vector<1x2x16xbf16>
    tpu.vector_store %arg4[%602, %c0_145, %c0_146], %605 {strides = array<i32>} : memref<8x2x16xbf16, #tpu.memory_space<vmem>>, vector<1x2x16xbf16>,
    %606 = arith.truncf %600 : vector<2x16xf32> to vector<2x16xbf16>
    %607 = arith.index_cast %536 : i32 to index
    %c0_147 = arith.constant 0 : index
    %c0_148 = arith.constant 0 : index
    %608 = vector.load %arg5[%607, %c0_147, %c0_148] : memref<8x2x16xbf16, #tpu.memory_space<vmem>>, vector<1x2x16xbf16>
    %609 = vector.shape_cast %608 : vector<1x2x16xbf16> to vector<2x16xbf16>
    %610 = vector.shape_cast %606 : vector<2x16xbf16> to vector<1x2x16xbf16>
    tpu.vector_store %arg5[%607, %c0_147, %c0_148], %610 {strides = array<i32>} : memref<8x2x16xbf16, #tpu.memory_space<vmem>>, vector<1x2x16xbf16>,
    %c8_i32 = arith.constant 8 : i32
    %c0_149 = arith.constant 0 : index
    %c0_150 = arith.constant 0 : index
    %611 = vector.load %arg6[%c0_149, %c0_150] : memref<2x16xf32, #tpu.memory_space<vmem>>, vector<2x16xf32>
    tpu.vector_store %arg6[%c0_149, %c0_150], %575 {strides = array<i32>} : memref<2x16xf32, #tpu.memory_space<vmem>>, vector<2x16xf32>,
    %c0_151 = arith.constant 0 : index
    %c0_152 = arith.constant 0 : index
    %612 = vector.load %arg7[%c0_151, %c0_152] : memref<2x16xf32, #tpu.memory_space<vmem>>, vector<2x16xf32>
    tpu.vector_store %arg7[%c0_151, %c0_152], %573 {strides = array<i32>} : memref<2x16xf32, #tpu.memory_space<vmem>>, vector<2x16xf32>,
    %c0_153 = arith.constant 0 : index
    %c0_154 = arith.constant 0 : index
    %613 = vector.load %arg8[%c0_153, %c0_154] : memref<2x16xf32, #tpu.memory_space<vmem>>, vector<2x16xf32>
    tpu.vector_store %arg8[%c0_153, %c0_154], %600 {strides = array<i32>} : memref<2x16xf32, #tpu.memory_space<vmem>>, vector<2x16xf32>,
    %c0_155 = arith.constant 0 : index
    %c0_156 = arith.constant 0 : index
    %614 = vector.load %arg9[%c0_155, %c0_156] : memref<2x16xf32, #tpu.memory_space<vmem>>, vector<2x16xf32>
    tpu.vector_store %arg9[%c0_155, %c0_156], %598 {strides = array<i32>} : memref<2x16xf32, #tpu.memory_space<vmem>>, vector<2x16xf32>,
    return
  }
  func.func @transform_0(%arg0: i32) -> (i32, i32, i32) {
    %c0_i32 = arith.constant 0 : i32
    %c0_i32_0 = arith.constant 0 : i32
    %c0_i32_1 = arith.constant 0 : i32
    return %arg0, %c0_i32, %c0_i32_0 : i32, i32, i32
  }
  func.func @transform_1(%arg0: i32) -> (i32, i32, i32) {
    %c0_i32 = arith.constant 0 : i32
    %0 = arith.subi %c0_i32, %arg0 : i32
    %c0_i32_0 = arith.constant 0 : i32
    %c0_i32_1 = arith.constant 0 : i32
    %c0_i32_2 = arith.constant 0 : i32
    return %0, %c0_i32_0, %c0_i32_1 : i32, i32, i32
  }
  func.func @transform_2(%arg0: i32) -> (i32, i32, i32) {
    %c0_i32 = arith.constant 0 : i32
    %c0_i32_0 = arith.constant 0 : i32
    %c0_i32_1 = arith.constant 0 : i32
    %c0_i32_2 = arith.constant 0 : i32
    return %c0_i32, %c0_i32_0, %c0_i32_1 : i32, i32, i32
  }
  func.func @transform_3(%arg0: i32) -> (i32, i32, i32) {
    %c0_i32 = arith.constant 0 : i32
    %c0_i32_0 = arith.constant 0 : i32
    %c0_i32_1 = arith.constant 0 : i32
    return %arg0, %c0_i32, %c0_i32_0 : i32, i32, i32
  }
  func.func @transform_4(%arg0: i32) -> (i32, i32, i32) {
    %c0_i32 = arith.constant 0 : i32
    %0 = arith.subi %c0_i32, %arg0 : i32
    %c0_i32_0 = arith.constant 0 : i32
    %c0_i32_1 = arith.constant 0 : i32
    %c0_i32_2 = arith.constant 0 : i32
    return %0, %c0_i32_0, %c0_i32_1 : i32, i32, i32
  }
}

</mosaic_0001>

<bundles_post_ra>
// kernel: _lambda_.10
= control target key start
LH: loop header
LB: loop body
LE: loop exit
PB: predicated region body
PF: predicated region fallthrough
CT: control target
= control target key end

     0   :  { %vm42_vm0 = vcmask 261120   ;;  %s125_s1 = inlined_call_operand.vmem [shape: bf16[32,128], index: 1, kind: input, shape index: {}]   ;;  %s126_s2 = inlined_call_operand.vmem [shape: f32[1,128], index: 2, kind: input, shape index: {}]   ;;  %s127_s0 = inlined_call_operand.vmem [shape: bf16[16,32], index: 0, kind: input, shape index: {}]   ;;  %s128_s3 = inlined_call_operand.vmem [shape: bf16[16,128], index: 3, kind: output, shape index: {}]  }
   0x1   :  { %v83_v0 = vld [vmem:[%s125_s1 + $0x8] sm:$0xff]  ;;  %v82_v1 = vld [vmem:[%s125_s1] sm:$0xff] }
   0x2   :  { %52 = vmatpush.bf16.msra.mxu0 %v83_v0  ;;  %v81_v2 = vld [vmem:[%s127_s0] sm:$0xff] }
   0x3   :  { %v89_v4 = vld [vmem:[%s126_s2] ss:$0 sm:$0xff] }
   0x6   :  { %53 = vmatpush.bf16.msra.mxu0 %v82_v1 }
   0x9   :  { %80 = vmatmul.msk.bf16.vlgmr.msra.gmra.mxu0 %vm42_vm0, %v81_v2 }
  0x86   :  { %v55_v3 = vpop.f32.mrf.mxu0 }
  0x87   :  { %v56_v6 = vadd.f32 %v89_v4, %v55_v3 }
  0x8e   :  { %v57_v5 = vpop.f32.mrf.mxu0 }
  0x8f   :  { %v58_v7 = vadd.f32 %v89_v4, %v57_v5 }
  0x91   :  { %v87_v8 = vpack.c.bf16 %v58_v7, %v56_v6 }
  0x93   :  { %88 = vst [vmem:[%s128_s3] sm:$0xff] %v87_v8  }

// kernel: _lambda_.9
= control target key start
LH: loop header
LB: loop body
LE: loop exit
PB: predicated region body
PF: predicated region fallthrough
CT: control target
= control target key end

     0   :  { %vm38_vm0 = vcmask 261120   ;;  %vm60_vm1 = vcmask 257024   ;;  %s124_s1 = inlined_call_operand.vmem [shape: bf16[32,32], index: 1, kind: input, shape index: {}]   ;;  %s125_s0 = inlined_call_operand.vmem [shape: f32[16,32], index: 0, kind: input, shape index: {}]   ;;  %s126_s2 = inlined_call_operand.vmem [shape: f32[1,32], index: 2, kind: input, shape index: {}]   ;;  %s127_s3 = inlined_call_operand.vmem [shape: bf16[16,32], index: 3, kind: output, shape index: {}]  }
   0x1   :  { %v77_v0 = vld [vmem:[%s124_s1 + $0x8] sm:$0xff]  ;;  %v76_v1 = vld [vmem:[%s124_s1] sm:$0xff] }
   0x2   :  { %48 = vmatpush.bf16.msra.mxu0 %v77_v0  ;;  %v15_v2 = vld [vmem:[%s125_s0] sm:$0xff]  ;;  %v16_v3 = vld [vmem:[%s125_s0 + $0x8] sm:$0xff] }
   0x3   :  { %v17_v4 = vpack.c.bf16 %v16_v3, %v15_v2  ;;  %v78_v5 = vld [vmem:[%s126_s2] ss:$0 sm:$0xff] }
   0x6   :  { %49 = vmatpush.bf16.msra.mxu0 %v76_v1 }
   0x9   :  { %75 = vmatmul.msk.bf16.vlgmr.msra.gmra.mxu0 %vm38_vm0, %v17_v4 }
  0x86   :  { %v51_v6 = vpop.f32.mrf.mxu0 }
  0x87   :  { %v52_v7 = vadd.f32 %v78_v5, %v51_v6 }
  0x89   :  { %79 = vtanh.f32 %v52_v7 }
  0x8e   :  { %v53_v8 = vpop.f32.mrf.mxu0 }
  0x8f   :  { %v80_v9 = vpop.eup %79  ;;  %v54_v10 = vadd.f32 %v78_v5, %v53_v8 }
  0x90   :  { %v58_v11 = vpack.c.bf16 %v80_v9, %v80_v9 }
  0x91   :  { %81 = vtanh.f32 %v54_v10 }
  0x92   :  { %61 = vst.msk [vmem:[%s127_s3] sm:$0xf] %vm60_vm1, %v58_v11 }
  0x97   :  { %v82_v12 = vpop.eup %81 }
  0x98   :  { %v59_v13 = vpack.c.bf16 %v82_v12, %v82_v12 }
  0x9a   :  { %62 = vst.msk [vmem:[%s127_s3 + $0x4] sm:$0xf] %vm60_vm1, %v59_v13 }

// kernel: _lambda_.17
= control target key start
LH: loop header
LB: loop body
LE: loop exit
PB: predicated region body
PF: predicated region fallthrough
CT: control target
= control target key end

     0   :  { %vm51_vm0 = vcmask 261120   ;;  %s180_s1 = inlined_call_operand.vmem [shape: bf16[32,32], index: 1, kind: input, shape index: {}]   ;;  %s181_s2 = inlined_call_operand.vmem [shape: f32[1,32], index: 2, kind: input, shape index: {}]   ;;  %s182_s4 = inlined_call_operand.vmem [shape: f32[1,32], index: 4, kind: input, shape index: {}, may-alias: {4,5}]   ;;  %s183_s5 = inlined_call_operand.vmem [shape: f32[1,32], index: 5, kind: input, shape index: {}, may-alias: {4,5}]   ;;  %s184_s0 = inlined_call_operand.vmem [shape: bf16[16,32], index: 0, kind: input, shape index: {}]   ;;  %s185_s3 = inlined_call_operand.vmem [shape: f32[16,32], index: 3, kind: input, shape index: {}]   ;;  %s186_s6 = inlined_call_operand.vmem [shape: f32[16,32], index: 6, kind: output, shape index: {}]  }
   0x1   :  { %v108_v0 = vld [vmem:[%s180_s1 + $0x8] sm:$0xff]  ;;  %v107_v1 = vld [vmem:[%s180_s1] sm:$0xff] }
   0x2   :  { %61 = vmatpush.bf16.msra.mxu0 %v108_v0  ;;  %v106_v2 = vld [vmem:[%s184_s0] sm:$0xff]  ;;  %v84_v17 = vld [vmem:[%s185_s3 + $0x8] sm:$0xff] }
   0x3   :  { %v109_v3 = vld [vmem:[%s181_s2] ss:$0 sm:$0xff] }
   0x4   :  { %v110_v4 = vld [vmem:[%s182_s4] ss:$0 sm:$0xff] }
   0x5   :  { %v111_v7 = vld [vmem:[%s183_s5] ss:$0 sm:$0xff] }
   0x6   :  { %62 = vmatpush.bf16.msra.mxu0 %v107_v1  ;;  %v83_v10 = vld [vmem:[%s185_s3] sm:$0xff] }
   0x9   :  { %105 = vmatmul.msk.bf16.vlgmr.msra.gmra.mxu0 %vm51_vm0, %v106_v2 }
  0x86   :  { %v64_v5 = vpop.f32.mrf.mxu0 }
  0x87   :  { %v65_v6 = vadd.f32 %v109_v3, %v64_v5 }
  0x89   :  { %v73_v8 = vmul.f32 %v110_v4, %v65_v6 }
  0x8b   :  { %v79_v9 = vadd.f32 %v111_v7, %v73_v8 }
  0x8d   :  { %v81_v11 = vmax.f32 %v79_v9, 0.0 }
  0x8e   :  { %v66_v12 = vpop.f32.mrf.mxu0 }
  0x8f   :  { %v85_v13 = vmul.f32 %v83_v10, %v81_v11  ;;  %v67_v14 = vadd.f32 %v109_v3, %v66_v12 }
  0x91   :  { %87 = vst.msk [vmem:[%s186_s6] sm:$0xff] %vm51_vm0, %v85_v13  ;;  %v74_v15 = vmul.f32 %v110_v4, %v67_v14 }
  0x93   :  { %v80_v16 = vadd.f32 %v111_v7, %v74_v15 }
  0x95   :  { %v82_v18 = vmax.f32 %v80_v16, 0.0 }
  0x97   :  { %v86_v19 = vmul.f32 %v84_v17, %v82_v18 }
  0x99   :  { %88 = vst.msk [vmem:[%s186_s6 + $0x8] sm:$0xff] %vm51_vm0, %v86_v19 }

// kernel: _lambda_.12
= control target key start
LH: loop header
LB: loop body
LE: loop exit
PB: predicated region body
PF: predicated region fallthrough
CT: control target
= control target key end

     0   :  { %vm40_vm0 = vcmask 130048   ;;  %s176_s3 = inlined_call_operand.vmem [shape: bf16[16,128], index: 3, kind: input, shape index: {}]   ;;  %s177_s2 = inlined_call_operand.vmem [shape: bf16[16,128], index: 2, kind: input, shape index: {}]   ;;  %s178_s1 = inlined_call_operand.vmem [shape: bf16[16,16], index: 1, kind: input, shape index: {}]   ;;  %s179_s0 = inlined_call_operand.vmem [shape: bf16[16,16], index: 0, kind: input, shape index: {}]   ;;  %s180_s4 = inlined_call_operand.vmem [shape: f32[1,128], index: 4, kind: input, shape index: {}]   ;;  %s181_s5 = inlined_call_operand.vmem [shape: bf16[16,128], index: 5, kind: output, shape index: {}]  }
   0x1   :  { %v121_v0 = vld [vmem:[%s176_s3] sm:$0xff] }
   0x2   :  { %v119_v1 = vld [vmem:[%s177_s2] sm:$0xff]  ;;  %51 = vmatpush.bf16.msra.mxu0 %v121_v0 }
   0x3   :  { %v120_v2 = vld [vmem:[%s178_s1] sm:$0xff]  ;;  %79 = vmatpush.bf16.msra.mxu1 %v119_v1 }
   0x4   :  { %v118_v3 = vld [vmem:[%s179_s0] sm:$0xff] }
   0x5   :  { %108 = vmatmul.msk.bf16.vlgmr.msra.gmra.mxu0 %vm40_vm0, %v120_v2  ;;  %v127_v7 = vld [vmem:[%s180_s4] ss:$0 sm:$0xff] }
   0x6   :  { %117 = vmatmul.msk.bf16.vlgmr.msra.gmra.mxu1 %vm40_vm0, %v118_v3 }
  0x82   :  { %v53_v4 = vpop.f32.mrf.mxu0 }
  0x83   :  { %v81_v5 = vpop.f32.mrf.mxu1 }
  0x84   :  { %v82_v6 = vadd.f32 %v81_v5, %v53_v4 }
  0x86   :  { %v90_v11 = vadd.f32 %v127_v7, %v82_v6 }
  0x8a   :  { %v55_v8 = vpop.f32.mrf.mxu0 }
  0x8b   :  { %v83_v9 = vpop.f32.mrf.mxu1 }
  0x8c   :  { %v84_v10 = vadd.f32 %v83_v9, %v55_v8 }
  0x8e   :  { %v91_v12 = vadd.f32 %v127_v7, %v84_v10 }
  0x90   :  { %v125_v13 = vpack.c.bf16 %v91_v12, %v90_v11 }
  0x92   :  { %126 = vst [vmem:[%s181_s5] sm:$0xff] %v125_v13  }

// kernel: _lambda_.16
= control target key start
LH: loop header
LB: loop body
LE: loop exit
PB: predicated region body
PF: predicated region fallthrough
CT: control target
= control target key end

     0   :  { %vm48_vm0 = vcmask 130048   ;;  %vm83_vm1 = vcmask 261120   ;;  %vm145_vm2 = vcmask 257024   ;;  %s261_s4 = inlined_call_operand.vmem [shape: bf16[16,32], index: 4, kind: input, shape index: {}]   ;;  %s262_s3 = inlined_call_operand.vmem [shape: bf16[32,32], index: 3, kind: input, shape index: {}]   ;;  %s263_s5 = inlined_call_operand.vmem [shape: bf16[16,32], index: 5, kind: input, shape index: {}]   ;;  %s264_s1 = inlined_call_operand.vmem [shape: bf16[16,16], index: 1, kind: input, shape index: {}]   ;;  %s265_s2 = inlined_call_operand.vmem [shape: bf16[16,16], index: 2, kind: input, shape index: {}]   ;;  %s266_s0 = inlined_call_operand.vmem [shape: bf16[16,32], index: 0, kind: input, shape index: {}]   ;;  %s267_s6 = inlined_call_operand.vmem [shape: f32[1,32], index: 6, kind: input, shape index: {}]   ;;  %s268_s7 = inlined_call_operand.vmem [shape: bf16[16,32], index: 7, kind: output, shape index: {}]  }
   0x1   :  { %v187_v0 = vld [vmem:[%s261_s4] sm:$0xff]  ;;  %v185_v1 = vld [vmem:[%s262_s3 + $0x8] sm:$0xff] }
   0x2   :  { %v189_v2 = vld [vmem:[%s263_s5] sm:$0xff]  ;;  %59 = vmatpush.bf16.msra.mxu0 %v187_v0  ;;  %93 = vmatpush.bf16.msra.mxu1 %v185_v1 }
   0x3   :  { %v186_v3 = vld [vmem:[%s264_s1] sm:$0xff]  ;;  %126 = vmatpush.bf16.msra.mxu2 %v189_v2 }
   0x4   :  { %v188_v4 = vld [vmem:[%s265_s2] sm:$0xff] }
   0x5   :  { %v184_v5 = vld [vmem:[%s262_s3] sm:$0xff]  ;;  %160 = vmatmul.msk.bf16.vlgmr.msra.gmra.mxu0 %vm48_vm0, %v186_v3 }
   0x6   :  { %v183_v6 = vld [vmem:[%s266_s0] sm:$0xff]  ;;  %182 = vmatmul.msk.bf16.vlgmr.msra.gmra.mxu2 %vm48_vm0, %v188_v4  ;;  %94 = vmatpush.bf16.msra.mxu1 %v184_v5 }
   0x7   :  { %v190_v10 = vld [vmem:[%s267_s6] ss:$0 sm:$0xff] }
   0x9   :  { %173 = vmatmul.msk.bf16.vlgmr.msra.gmra.mxu1 %vm83_vm1, %v183_v6 }
  0x82   :  { %v61_v7 = vpop.f32.mrf.mxu0 }
  0x86   :  { %v96_v8 = vpop.f32.mrf.mxu1 }
  0x87   :  { %v97_v9 = vadd.f32 %v96_v8, %v61_v7 }
  0x89   :  { %v128_v11 = vpop.f32.mrf.mxu2 }
  0x8a   :  { %v133_v12 = vadd.f32 %v128_v11, %v97_v9  ;;  %v63_v15 = vpop.f32.mrf.mxu0 }
  0x8c   :  { %v139_v13 = vadd.f32 %v190_v10, %v133_v12 }
  0x8e   :  { %v141_v14 = vmax.f32 %v139_v13, 0.0  ;;  %v98_v16 = vpop.f32.mrf.mxu1 }
  0x8f   :  { %v99_v17 = vadd.f32 %v98_v16, %v63_v15 }
  0x90   :  { %v143_v18 = vpack.c.bf16 %v141_v14, %v141_v14 }
  0x91   :  { %v130_v19 = vpop.f32.mrf.mxu2 }
  0x92   :  { %146 = vst.msk [vmem:[%s268_s7] sm:$0xf] %vm145_vm2, %v143_v18  ;;  %v134_v20 = vadd.f32 %v130_v19, %v99_v17 }
  0x94   :  { %v140_v21 = vadd.f32 %v190_v10, %v134_v20 }
  0x96   :  { %v142_v22 = vmax.f32 %v140_v21, 0.0 }
  0x98   :  { %v144_v23 = vpack.c.bf16 %v142_v22, %v142_v22 }
  0x9a   :  { %147 = vst.msk [vmem:[%s268_s7 + $0x4] sm:$0xf] %vm145_vm2, %v144_v23 }

// kernel: _lambda_.11
= control target key start
LH: loop header
LB: loop body
LE: loop exit
PB: predicated region body
PF: predicated region fallthrough
CT: control target
= control target key end

     0   :  { %vm52_vm0 = vcmask 123904   ;;  %v1509_v2 = vmov 0.0   ;;  %vm75_vm1 = vcmask 130048   ;;  %s1511_s23 = smov 96   ;;  %s1512_s24 = smov 32   ;;  %s1940_s2 = inlined_call_operand.vmem [shape: bf16[2,16,64], index: 2, kind: input, shape index: {}]   ;;  %s1941_s0 = inlined_call_operand.vmem [shape: bf16[8,2,64], index: 0, kind: input, shape index: {}]   ;;  %s1942_s1 = inlined_call_operand.vmem [shape: bf16[8,2,64], index: 1, kind: input, shape index: {}]   ;;  %s1943_s3 = inlined_call_operand.vmem [shape: bf16[8,2,16], index: 3, kind: output, shape index: {0}]   ;;  %s1944_s4 = inlined_call_operand.vmem [shape: bf16[8,2,16], index: 4, kind: output, shape index: {1}]  }
   0x1   :  { %v1543_v0 = vld [vmem:[%s1940_s2] sm:$0xff]  ;;  %v1548_v1 = vld [vmem:[%s1940_s2 + $0x8] sm:$0xff]  ;;  %53 = vst.msk [vmem:[#allocation2] sm:$0x3] %vm52_vm0, %v1509_v2  ;;  %s1510_s2 = smov 16   ;;  %s1513_s25 = smov 80  }
   0x2   :  { %54 = vst.msk [vmem:[#allocation3] sm:$0x3] %vm52_vm0, %v1509_v2  ;;  %86 = vmatpush.bf16.msra.mxu0 %v1543_v0  ;;  %113 = vmatpush.bf16.msra.mxu1 %v1548_v1  ;;  %v66_v9 = vld [vmem:[%s1941_s0] sm:$0x1]  ;;  %v1310_v12 = vld [vmem:[%s1942_s1 + $0x7] sm:$0x1] }
   0x3   :  { %55 = vst.msk [vmem:[#allocation4] sm:$0x3] %vm52_vm0, %v1509_v2  ;;  %244 = vmatpush.bf16.msra.mxu2 %v1543_v0  ;;  %268 = vmatpush.bf16.msra.mxu3 %v1548_v1  ;;  %v67_v10 = vunpack.c.l.bf16 %v66_v9  ;;  %v95_v15 = vunpack.c.l.bf16 %v1310_v12  ;;  %s1514_s16 = smov 112  }
   0x4   :  { %56 = vst.msk [vmem:[#allocation5] sm:$0x3] %vm52_vm0, %v1509_v2 }
   0x6   :  { %414 = vmatpush.bf16.msrb.mxu1 %v1548_v1  ;;  %390 = vmatpush.bf16.msrb.mxu0 %v1543_v0 }
   0x7   :  { %560 = vmatpush.bf16.msrb.mxu3 %v1548_v1  ;;  %536 = vmatpush.bf16.msrb.mxu2 %v1543_v0 }
   0x8   :  { %v62_v3 = vld [vmem:[#allocation2] sm:$0x3] }
   0x9   :  { %v68_v4 = vpack.c.bf16 %v62_v3, %v62_v3  ;;  %v63_v5 = vld [vmem:[#allocation3] sm:$0x3] }
   0xa   :  { %v64_v6 = vld [vmem:[#allocation4] sm:$0x3]  ;;  %141 = vrot.lane.b32.xlu1 %v63_v5, %s1510_s2 }
   0xb   :  { %1309 = vmatmul.msk.bf16.vlgmr.msra.gmra.mxu0 %vm75_vm1, %v68_v4  ;;  %v96_v7 = vpack.c.bf16 %v64_v6, %v64_v6  ;;  %v65_v8 = vld [vmem:[#allocation5] sm:$0x3] }
   0xc   :  { %182 = vrot.lane.b32.xlu2 %v65_v8, %s1510_s2  ;;  %682 = vmatpush.bf16.msra.mxu0 %v1543_v0 }
   0xd   :  { %1315 = vmatmul.msk.bf16.vlgmr.msra.gmra.mxu1 %vm75_vm1, %v96_v7 }
   0xe   :  { %706 = vmatpush.bf16.msra.mxu1 %v1548_v1 }
  0x66   :  { %v183_v51 = vpop.permute.xlu2 %182 }
  0x7c   :  { %v142_v55 = vpop.permute.xlu1 %141 }
  0x88   :  { %v88_v11 = vpop.f32.mrf.mxu0 }
  0x89   :  { %v92_v13 = vadd.f32 %v88_v11, %v67_v10  ;;  %v1319_v11 = vld [vmem:[%s1941_s0 + $0x1] sm:$0x1] }
  0x8a   :  { %v115_v14 = vpop.f32.mrf.mxu1  ;;  %v229_v12 = vunpack.c.l.bf16 %v1319_v11 }
  0x8b   :  { %1381 = vtanh.f32 %v92_v13  ;;  %v119_v16 = vadd.f32 %v115_v14, %v95_v15  ;;  %v1316_v21 = vmul.f32 -1.442695, %v92_v13  ;;  %v1321_v15 = vld [vmem:[%s1942_s1 + $0x6] sm:$0x1] }
  0x8d   :  { %1383 = vtanh.f32 %v119_v16  ;;  %v1317_v22 = vmul.f32 -1.442695, %v119_v16  ;;  %v253_v16 = vunpack.c.l.bf16 %v1321_v15 }
  0x8e   :  { %1385 = vpow2.f32 %v1316_v21 }
  0x8f   :  { %1387 = vpow2.f32 %v1317_v22 }
  0x90   :  { %v90_v17 = vpop.f32.mrf.mxu0 }
  0x91   :  { %v1382_v18 = vpop.eup %1381 }
  0x92   :  { %146 = vrot.lane.b32.xlu0 %v1382_v18, %s1511_s23  ;;  %v117_v19 = vpop.f32.mrf.mxu1 }
  0x93   :  { %v1384_v20 = vpop.eup %1383 }
  0x94   :  { %v1386_v23 = vpop.eup %1385 }
  0x95   :  { %v123_v24 = vadd.f32 1.0, %v1386_v23  ;;  %v1388_v25 = vpop.eup %1387 }
  0x96   :  { %v164_v26 = vadd.f32 1.0, %v1388_v25 }
  0x97   :  { %1389 = vrcp.f32 %v123_v24  ;;  %v135_v35 = vand.u32 2147483648, %v123_v24  ;;  %vm129_vm3 = vweird.f32 %v123_v24  ;;  %v133_v36 = vand.u32 2147483647, %v123_v24 }
  0x98   :  { %1391 = vrcp.f32 %v164_v26  ;;  %v176_v40 = vand.u32 2147483648, %v164_v26  ;;  %vm170_vm6 = vweird.f32 %v164_v26  ;;  %v174_v45 = vand.u32 2147483647, %v164_v26 }
  0x99   :  { %v136_v39 = vor.u32 1.1754944e-38, %v135_v35  ;;  %vm134_vm5 = vcmp.eq.f32.partialorder %v133_v36, 8.507059e+37 }
  0x9a   :  { %187 = vrot.lane.b32.xlu0 %v1384_v20, %s1511_s23  ;;  %v177_v46 = vor.u32 1.1754944e-38, %v176_v40  ;;  %vm175_vm9 = vcmp.eq.f32.partialorder %v174_v45, 8.507059e+37 }
  0x9d   :  { %v1390_v27 = vpop.eup %1389 }
  0x9e   :  { %v125_v28 = vmul.f32 %v1390_v27, %v123_v24  ;;  %v1392_v30 = vpop.eup %1391  ;;  %vm130_vm2 = vweird.f32 %v1390_v27 }
  0x9f   :  { %v166_v31 = vmul.f32 %v1392_v30, %v164_v26  ;;  %vm131_vm4 = vmor %vm129_vm3, %vm130_vm2  ;;  %vm171_vm7 = vweird.f32 %v1392_v30 }
  0xa0   :  { %v126_v29 = vsub.f32 1.0, %v125_v28  ;;  %vm172_vm8 = vmor %vm170_vm6, %vm171_vm7 }
  0xa1   :  { %v167_v33 = vsub.f32 1.0, %v166_v31 }
  0xa2   :  { %v127_v32 = vmul.f32 %v1390_v27, %v126_v29 }
  0xa3   :  { %v168_v37 = vmul.f32 %v1392_v30, %v167_v33 }
  0xa4   :  { %v128_v34 = vadd.f32 %v1390_v27, %v127_v32 }
  0xa5   :  { %v169_v43 = vadd.f32 %v1392_v30, %v168_v37 }
  0xa6   :  { %v132_v38 = vsel %vm131_vm4, %v1390_v27, %v128_v34 }
  0xa7   :  { %v137_v41 = vsel %vm134_vm5, %v136_v39, %v132_v38  ;;  %v173_v47 = vsel %vm172_vm8, %v1392_v30, %v169_v43 }
  0xa8   :  { %v178_v48 = vsel %vm175_vm9, %v177_v46, %v173_v47  ;;  %v144_v57 = vmul.f32 %v142_v55, %v137_v41 }
  0xa9   :  { %v185_v52 = vmul.f32 %v183_v51, %v178_v48 }
 0x104   :  { %v147_v42 = vpop.permute.xlu0 %146 }
 0x105   :  { %v149_v44 = vmul.f32 %v147_v42, %v137_v41 }
 0x107   :  { %151 = vrot.lane.b32.xlu1 %v149_v44, %s1510_s2 }
 0x10c   :  { %v188_v49 = vpop.permute.xlu0 %187 }
 0x10d   :  { %v190_v50 = vmul.f32 %v188_v49, %v178_v48 }
 0x10f   :  { %192 = vrot.lane.b32.xlu2 %v190_v50, %s1510_s2 }
 0x169   :  { %v193_v53 = vpop.permute.xlu2 %192 }
 0x16a   :  { %v1578_v54 = vadd.f32 %v193_v53, %v185_v52 }
 0x16c   :  { %1393 = vtanh.f32 %v1578_v54 }
 0x172   :  { %v1394_v56 = vpop.eup %1393 }
 0x173   :  { %198 = vrot.lane.b32.xlu1 %v1394_v56, %s1512_s24 }
 0x179   :  { %v152_v58 = vpop.permute.xlu1 %151 }
 0x17a   :  { %v1582_v59 = vadd.f32 %v152_v58, %v144_v57 }
 0x17c   :  { %1395 = vtanh.f32 %v1582_v59 }
 0x182   :  { %v1396_v60 = vpop.eup %1395 }
 0x183   :  { %157 = vrot.lane.b32.xlu0 %v1396_v60, %s1512_s24 }
 0x1e5   :  { %v199_v61 = vpop.permute.xlu1 %198 }
 0x1e6   :  { %v201_v62 = vmul.f32 %v199_v61, %v178_v48 }
 0x1e8   :  { %v1586_v63 = vpack.c.bf16 %v201_v62, %v201_v62 }
 0x1ea   :  { %v254_v2 = vunpack.c.l.b16 %v1586_v63 }
 0x1ec   :  { %v255_v3 = vpack.c.b16 %v254_v2, %v254_v2 }
 0x1ee   :  { %256 = vrot.lane.b32.xlu0 %v255_v3, %s1513_s25 }
 0x1f5   :  { %v158_v4 = vpop.permute.xlu0 %157 }
 0x1f6   :  { %v160_v5 = vmul.f32 %v158_v4, %v137_v41 }
 0x1f8   :  { %v1590_v6 = vpack.c.bf16 %v160_v5, %v160_v5 }
 0x1fa   :  { %v230_v7 = vunpack.c.l.b16 %v1590_v6 }
 0x1fc   :  { %v231_v8 = vpack.c.b16 %v230_v7, %v230_v7 }
 0x1fe   :  { %232 = vrot.lane.b32.xlu2 %v231_v8, %s1513_s25 }
 0x258   :  { %v233_v9 = vpop.permute.xlu2 %232 }
 0x259   :  { %1320 = vmatmul.msk.bf16.vlgmr.msra.gmra.mxu2 %vm75_vm1, %v233_v9 }
 0x25a   :  { %828 = vmatpush.bf16.msra.mxu2 %v1543_v0 }
 0x260   :  { %v257_v10 = vpop.permute.xlu0 %256 }
 0x261   :  { %1322 = vmatmul.msk.bf16.vlgmr.msra.gmra.mxu3 %vm75_vm1, %v257_v10 }
 0x262   :  { %852 = vmatpush.bf16.msra.mxu3 %v1548_v1 }
 0x2dc   :  { %v246_v13 = vpop.f32.mrf.mxu2 }
 0x2dd   :  { %v250_v14 = vadd.f32 %v246_v13, %v229_v12  ;;  %v1329_v13 = vld [vmem:[%s1942_s1 + $0x5] sm:$0x1] }
 0x2df   :  { %1397 = vtanh.f32 %v250_v14  ;;  %v1323_v26 = vmul.f32 -1.442695, %v250_v14  ;;  %v399_v14 = vunpack.c.l.bf16 %v1329_v13 }
 0x2e4   :  { %v248_v17 = vpop.f32.mrf.mxu2  ;;  %v270_v18 = vpop.f32.mrf.mxu3 }
 0x2e5   :  { %v1398_v19 = vpop.eup %1397  ;;  %v274_v20 = vadd.f32 %v270_v18, %v253_v16 }
 0x2e6   :  { %297 = vrot.lane.b32.xlu1 %v1398_v19, %s1511_s23  ;;  %v1327_v19 = vld [vmem:[%s1941_s0 + $0x2] sm:$0x1] }
 0x2e7   :  { %1399 = vtanh.f32 %v274_v20  ;;  %v1324_v23 = vmul.f32 -1.442695, %v274_v20  ;;  %v375_v20 = vunpack.c.l.bf16 %v1327_v19 }
 0x2e9   :  { %1401 = vpow2.f32 %v1324_v23 }
 0x2ec   :  { %v272_v21 = vpop.f32.mrf.mxu3 }
 0x2ed   :  { %v1400_v22 = vpop.eup %1399 }
 0x2ee   :  { %334 = vrot.lane.b32.xlu2 %v1400_v22, %s1511_s23 }
 0x2ef   :  { %v1402_v24 = vpop.eup %1401 }
 0x2f0   :  { %v315_v25 = vadd.f32 1.0, %v1402_v24 }
 0x2f2   :  { %1403 = vrcp.f32 %v315_v25  ;;  %v327_v35 = vand.u32 2147483648, %v315_v25  ;;  %vm321_vm11 = vweird.f32 %v315_v25  ;;  %v325_v36 = vand.u32 2147483647, %v315_v25 }
 0x2f3   :  { %1405 = vpow2.f32 %v1323_v26 }
 0x2f4   :  { %v328_v39 = vor.u32 1.1754944e-38, %v327_v35  ;;  %vm326_vm13 = vcmp.eq.f32.partialorder %v325_v36, 8.507059e+37 }
 0x2f8   :  { %v1404_v27 = vpop.eup %1403 }
 0x2f9   :  { %v1406_v28 = vpop.eup %1405  ;;  %v317_v29 = vmul.f32 %v1404_v27, %v315_v25  ;;  %vm322_vm10 = vweird.f32 %v1404_v27 }
 0x2fa   :  { %v278_v30 = vadd.f32 1.0, %v1406_v28  ;;  %vm323_vm12 = vmor %vm321_vm11, %vm322_vm10 }
 0x2fb   :  { %v318_v31 = vsub.f32 1.0, %v317_v29 }
 0x2fc   :  { %1407 = vrcp.f32 %v278_v30  ;;  %v290_v46 = vand.u32 2147483648, %v278_v30  ;;  %vm284_vm15 = vweird.f32 %v278_v30  ;;  %v288_v47 = vand.u32 2147483647, %v278_v30 }
 0x2fd   :  { %v319_v32 = vmul.f32 %v1404_v27, %v318_v31 }
 0x2fe   :  { %v291_v49 = vor.u32 1.1754944e-38, %v290_v46  ;;  %vm289_vm3 = vcmp.eq.f32.partialorder %v288_v47, 8.507059e+37 }
 0x2ff   :  { %v320_v33 = vadd.f32 %v1404_v27, %v319_v32 }
 0x301   :  { %v324_v37 = vsel %vm323_vm12, %v1404_v27, %v320_v33 }
 0x302   :  { %v1408_v34 = vpop.eup %1407  ;;  %v329_v41 = vsel %vm326_vm13, %v328_v39, %v324_v37 }
 0x303   :  { %v280_v38 = vmul.f32 %v1408_v34, %v278_v30  ;;  %vm285_vm14 = vweird.f32 %v1408_v34  ;;  %v332_v53 = vmul.f32 %v329_v41, %v1578_v54 }
 0x304   :  { %vm286_vm2 = vmor %vm284_vm15, %vm285_vm14 }
 0x305   :  { %v281_v43 = vsub.f32 1.0, %v280_v38 }
 0x307   :  { %v282_v44 = vmul.f32 %v1408_v34, %v281_v43 }
 0x309   :  { %v283_v45 = vadd.f32 %v1408_v34, %v282_v44 }
 0x30b   :  { %v287_v48 = vsel %vm286_vm2, %v1408_v34, %v283_v45 }
 0x30c   :  { %v292_v51 = vsel %vm289_vm3, %v291_v49, %v287_v48 }
 0x30d   :  { %v295_v58 = vmul.f32 %v292_v51, %v1582_v59 }
 0x348   :  { %v335_v40 = vpop.permute.xlu2 %334 }
 0x349   :  { %v337_v42 = vmul.f32 %v335_v40, %v329_v41 }
 0x34b   :  { %339 = vrot.lane.b32.xlu1 %v337_v42, %s1510_s2 }
 0x358   :  { %v298_v50 = vpop.permute.xlu1 %297 }
 0x359   :  { %v300_v52 = vmul.f32 %v298_v50, %v292_v51 }
 0x35b   :  { %302 = vrot.lane.b32.xlu0 %v300_v52, %s1510_s2 }
 0x3bd   :  { %v340_v55 = vpop.permute.xlu1 %339 }
 0x3be   :  { %v1609_v56 = vadd.f32 %v340_v55, %v332_v53 }
 0x3c0   :  { %1409 = vtanh.f32 %v1609_v56 }
 0x3c6   :  { %v1410_v57 = vpop.eup %1409 }
 0x3c7   :  { %345 = vrot.lane.b32.xlu0 %v1410_v57, %s1512_s24 }
 0x3cd   :  { %v303_v60 = vpop.permute.xlu0 %302 }
 0x3ce   :  { %v1614_v61 = vadd.f32 %v303_v60, %v295_v58 }
 0x3d0   :  { %1411 = vtanh.f32 %v1614_v61 }
 0x3d6   :  { %v1412_v62 = vpop.eup %1411 }
 0x3d7   :  { %308 = vrot.lane.b32.xlu2 %v1412_v62, %s1512_s24 }
 0x431   :  { %v309_v2 = vpop.permute.xlu2 %308 }
 0x432   :  { %v311_v54 = vmul.f32 %v309_v2, %v292_v51 }
 0x434   :  { %v1618_v3 = vpack.c.bf16 %v311_v54, %v311_v54 }
 0x436   :  { %v376_v4 = vunpack.c.l.b16 %v1618_v3 }
 0x438   :  { %v377_v5 = vpack.c.b16 %v376_v4, %v376_v4 }
 0x439   :  { %v346_v7 = vpop.permute.xlu0 %345 }
 0x43a   :  { %v348_v8 = vmul.f32 %v346_v7, %v329_v41  ;;  %378 = vrot.lane.b32.xlu1 %v377_v5, %s1513_s25 }
 0x43c   :  { %v1622_v59 = vpack.c.bf16 %v348_v8, %v348_v8 }
 0x43e   :  { %v400_v9 = vunpack.c.l.b16 %v1622_v59 }
 0x440   :  { %v401_v10 = vpack.c.b16 %v400_v9, %v400_v9 }
 0x442   :  { %402 = vrot.lane.b32.xlu2 %v401_v10, %s1513_s25 }
 0x49c   :  { %v403_v11 = vpop.permute.xlu2 %402 }
 0x49d   :  { %1330 = vmatmul.msk.bf16.vlgmr.msrb.gmra.mxu1 %vm75_vm1, %v403_v11 }
 0x49e   :  { %998 = vmatpush.bf16.msrb.mxu1 %v1548_v1 }
 0x4ac   :  { %v379_v12 = vpop.permute.xlu1 %378 }
 0x4ad   :  { %1328 = vmatmul.msk.bf16.vlgmr.msrb.gmra.mxu0 %vm75_vm1, %v379_v12 }
 0x4ae   :  { %974 = vmatpush.bf16.msrb.mxu0 %v1543_v0 }
 0x51a   :  { %v416_v15 = vpop.f32.mrf.mxu1 }
 0x51b   :  { %v420_v16 = vadd.f32 %v416_v15, %v399_v14 }
 0x51d   :  { %1413 = vtanh.f32 %v420_v16  ;;  %v1332_v25 = vmul.f32 -1.442695, %v420_v16 }
 0x522   :  { %v418_v17 = vpop.f32.mrf.mxu1 }
 0x523   :  { %v1414_v18 = vpop.eup %1413  ;;  %v1337_v17 = vld [vmem:[%s1942_s1 + $0x4] sm:$0x1] }
 0x524   :  { %480 = vrot.lane.b32.xlu1 %v1414_v18, %s1511_s23  ;;  %v545_v18 = vunpack.c.l.bf16 %v1337_v17 }
 0x52a   :  { %v392_v21 = vpop.f32.mrf.mxu0 }
 0x52b   :  { %v396_v22 = vadd.f32 %v392_v21, %v375_v20 }
 0x52d   :  { %1415 = vtanh.f32 %v396_v22  ;;  %v1331_v28 = vmul.f32 -1.442695, %v396_v22 }
 0x52e   :  { %1417 = vpow2.f32 %v1332_v25 }
 0x532   :  { %v394_v23 = vpop.f32.mrf.mxu0 }
 0x533   :  { %v1416_v24 = vpop.eup %1415 }
 0x534   :  { %443 = vrot.lane.b32.xlu0 %v1416_v24, %s1511_s23  ;;  %v1418_v26 = vpop.eup %1417 }
 0x535   :  { %v461_v27 = vadd.f32 1.0, %v1418_v26 }
 0x537   :  { %1419 = vrcp.f32 %v461_v27  ;;  %v473_v37 = vand.u32 2147483648, %v461_v27  ;;  %vm467_vm5 = vweird.f32 %v461_v27  ;;  %v471_v38 = vand.u32 2147483647, %v461_v27 }
 0x538   :  { %1421 = vpow2.f32 %v1331_v28 }
 0x539   :  { %v474_v41 = vor.u32 1.1754944e-38, %v473_v37  ;;  %vm472_vm7 = vcmp.eq.f32.partialorder %v471_v38, 8.507059e+37 }
 0x53d   :  { %v1420_v29 = vpop.eup %1419 }
 0x53e   :  { %v1422_v30 = vpop.eup %1421  ;;  %v463_v31 = vmul.f32 %v1420_v29, %v461_v27  ;;  %vm468_vm4 = vweird.f32 %v1420_v29 }
 0x53f   :  { %v424_v32 = vadd.f32 1.0, %v1422_v30  ;;  %vm469_vm6 = vmor %vm467_vm5, %vm468_vm4 }
 0x540   :  { %v464_v33 = vsub.f32 1.0, %v463_v31 }
 0x541   :  { %1423 = vrcp.f32 %v424_v32  ;;  %v436_v48 = vand.u32 2147483648, %v424_v32  ;;  %vm430_vm9 = vweird.f32 %v424_v32  ;;  %v434_v49 = vand.u32 2147483647, %v424_v32 }
 0x542   :  { %v465_v34 = vmul.f32 %v1420_v29, %v464_v33 }
 0x543   :  { %v437_v51 = vor.u32 1.1754944e-38, %v436_v48  ;;  %vm435_vm11 = vcmp.eq.f32.partialorder %v434_v49, 8.507059e+37 }
 0x544   :  { %v466_v35 = vadd.f32 %v1420_v29, %v465_v34 }
 0x546   :  { %v470_v39 = vsel %vm469_vm6, %v1420_v29, %v466_v35 }
 0x547   :  { %v1424_v36 = vpop.eup %1423  ;;  %v475_v43 = vsel %vm472_vm7, %v474_v41, %v470_v39 }
 0x548   :  { %v426_v40 = vmul.f32 %v1424_v36, %v424_v32  ;;  %vm431_vm8 = vweird.f32 %v1424_v36  ;;  %v478_v62 = vmul.f32 %v475_v43, %v1609_v56 }
 0x549   :  { %vm432_vm10 = vmor %vm430_vm9, %vm431_vm8 }
 0x54a   :  { %v427_v45 = vsub.f32 1.0, %v426_v40 }
 0x54c   :  { %v428_v46 = vmul.f32 %v1424_v36, %v427_v45 }
 0x54e   :  { %v429_v47 = vadd.f32 %v1424_v36, %v428_v46 }
 0x550   :  { %v433_v50 = vsel %vm432_vm10, %v1424_v36, %v429_v47 }
 0x551   :  { %v438_v52 = vsel %vm435_vm11, %v437_v51, %v433_v50 }
 0x552   :  { %v441_v57 = vmul.f32 %v438_v52, %v1614_v61 }
 0x596   :  { %v481_v42 = vpop.permute.xlu1 %480 }
 0x597   :  { %v483_v44 = vmul.f32 %v481_v42, %v475_v43 }
 0x599   :  { %485 = vrot.lane.b32.xlu0 %v483_v44, %s1510_s2 }
 0x5a6   :  { %v444_v53 = vpop.permute.xlu0 %443 }
 0x5a7   :  { %v446_v55 = vmul.f32 %v444_v53, %v438_v52 }
 0x5a9   :  { %448 = vrot.lane.b32.xlu2 %v446_v55, %s1510_s2 }
 0x603   :  { %v449_v58 = vpop.permute.xlu2 %448 }
 0x604   :  { %v1641_v60 = vadd.f32 %v449_v58, %v441_v57 }
 0x606   :  { %1425 = vtanh.f32 %v1641_v60 }
 0x60b   :  { %v486_v2 = vpop.permute.xlu0 %485 }
 0x60c   :  { %v1426_v54 = vpop.eup %1425  ;;  %v1645_v4 = vadd.f32 %v486_v2, %v478_v62 }
 0x60d   :  { %454 = vrot.lane.b32.xlu1 %v1426_v54, %s1512_s24 }
 0x60e   :  { %1427 = vtanh.f32 %v1645_v4 }
 0x614   :  { %v1428_v5 = vpop.eup %1427 }
 0x615   :  { %491 = vrot.lane.b32.xlu2 %v1428_v5, %s1512_s24 }
 0x66f   :  { %v492_v7 = vpop.permute.xlu2 %491 }
 0x670   :  { %v494_v61 = vmul.f32 %v492_v7, %v475_v43 }
 0x672   :  { %v1650_v8 = vpack.c.bf16 %v494_v61, %v494_v61 }
 0x674   :  { %v546_v9 = vunpack.c.l.b16 %v1650_v8 }
 0x676   :  { %v547_v10 = vpack.c.b16 %v546_v9, %v546_v9 }
 0x678   :  { %548 = vrot.lane.b32.xlu1 %v547_v10, %s1513_s25 }
 0x67f   :  { %v455_v56 = vpop.permute.xlu1 %454 }
 0x680   :  { %v457_v11 = vmul.f32 %v455_v56, %v438_v52 }
 0x682   :  { %v1654_v12 = vpack.c.bf16 %v457_v11, %v457_v11 }
 0x684   :  { %v522_v13 = vunpack.c.l.b16 %v1654_v12 }
 0x686   :  { %v523_v14 = vpack.c.b16 %v522_v13, %v522_v13 }
 0x688   :  { %524 = vrot.lane.b32.xlu0 %v523_v14, %s1513_s25 }
 0x6ea   :  { %v549_v15 = vpop.permute.xlu1 %548 }
 0x6eb   :  { %1338 = vmatmul.msk.bf16.vlgmr.msrb.gmra.mxu3 %vm75_vm1, %v549_v15 }
 0x6ec   :  { %1143 = vmatpush.bf16.msrb.mxu3 %v1548_v1  ;;  %v1335_v1 = vld [vmem:[%s1941_s0 + $0x3] sm:$0x1] }
 0x6ed   :  { %v521_v23 = vunpack.c.l.bf16 %v1335_v1 }
 0x6fa   :  { %v525_v16 = vpop.permute.xlu0 %524 }
 0x6fb   :  { %1336 = vmatmul.msk.bf16.vlgmr.msrb.gmra.mxu2 %vm75_vm1, %v525_v16 }
 0x6fc   :  { %1120 = vmatpush.bf16.msrb.mxu2 %v1543_v0 }
 0x76e   :  { %v562_v19 = vpop.f32.mrf.mxu3 }
 0x76f   :  { %v566_v20 = vadd.f32 %v562_v19, %v545_v18 }
 0x771   :  { %1429 = vtanh.f32 %v566_v20  ;;  %v1340_v28 = vmul.f32 -1.442695, %v566_v20 }
 0x776   :  { %v564_v21 = vpop.f32.mrf.mxu3 }
 0x777   :  { %v1430_v22 = vpop.eup %1429  ;;  %v1343_v21 = vld [vmem:[%s1941_s0 + $0x4] sm:$0x1] }
 0x778   :  { %626 = vrot.lane.b32.xlu0 %v1430_v22, %s1511_s23  ;;  %v667_v22 = vunpack.c.l.bf16 %v1343_v21 }
 0x77e   :  { %v538_v24 = vpop.f32.mrf.mxu2 }
 0x77f   :  { %v542_v25 = vadd.f32 %v538_v24, %v521_v23  ;;  %v1345_v24 = vld [vmem:[%s1942_s1 + $0x3] sm:$0x1] }
 0x781   :  { %1431 = vtanh.f32 %v542_v25  ;;  %v1339_v27 = vmul.f32 -1.442695, %v542_v25  ;;  %v691_v25 = vunpack.c.l.bf16 %v1345_v24 }
 0x783   :  { %1433 = vpow2.f32 %v1339_v27 }
 0x784   :  { %1435 = vpow2.f32 %v1340_v28 }
 0x786   :  { %v540_v0 = vpop.f32.mrf.mxu2 }
 0x787   :  { %v1432_v26 = vpop.eup %1431 }
 0x788   :  { %589 = vrot.lane.b32.xlu2 %v1432_v26, %s1511_s23 }
 0x789   :  { %v1434_v29 = vpop.eup %1433 }
 0x78a   :  { %v570_v30 = vadd.f32 1.0, %v1434_v29  ;;  %v1436_v31 = vpop.eup %1435 }
 0x78b   :  { %v607_v32 = vadd.f32 1.0, %v1436_v31 }
 0x78c   :  { %1437 = vrcp.f32 %v570_v30  ;;  %v582_v41 = vand.u32 2147483648, %v570_v30  ;;  %vm576_vm13 = vweird.f32 %v570_v30  ;;  %v580_v42 = vand.u32 2147483647, %v570_v30 }
 0x78d   :  { %1439 = vrcp.f32 %v607_v32  ;;  %v619_v50 = vand.u32 2147483648, %v607_v32  ;;  %vm613_vm3 = vweird.f32 %v607_v32  ;;  %v617_v51 = vand.u32 2147483647, %v607_v32 }
 0x78e   :  { %v583_v45 = vor.u32 1.1754944e-38, %v582_v41  ;;  %vm581_vm15 = vcmp.eq.f32.partialorder %v580_v42, 8.507059e+37 }
 0x78f   :  { %v620_v53 = vor.u32 1.1754944e-38, %v619_v50  ;;  %vm618_vm5 = vcmp.eq.f32.partialorder %v617_v51, 8.507059e+37 }
 0x792   :  { %v1438_v33 = vpop.eup %1437 }
 0x793   :  { %v572_v34 = vmul.f32 %v1438_v33, %v570_v30  ;;  %v1440_v36 = vpop.eup %1439  ;;  %vm577_vm12 = vweird.f32 %v1438_v33 }
 0x794   :  { %v609_v38 = vmul.f32 %v1440_v36, %v607_v32  ;;  %vm578_vm14 = vmor %vm576_vm13, %vm577_vm12  ;;  %vm614_vm2 = vweird.f32 %v1440_v36 }
 0x795   :  { %v573_v35 = vsub.f32 1.0, %v572_v34  ;;  %vm615_vm4 = vmor %vm613_vm3, %vm614_vm2 }
 0x796   :  { %v610_v40 = vsub.f32 1.0, %v609_v38 }
 0x797   :  { %v574_v37 = vmul.f32 %v1438_v33, %v573_v35 }
 0x798   :  { %v611_v44 = vmul.f32 %v1440_v36, %v610_v40 }
 0x799   :  { %v575_v39 = vadd.f32 %v1438_v33, %v574_v37 }
 0x79a   :  { %v612_v49 = vadd.f32 %v1440_v36, %v611_v44 }
 0x79b   :  { %v579_v43 = vsel %vm578_vm14, %v1438_v33, %v575_v39 }
 0x79c   :  { %v584_v47 = vsel %vm581_vm15, %v583_v45, %v579_v43  ;;  %v616_v52 = vsel %vm615_vm4, %v1440_v36, %v612_v49 }
 0x79d   :  { %v621_v55 = vsel %vm618_vm5, %v620_v53, %v616_v52  ;;  %v587_v7 = vmul.f32 %v584_v47, %v1641_v60 }
 0x79e   :  { %v624_v62 = vmul.f32 %v621_v55, %v1645_v4 }
 0x7e2   :  { %v590_v46 = vpop.permute.xlu2 %589 }
 0x7e3   :  { %v592_v48 = vmul.f32 %v590_v46, %v584_v47 }
 0x7e5   :  { %594 = vrot.lane.b32.xlu1 %v592_v48, %s1510_s2 }
 0x7ea   :  { %v627_v57 = vpop.permute.xlu0 %626 }
 0x7eb   :  { %v629_v58 = vmul.f32 %v627_v57, %v621_v55 }
 0x7ed   :  { %631 = vrot.lane.b32.xlu2 %v629_v58, %s1510_s2 }
 0x847   :  { %v632_v2 = vpop.permute.xlu2 %631 }
 0x848   :  { %v1673_v54 = vadd.f32 %v632_v2, %v624_v62 }
 0x84a   :  { %1441 = vtanh.f32 %v1673_v54 }
 0x850   :  { %v1442_v5 = vpop.eup %1441 }
 0x851   :  { %637 = vrot.lane.b32.xlu1 %v1442_v5, %s1512_s24 }
 0x857   :  { %v595_v61 = vpop.permute.xlu1 %594 }
 0x858   :  { %v1678_v9 = vadd.f32 %v595_v61, %v587_v7 }
 0x85a   :  { %1443 = vtanh.f32 %v1678_v9 }
 0x860   :  { %v1444_v10 = vpop.eup %1443 }
 0x861   :  { %600 = vrot.lane.b32.xlu0 %v1444_v10, %s1512_s24 }
 0x8c3   :  { %v638_v56 = vpop.permute.xlu1 %637 }
 0x8c4   :  { %v640_v4 = vmul.f32 %v638_v56, %v621_v55 }
 0x8c6   :  { %v1682_v11 = vpack.c.bf16 %v640_v4, %v640_v4 }
 0x8c8   :  { %v692_v13 = vunpack.c.l.b16 %v1682_v11 }
 0x8ca   :  { %v693_v14 = vpack.c.b16 %v692_v13, %v692_v13 }
 0x8cc   :  { %694 = vrot.lane.b32.xlu0 %v693_v14, %s1513_s25 }
 0x8d3   :  { %v601_v15 = vpop.permute.xlu0 %600 }
 0x8d4   :  { %v603_v16 = vmul.f32 %v601_v15, %v584_v47 }
 0x8d6   :  { %v1686_v60 = vpack.c.bf16 %v603_v16, %v603_v16 }
 0x8d8   :  { %v668_v17 = vunpack.c.l.b16 %v1686_v60 }
 0x8da   :  { %v669_v18 = vpack.c.b16 %v668_v17, %v668_v17 }
 0x8dc   :  { %670 = vrot.lane.b32.xlu2 %v669_v18, %s1513_s25 }
 0x936   :  { %v671_v19 = vpop.permute.xlu2 %670 }
 0x937   :  { %1344 = vmatmul.msk.bf16.vlgmr.msra.gmra.mxu0 %vm75_vm1, %v671_v19 }
 0x93e   :  { %v695_v20 = vpop.permute.xlu0 %694 }
 0x93f   :  { %1346 = vmatmul.msk.bf16.vlgmr.msra.gmra.mxu1 %vm75_vm1, %v695_v20 }
 0x9b4   :  { %v684_v1 = vpop.f32.mrf.mxu0 }
 0x9b5   :  { %v688_v23 = vadd.f32 %v684_v1, %v667_v22 }
 0x9b7   :  { %1445 = vtanh.f32 %v688_v23  ;;  %v1347_v34 = vmul.f32 -1.442695, %v688_v23 }
 0x9bc   :  { %v686_v0 = vpop.f32.mrf.mxu0  ;;  %v708_v26 = vpop.f32.mrf.mxu1 }
 0x9bd   :  { %v1446_v27 = vpop.eup %1445  ;;  %v712_v28 = vadd.f32 %v708_v26, %v691_v25  ;;  %v1353_v0 = vld [vmem:[%s1942_s1 + $0x2] sm:$0x1] }
 0x9be   :  { %735 = vrot.lane.b32.xlu1 %v1446_v27, %s1511_s23  ;;  %v837_v26 = vunpack.c.l.bf16 %v1353_v0 }
 0x9bf   :  { %1447 = vtanh.f32 %v712_v28  ;;  %v1348_v31 = vmul.f32 -1.442695, %v712_v28 }
 0x9c1   :  { %1449 = vpow2.f32 %v1348_v31  ;;  %v1351_v31 = vld [vmem:[%s1941_s0 + $0x5] sm:$0x1] }
 0x9c4   :  { %v710_v29 = vpop.f32.mrf.mxu1 }
 0x9c5   :  { %v1448_v30 = vpop.eup %1447 }
 0x9c6   :  { %772 = vrot.lane.b32.xlu2 %v1448_v30, %s1511_s23 }
 0x9c7   :  { %v1450_v32 = vpop.eup %1449 }
 0x9c8   :  { %v753_v33 = vadd.f32 1.0, %v1450_v32  ;;  %v813_v32 = vunpack.c.l.bf16 %v1351_v31 }
 0x9ca   :  { %1451 = vrcp.f32 %v753_v33  ;;  %v765_v43 = vand.u32 2147483648, %v753_v33  ;;  %vm759_vm7 = vweird.f32 %v753_v33  ;;  %v763_v44 = vand.u32 2147483647, %v753_v33 }
 0x9cb   :  { %1453 = vpow2.f32 %v1347_v34 }
 0x9cc   :  { %v766_v47 = vor.u32 1.1754944e-38, %v765_v43  ;;  %vm764_vm9 = vcmp.eq.f32.partialorder %v763_v44, 8.507059e+37 }
 0x9d0   :  { %v1452_v35 = vpop.eup %1451 }
 0x9d1   :  { %v1454_v36 = vpop.eup %1453  ;;  %v755_v37 = vmul.f32 %v1452_v35, %v753_v33  ;;  %vm760_vm6 = vweird.f32 %v1452_v35 }
 0x9d2   :  { %v716_v38 = vadd.f32 1.0, %v1454_v36  ;;  %vm761_vm8 = vmor %vm759_vm7, %vm760_vm6 }
 0x9d3   :  { %v756_v39 = vsub.f32 1.0, %v755_v37 }
 0x9d4   :  { %1455 = vrcp.f32 %v716_v38  ;;  %v728_v55 = vand.u32 2147483648, %v716_v38  ;;  %vm722_vm11 = vweird.f32 %v716_v38  ;;  %v726_v57 = vand.u32 2147483647, %v716_v38 }
 0x9d5   :  { %v757_v40 = vmul.f32 %v1452_v35, %v756_v39 }
 0x9d6   :  { %v729_v62 = vor.u32 1.1754944e-38, %v728_v55  ;;  %vm727_vm13 = vcmp.eq.f32.partialorder %v726_v57, 8.507059e+37 }
 0x9d7   :  { %v758_v41 = vadd.f32 %v1452_v35, %v757_v40 }
 0x9d9   :  { %v762_v45 = vsel %vm761_vm8, %v1452_v35, %v758_v41 }
 0x9da   :  { %v1456_v42 = vpop.eup %1455  ;;  %v767_v49 = vsel %vm764_vm9, %v766_v47, %v762_v45 }
 0x9db   :  { %v718_v46 = vmul.f32 %v1456_v42, %v716_v38  ;;  %vm723_vm10 = vweird.f32 %v1456_v42  ;;  %v770_v61 = vmul.f32 %v767_v49, %v1673_v54 }
 0x9dc   :  { %vm724_vm12 = vmor %vm722_vm11, %vm723_vm10 }
 0x9dd   :  { %v719_v51 = vsub.f32 1.0, %v718_v46 }
 0x9df   :  { %v720_v52 = vmul.f32 %v1456_v42, %v719_v51 }
 0x9e1   :  { %v721_v53 = vadd.f32 %v1456_v42, %v720_v52 }
 0x9e3   :  { %v725_v58 = vsel %vm724_vm12, %v1456_v42, %v721_v53 }
 0x9e4   :  { %v730_v5 = vsel %vm727_vm13, %v729_v62, %v725_v58 }
 0x9e5   :  { %v733_v13 = vmul.f32 %v730_v5, %v1678_v9 }
 0xa20   :  { %v773_v48 = vpop.permute.xlu2 %772 }
 0xa21   :  { %v775_v50 = vmul.f32 %v773_v48, %v767_v49 }
 0xa23   :  { %777 = vrot.lane.b32.xlu1 %v775_v50, %s1510_s2 }
 0xa30   :  { %v736_v2 = vpop.permute.xlu1 %735 }
 0xa31   :  { %v738_v7 = vmul.f32 %v736_v2, %v730_v5 }
 0xa33   :  { %740 = vrot.lane.b32.xlu0 %v738_v7, %s1510_s2 }
 0xa95   :  { %v778_v10 = vpop.permute.xlu1 %777 }
 0xa96   :  { %v1703_v56 = vadd.f32 %v778_v10, %v770_v61 }
 0xa98   :  { %1457 = vtanh.f32 %v1703_v56 }
 0xa9e   :  { %v1458_v4 = vpop.eup %1457 }
 0xa9f   :  { %783 = vrot.lane.b32.xlu0 %v1458_v4, %s1512_s24 }
 0xaa5   :  { %v741_v14 = vpop.permute.xlu0 %740 }
 0xaa6   :  { %v1708_v15 = vadd.f32 %v741_v14, %v733_v13 }
 0xaa8   :  { %1459 = vtanh.f32 %v1708_v15 }
 0xaae   :  { %v1460_v16 = vpop.eup %1459 }
 0xaaf   :  { %746 = vrot.lane.b32.xlu2 %v1460_v16, %s1512_s24 }
 0xb09   :  { %v747_v17 = vpop.permute.xlu2 %746 }
 0xb0a   :  { %v749_v54 = vmul.f32 %v747_v17, %v730_v5 }
 0xb0c   :  { %v1712_v18 = vpack.c.bf16 %v749_v54, %v749_v54 }
 0xb0e   :  { %v814_v19 = vunpack.c.l.b16 %v1712_v18 }
 0xb10   :  { %v815_v20 = vpack.c.b16 %v814_v19, %v814_v19 }
 0xb11   :  { %v784_v21 = vpop.permute.xlu0 %783 }
 0xb12   :  { %v786_v22 = vmul.f32 %v784_v21, %v767_v49  ;;  %816 = vrot.lane.b32.xlu1 %v815_v20, %s1513_s25 }
 0xb14   :  { %v1716_v9 = vpack.c.bf16 %v786_v22, %v786_v22 }
 0xb16   :  { %v838_v1 = vunpack.c.l.b16 %v1716_v9 }
 0xb18   :  { %v839_v23 = vpack.c.b16 %v838_v1, %v838_v1 }
 0xb1a   :  { %840 = vrot.lane.b32.xlu2 %v839_v23, %s1513_s25 }
 0xb74   :  { %v841_v24 = vpop.permute.xlu2 %840 }
 0xb75   :  { %1354 = vmatmul.msk.bf16.vlgmr.msra.gmra.mxu3 %vm75_vm1, %v841_v24 }
 0xb84   :  { %v817_v25 = vpop.permute.xlu1 %816 }
 0xb85   :  { %1352 = vmatmul.msk.bf16.vlgmr.msra.gmra.mxu2 %vm75_vm1, %v817_v25 }
 0xbf8   :  { %v854_v27 = vpop.f32.mrf.mxu3 }
 0xbf9   :  { %v858_v28 = vadd.f32 %v854_v27, %v837_v26 }
 0xbfb   :  { %1461 = vtanh.f32 %v858_v28  ;;  %v1356_v37 = vmul.f32 -1.442695, %v858_v28 }
 0xc00   :  { %v856_v29 = vpop.f32.mrf.mxu3 }
 0xc01   :  { %v1462_v30 = vpop.eup %1461 }
 0xc02   :  { %918 = vrot.lane.b32.xlu1 %v1462_v30, %s1511_s23 }
 0xc08   :  { %v830_v33 = vpop.f32.mrf.mxu2 }
 0xc09   :  { %v834_v34 = vadd.f32 %v830_v33, %v813_v32  ;;  %v1361_v33 = vld [vmem:[%s1942_s1 + $0x1] sm:$0x1] }
 0xc0b   :  { %1463 = vtanh.f32 %v834_v34  ;;  %v1355_v40 = vmul.f32 -1.442695, %v834_v34  ;;  %v983_v34 = vunpack.c.l.bf16 %v1361_v33 }
 0xc0c   :  { %1465 = vpow2.f32 %v1356_v37 }
 0xc10   :  { %v832_v35 = vpop.f32.mrf.mxu2 }
 0xc11   :  { %v1464_v36 = vpop.eup %1463 }
 0xc12   :  { %881 = vrot.lane.b32.xlu0 %v1464_v36, %s1511_s23  ;;  %v1466_v38 = vpop.eup %1465 }
 0xc13   :  { %v899_v39 = vadd.f32 1.0, %v1466_v38 }
 0xc15   :  { %1467 = vrcp.f32 %v899_v39  ;;  %v911_v49 = vand.u32 2147483648, %v899_v39  ;;  %vm905_vm15 = vweird.f32 %v899_v39  ;;  %v909_v50 = vand.u32 2147483647, %v899_v39 }
 0xc16   :  { %1469 = vpow2.f32 %v1355_v40 }
 0xc17   :  { %v912_v53 = vor.u32 1.1754944e-38, %v911_v49  ;;  %vm910_vm3 = vcmp.eq.f32.partialorder %v909_v50, 8.507059e+37 }
 0xc1b   :  { %v1468_v41 = vpop.eup %1467 }
 0xc1c   :  { %v1470_v42 = vpop.eup %1469  ;;  %v901_v43 = vmul.f32 %v1468_v41, %v899_v39  ;;  %vm906_vm14 = vweird.f32 %v1468_v41  ;;  %v1359_v39 = vld [vmem:[%s1941_s0 + $0x6] sm:$0x1] }
 0xc1d   :  { %v862_v44 = vadd.f32 1.0, %v1470_v42  ;;  %vm907_vm2 = vmor %vm905_vm15, %vm906_vm14  ;;  %v959_v40 = vunpack.c.l.bf16 %v1359_v39 }
 0xc1e   :  { %v902_v45 = vsub.f32 1.0, %v901_v43 }
 0xc1f   :  { %1471 = vrcp.f32 %v862_v44  ;;  %v874_v7 = vand.u32 2147483648, %v862_v44  ;;  %vm868_vm5 = vweird.f32 %v862_v44  ;;  %v872_v61 = vand.u32 2147483647, %v862_v44 }
 0xc20   :  { %v903_v46 = vmul.f32 %v1468_v41, %v902_v45 }
 0xc21   :  { %v875_v4 = vor.u32 1.1754944e-38, %v874_v7  ;;  %vm873_vm7 = vcmp.eq.f32.partialorder %v872_v61, 8.507059e+37 }
 0xc22   :  { %v904_v47 = vadd.f32 %v1468_v41, %v903_v46 }
 0xc24   :  { %v908_v51 = vsel %vm907_vm2, %v1468_v41, %v904_v47 }
 0xc25   :  { %v1472_v48 = vpop.eup %1471  ;;  %v913_v57 = vsel %vm910_vm3, %v912_v53, %v908_v51 }
 0xc26   :  { %v864_v52 = vmul.f32 %v1472_v48, %v862_v44  ;;  %vm869_vm4 = vweird.f32 %v1472_v48  ;;  %v916_v20 = vmul.f32 %v913_v57, %v1703_v56 }
 0xc27   :  { %vm870_vm6 = vmor %vm868_vm5, %vm869_vm4  ;;  %vm205_vm5 = vcmask 1040384  }
 0xc28   :  { %v865_v62 = vsub.f32 1.0, %v864_v52 }
 0xc2a   :  { %v866_v2 = vmul.f32 %v1472_v48, %v865_v62 }
 0xc2c   :  { %v867_v5 = vadd.f32 %v1472_v48, %v866_v2 }
 0xc2e   :  { %v871_v10 = vsel %vm870_vm6, %v1472_v48, %v867_v5 }
 0xc2f   :  { %v876_v13 = vsel %vm873_vm7, %v875_v4, %v871_v10 }
 0xc30   :  { %v879_v17 = vmul.f32 %v876_v13, %v1708_v15 }
 0xc74   :  { %v919_v55 = vpop.permute.xlu1 %918 }
 0xc75   :  { %v921_v58 = vmul.f32 %v919_v55, %v913_v57 }
 0xc77   :  { %923 = vrot.lane.b32.xlu0 %v921_v58, %s1510_s2 }
 0xc84   :  { %v882_v14 = vpop.permute.xlu0 %881 }
 0xc85   :  { %v884_v16 = vmul.f32 %v882_v14, %v876_v13 }
 0xc87   :  { %886 = vrot.lane.b32.xlu2 %v884_v16, %s1510_s2 }
 0xce1   :  { %v887_v54 = vpop.permute.xlu2 %886 }
 0xce2   :  { %v1733_v19 = vadd.f32 %v887_v54, %v879_v17 }
 0xce4   :  { %1473 = vtanh.f32 %v1733_v19 }
 0xce9   :  { %v924_v21 = vpop.permute.xlu0 %923 }
 0xcea   :  { %v1474_v22 = vpop.eup %1473  ;;  %v1737_v1 = vadd.f32 %v924_v21, %v916_v20 }
 0xceb   :  { %892 = vrot.lane.b32.xlu1 %v1474_v22, %s1512_s24 }
 0xcec   :  { %1475 = vtanh.f32 %v1737_v1 }
 0xcf2   :  { %v1476_v23 = vpop.eup %1475 }
 0xcf3   :  { %929 = vrot.lane.b32.xlu2 %v1476_v23, %s1512_s24 }
 0xd4d   :  { %v930_v24 = vpop.permute.xlu2 %929 }
 0xd4e   :  { %v932_v15 = vmul.f32 %v930_v24, %v913_v57 }
 0xd50   :  { %v1742_v25 = vpack.c.bf16 %v932_v15, %v932_v15 }
 0xd52   :  { %v984_v0 = vunpack.c.l.b16 %v1742_v25 }
 0xd54   :  { %v985_v26 = vpack.c.b16 %v984_v0, %v984_v0 }
 0xd56   :  { %986 = vrot.lane.b32.xlu1 %v985_v26, %s1513_s25 }
 0xd5d   :  { %v893_v56 = vpop.permute.xlu1 %892 }
 0xd5e   :  { %v895_v27 = vmul.f32 %v893_v56, %v876_v13 }
 0xd60   :  { %v1746_v28 = vpack.c.bf16 %v895_v27, %v895_v27 }
 0xd62   :  { %v960_v29 = vunpack.c.l.b16 %v1746_v28 }
 0xd64   :  { %v961_v30 = vpack.c.b16 %v960_v29, %v960_v29 }
 0xd66   :  { %962 = vrot.lane.b32.xlu0 %v961_v30, %s1513_s25 }
 0xdc8   :  { %v987_v31 = vpop.permute.xlu1 %986 }
 0xdc9   :  { %1362 = vmatmul.msk.bf16.vlgmr.msrb.gmra.mxu1 %vm75_vm1, %v987_v31 }
 0xdd8   :  { %v963_v32 = vpop.permute.xlu0 %962 }
 0xdd9   :  { %1360 = vmatmul.msk.bf16.vlgmr.msrb.gmra.mxu0 %vm75_vm1, %v963_v32 }
 0xe46   :  { %v1000_v35 = vpop.f32.mrf.mxu1 }
 0xe47   :  { %v1004_v36 = vadd.f32 %v1000_v35, %v983_v34 }
 0xe49   :  { %1477 = vtanh.f32 %v1004_v36  ;;  %v1364_v46 = vmul.f32 -1.442695, %v1004_v36 }
 0xe4e   :  { %v1002_v37 = vpop.f32.mrf.mxu1 }
 0xe4f   :  { %v1478_v38 = vpop.eup %1477 }
 0xe50   :  { %1064 = vrot.lane.b32.xlu0 %v1478_v38, %s1511_s23 }
 0xe56   :  { %v976_v41 = vpop.f32.mrf.mxu0 }
 0xe57   :  { %v980_v42 = vadd.f32 %v976_v41, %v959_v40 }
 0xe59   :  { %1479 = vtanh.f32 %v980_v42  ;;  %v1363_v45 = vmul.f32 -1.442695, %v980_v42 }
 0xe5b   :  { %1481 = vpow2.f32 %v1363_v45 }
 0xe5c   :  { %1483 = vpow2.f32 %v1364_v46 }
 0xe5e   :  { %v978_v43 = vpop.f32.mrf.mxu0 }
 0xe5f   :  { %v1480_v44 = vpop.eup %1479  ;;  %v1367_v43 = vld [vmem:[%s1941_s0 + $0x7] sm:$0x1] }
 0xe60   :  { %1027 = vrot.lane.b32.xlu2 %v1480_v44, %s1511_s23  ;;  %v1105_v44 = vunpack.c.l.bf16 %v1367_v43 }
 0xe61   :  { %v1482_v47 = vpop.eup %1481 }
 0xe62   :  { %v1008_v48 = vadd.f32 1.0, %v1482_v47  ;;  %v1484_v49 = vpop.eup %1483  ;;  %v1127_v47 = vld [vmem:[%s1942_s1] sm:$0x1] }
 0xe63   :  { %v1045_v50 = vadd.f32 1.0, %v1484_v49 }
 0xe64   :  { %1485 = vrcp.f32 %v1008_v48  ;;  %v1020_v5 = vand.u32 2147483648, %v1008_v48  ;;  %vm1014_vm9 = vweird.f32 %v1008_v48  ;;  %v1018_v7 = vand.u32 2147483647, %v1008_v48 }
 0xe65   :  { %1487 = vrcp.f32 %v1045_v50  ;;  %v1057_v54 = vand.u32 2147483648, %v1045_v50  ;;  %vm1051_vm13 = vweird.f32 %v1045_v50  ;;  %v1055_v20 = vand.u32 2147483647, %v1045_v50 }
 0xe66   :  { %v1021_v4 = vor.u32 1.1754944e-38, %v1020_v5  ;;  %vm1019_vm11 = vcmp.eq.f32.partialorder %v1018_v7, 8.507059e+37 }
 0xe67   :  { %v1058_v22 = vor.u32 1.1754944e-38, %v1057_v54  ;;  %vm1056_vm15 = vcmp.eq.f32.partialorder %v1055_v20, 8.507059e+37 }
 0xe6a   :  { %v1486_v51 = vpop.eup %1485 }
 0xe6b   :  { %v1010_v52 = vmul.f32 %v1486_v51, %v1008_v48  ;;  %v1488_v55 = vpop.eup %1487  ;;  %vm1015_vm8 = vweird.f32 %v1486_v51  ;;  %v1128_v48 = vunpack.c.l.bf16 %v1127_v47 }
 0xe6c   :  { %v1047_v58 = vmul.f32 %v1488_v55, %v1045_v50  ;;  %vm1016_vm10 = vmor %vm1014_vm9, %vm1015_vm8  ;;  %vm1052_vm12 = vweird.f32 %v1488_v55 }
 0xe6d   :  { %v1011_v53 = vsub.f32 1.0, %v1010_v52  ;;  %vm1053_vm14 = vmor %vm1051_vm13, %vm1052_vm12 }
 0xe6e   :  { %v1048_v2 = vsub.f32 1.0, %v1047_v58 }
 0xe6f   :  { %v1012_v57 = vmul.f32 %v1486_v51, %v1011_v53 }
 0xe70   :  { %v1049_v10 = vmul.f32 %v1488_v55, %v1048_v2 }
 0xe71   :  { %v1013_v62 = vadd.f32 %v1486_v51, %v1012_v57 }
 0xe72   :  { %v1050_v17 = vadd.f32 %v1488_v55, %v1049_v10 }
 0xe73   :  { %v1017_v61 = vsel %vm1016_vm10, %v1486_v51, %v1013_v62  ;;  %vm213_vm10 = vcmask 122880  }
 0xe74   :  { %v1022_v14 = vsel %vm1019_vm11, %v1021_v4, %v1017_v61  ;;  %v1054_v21 = vsel %vm1053_vm14, %v1488_v55, %v1050_v17 }
 0xe75   :  { %v1059_v23 = vsel %vm1056_vm15, %v1058_v22, %v1054_v21  ;;  %v1025_v29 = vmul.f32 %v1022_v14, %v1733_v19 }
 0xe76   :  { %v1062_v0 = vmul.f32 %v1059_v23, %v1737_v1 }
 0xeba   :  { %v1028_v13 = vpop.permute.xlu2 %1027 }
 0xebb   :  { %v1030_v16 = vmul.f32 %v1028_v13, %v1022_v14 }
 0xebd   :  { %1032 = vrot.lane.b32.xlu1 %v1030_v16, %s1510_s2 }
 0xec2   :  { %v1065_v24 = vpop.permute.xlu0 %1064 }
 0xec3   :  { %v1067_v15 = vmul.f32 %v1065_v24, %v1059_v23 }
 0xec5   :  { %1069 = vrot.lane.b32.xlu2 %v1067_v15, %s1510_s2 }
 0xf1f   :  { %v1070_v26 = vpop.permute.xlu2 %1069 }
 0xf20   :  { %v1763_v56 = vadd.f32 %v1070_v26, %v1062_v0 }
 0xf22   :  { %1489 = vtanh.f32 %v1763_v56 }
 0xf28   :  { %v1490_v27 = vpop.eup %1489 }
 0xf29   :  { %1075 = vrot.lane.b32.xlu1 %v1490_v27, %s1512_s24  ;;  %v204_v27 = vrot.slane %v1590_v6, 3 }
 0xf2f   :  { %v1033_v30 = vpop.permute.xlu1 %1032 }
 0xf30   :  { %v1768_v31 = vadd.f32 %v1033_v30, %v1025_v29  ;;  %v208_v30 = vsel %vm205_vm5, %v1590_v6, %v204_v27  ;;  %v643_v6 = vrot.slane %v1686_v60, 3 }
 0xf32   :  { %1491 = vtanh.f32 %v1768_v31 }
 0xf38   :  { %v1492_v32 = vpop.eup %1491 }
 0xf39   :  { %1038 = vrot.lane.b32.xlu0 %v1492_v32, %s1512_s24 }
 0xf9b   :  { %v1076_v33 = vpop.permute.xlu1 %1075 }
 0xf9c   :  { %v1078_v1 = vmul.f32 %v1076_v33, %v1059_v23 }
 0xf9e   :  { %v1772_v34 = vpack.c.bf16 %v1078_v1, %v1078_v1 }
 0xfa0   :  { %v1129_v35 = vunpack.c.l.b16 %v1772_v34 }
 0xfa2   :  { %v1130_v36 = vpack.c.b16 %v1129_v35, %v1129_v35  ;;  %v363_v35 = vrot.slane %v1622_v59, 3 }
 0xfa4   :  { %1131 = vrot.lane.b32.xlu0 %v1130_v36, %s1513_s25 }
 0xfab   :  { %v1039_v37 = vpop.permute.xlu0 %1038 }
 0xfac   :  { %v1041_v38 = vmul.f32 %v1039_v37, %v1022_v14 }
 0xfae   :  { %v1776_v19 = vpack.c.bf16 %v1041_v38, %v1041_v38 }
 0xfb0   :  { %v1106_v39 = vunpack.c.l.b16 %v1776_v19 }
 0xfb2   :  { %v1107_v40 = vpack.c.b16 %v1106_v39, %v1106_v39 }
 0xfb4   :  { %1108 = vrot.lane.b32.xlu2 %v1107_v40, %s1513_s25  ;;  %v366_v40 = vsel %vm205_vm5, %v1622_v59, %v363_v35  ;;  %v1081_v59 = vrot.slane %v1776_v19, 3 }
0x100e   :  { %v1109_v41 = vpop.permute.xlu2 %1108 }
0x100f   :  { %1368 = vmatmul.msk.bf16.vlgmr.msrb.gmra.mxu2 %vm75_vm1, %v1109_v41  ;;  %v646_v41 = vsel %vm205_vm5, %v1686_v60, %v643_v6 }
0x1016   :  { %v1132_v42 = vpop.permute.xlu0 %1131 }
0x1017   :  { %1369 = vmatmul.msk.bf16.vlgmr.msrb.gmra.mxu3 %vm75_vm1, %v1132_v42  ;;  %v801_v42 = vrot.slane %v1716_v9, 3 }
0x1019   :  { %v804_v43 = vsel %vm205_vm5, %v1716_v9, %v801_v42 }
0x1092   :  { %v1122_v45 = vpop.f32.mrf.mxu2 }
0x1093   :  { %v1126_v46 = vadd.f32 %v1122_v45, %v1105_v44  ;;  %v1084_v44 = vsel %vm205_vm5, %v1776_v19, %v1081_v59  ;;  %v351_v19 = vrot.slane %v1618_v3, 3 }
0x1095   :  { %1493 = vtanh.f32 %v1126_v46  ;;  %v1370_v2 = vmul.f32 -1.442695, %v1126_v46 }
0x109a   :  { %v1124_v49 = vpop.f32.mrf.mxu2  ;;  %v1145_v50 = vpop.f32.mrf.mxu3 }
0x109b   :  { %v1494_v51 = vpop.eup %1493  ;;  %v1149_v52 = vadd.f32 %v1145_v50, %v1128_v48 }
0x109c   :  { %1172 = vrot.lane.b32.xlu1 %v1494_v51, %s1511_s23  ;;  %v354_v51 = vsel %vm205_vm5, %v1618_v3, %v351_v19  ;;  %v217_v3 = vrot.slane %v1586_v63, 3 }
0x109d   :  { %1495 = vtanh.f32 %v1149_v52  ;;  %v1371_v57 = vmul.f32 -1.442695, %v1149_v52  ;;  %v509_v52 = vrot.slane %v1650_v8, 3 }
0x109f   :  { %1497 = vpow2.f32 %v1371_v57  ;;  %v789_v57 = vrot.slane %v1712_v18, 3 }
0x10a2   :  { %v1147_v53 = vpop.f32.mrf.mxu3 }
0x10a3   :  { %v1496_v55 = vpop.eup %1495 }
0x10a4   :  { %1209 = vrot.lane.b32.xlu2 %v1496_v55, %s1511_s23 }
0x10a5   :  { %v1498_v58 = vpop.eup %1497 }
0x10a6   :  { %v1190_v62 = vadd.f32 1.0, %v1498_v58 }
0x10a8   :  { %1499 = vrcp.f32 %v1190_v62  ;;  %v1202_v17 = vand.u32 2147483648, %v1190_v62  ;;  %vm1196_vm2 = vweird.f32 %v1190_v62  ;;  %v1200_v54 = vand.u32 2147483647, %v1190_v62 }
0x10a9   :  { %1501 = vpow2.f32 %v1370_v2  ;;  %v497_v2 = vrot.slane %v1654_v12, 3 }
0x10aa   :  { %v1203_v22 = vor.u32 1.1754944e-38, %v1202_v17  ;;  %vm1201_vm4 = vcmp.eq.f32.partialorder %v1200_v54, 8.507059e+37 }
0x10ae   :  { %v1500_v5 = vpop.eup %1499 }
0x10af   :  { %v1502_v7 = vpop.eup %1501  ;;  %v1192_v61 = vmul.f32 %v1500_v5, %v1190_v62  ;;  %vm1197_vm1 = vweird.f32 %v1500_v5  ;;  %v792_v62 = vsel %vm205_vm5, %v1712_v18, %v789_v57 }
0x10b0   :  { %v1153_v10 = vadd.f32 1.0, %v1502_v7  ;;  %vm1198_vm3 = vmor %vm1196_vm2, %vm1197_vm1 }
0x10b1   :  { %v1193_v4 = vsub.f32 1.0, %v1192_v61  ;;  %v655_v61 = vrot.slane %v1682_v11, 3 }
0x10b2   :  { %1503 = vrcp.f32 %v1153_v10  ;;  %v1165_v32 = vand.u32 2147483648, %v1153_v10  ;;  %vm1159_vm7 = vweird.f32 %v1153_v10  ;;  %v1163_v33 = vand.u32 2147483647, %v1153_v10 }
0x10b3   :  { %v1194_v13 = vmul.f32 %v1500_v5, %v1193_v4  ;;  %v935_v4 = vrot.slane %v1746_v28, 3 }
0x10b4   :  { %v1166_v36 = vor.u32 1.1754944e-38, %v1165_v32  ;;  %vm1164_vm9 = vcmp.eq.f32.partialorder %v1163_v33, 8.507059e+37 }
0x10b5   :  { %v1195_v14 = vadd.f32 %v1500_v5, %v1194_v13  ;;  %v938_v13 = vsel %vm205_vm5, %v1746_v28, %v935_v4 }
0x10b7   :  { %v1199_v20 = vsel %vm1198_vm3, %v1500_v5, %v1195_v14  ;;  %v947_v5 = vrot.slane %v1742_v25, 3 }
0x10b8   :  { %v1504_v16 = vpop.eup %1503  ;;  %v1790_v24 = vsel %vm1201_vm4, %v1203_v22, %v1199_v20 }
0x10b9   :  { %v1155_v21 = vmul.f32 %v1504_v16, %v1153_v10  ;;  %vm1160_vm6 = vweird.f32 %v1504_v16  ;;  %v1207_v45 = vmul.f32 %v1790_v24, %v1763_v56  ;;  %v950_v18 = vsel %vm205_vm5, %v1742_v25, %v947_v5 }
0x10ba   :  { %vm1161_vm8 = vmor %vm1159_vm7, %vm1160_vm6  ;;  %v658_v10 = vsel %vm205_vm5, %v1682_v11, %v655_v61 }
0x10bb   :  { %v1156_v0 = vsub.f32 1.0, %v1155_v21 }
0x10bd   :  { %v1157_v26 = vmul.f32 %v1504_v16, %v1156_v0 }
0x10bf   :  { %v1158_v29 = vadd.f32 %v1504_v16, %v1157_v26 }
0x10c1   :  { %v1162_v1 = vsel %vm1161_vm8, %v1504_v16, %v1158_v29 }
0x10c2   :  { %v1799_v38 = vsel %vm1164_vm9, %v1166_v36, %v1162_v1 }
0x10c3   :  { %v1170_v56 = vmul.f32 %v1799_v38, %v1768_v31  ;;  %v512_v31 = vsel %vm205_vm5, %v1650_v8, %v509_v52  ;;  %v220_v8 = vsel %vm205_vm5, %v1586_v63, %v217_v3  ;;  %v500_v63 = vsel %vm205_vm5, %v1654_v12, %v497_v2 }
0x10c4   :  { %v1093_v12 = vrot.slane %v1772_v34, 3 }
0x10c6   :  { %v1096_v25 = vsel %vm205_vm5, %v1772_v34, %v1093_v12 }
0x10fe   :  { %v1210_v23 = vpop.permute.xlu2 %1209 }
0x10ff   :  { %v1212_v15 = vmul.f32 %v1210_v23, %v1790_v24 }
0x1101   :  { %1214 = vrot.lane.b32.xlu1 %v1212_v15, %s1510_s2 }
0x1109   :  { %210 = vrot.lane.b32.xlu1 %v208_v30, %s1513_s25 }
0x110e   :  { %v1173_v37 = vpop.permute.xlu1 %1172 }
0x110f   :  { %v1175_v39 = vmul.f32 %v1173_v37, %v1799_v38 }
0x1111   :  { %1177 = vrot.lane.b32.xlu0 %v1175_v39, %s1510_s2  ;;  %368 = vrot.lane.b32.xlu1 %v366_v40, %s1513_s25 }
0x1119   :  { %648 = vrot.lane.b32.xlu1 %v646_v41, %s1513_s25 }
0x1121   :  { %806 = vrot.lane.b32.xlu1 %v804_v43, %s1513_s25 }
0x1129   :  { %1086 = vrot.lane.b32.xlu1 %v1084_v44, %s1513_s25 }
0x1173   :  { %v1215_v60 = vpop.permute.xlu1 %1214 }
0x1174   :  { %v1820_v46 = vadd.f32 %v1215_v60, %v1207_v45 }
0x1176   :  { %1505 = vtanh.f32 %v1820_v46 }
0x117b   :  { %v211_v47 = vpop.permute.xlu1 %210 }
0x117c   :  { %v1506_v9 = vpop.eup %1505  ;;  %214 = vst.msk [vmem:[%s1943_s3] sm:$0x1] %vm213_vm10, %v211_v47 }
0x117d   :  { %1220 = vrot.lane.b32.xlu0 %v1506_v9, %s1512_s24 }
0x1183   :  { %v369_v48 = vpop.permute.xlu1 %368  ;;  %v1178_v49 = vpop.permute.xlu0 %1177 }
0x1184   :  { %1326 = vst.msk [vmem:[%s1944_s4 + $0x6] sm:$0x1] %vm213_vm10, %v369_v48  ;;  %v1180_v50 = vadd.f32 %v1178_v49, %v1170_v56 }
0x1185   :  { %356 = vrot.lane.b32.xlu0 %v354_v51, %s1513_s25 }
0x1186   :  { %1507 = vtanh.f32 %v1180_v50 }
0x118b   :  { %v649_v53 = vpop.permute.xlu1 %648 }
0x118c   :  { %v1508_v55 = vpop.eup %1507  ;;  %1341 = vst.msk [vmem:[%s1943_s3 + $0x3] sm:$0x1] %vm213_vm10, %v649_v53 }
0x118d   :  { %514 = vrot.lane.b32.xlu0 %v512_v31, %s1513_s25  ;;  %1183 = vrot.lane.b32.xlu2 %v1508_v55, %s1512_s24 }
0x1193   :  { %v807_v58 = vpop.permute.xlu1 %806 }
0x1194   :  { %1350 = vst.msk [vmem:[%s1944_s4 + $0x3] sm:$0x1] %vm213_vm10, %v807_v58 }
0x1195   :  { %794 = vrot.lane.b32.xlu0 %v792_v62, %s1513_s25  ;;  %222 = vrot.lane.b32.xlu2 %v220_v8, %s1513_s25 }
0x119b   :  { %v1087_v7 = vpop.permute.xlu1 %1086 }
0x119c   :  { %1365 = vst.msk [vmem:[%s1943_s3 + $0x6] sm:$0x1] %vm213_vm10, %v1087_v7 }
0x119d   :  { %952 = vrot.lane.b32.xlu0 %v950_v18, %s1513_s25  ;;  %502 = vrot.lane.b32.xlu2 %v500_v63, %s1513_s25 }
0x11a5   :  { %660 = vrot.lane.b32.xlu2 %v658_v10, %s1513_s25 }
0x11ad   :  { %940 = vrot.lane.b32.xlu2 %v938_v13, %s1513_s25 }
0x11b5   :  { %1098 = vrot.lane.b32.xlu2 %v1096_v25, %s1513_s25 }
0x11e7   :  { %v1184_v14 = vpop.permute.xlu2 %1183 }
0x11e8   :  { %v1186_v16 = vmul.f32 %v1184_v14, %v1799_v38 }
0x11ea   :  { %v1224_v11 = vpack.c.bf16 %v1186_v16, %v1186_v16  ;;  %1248 = vst [vmem:[#allocation1] ss:$4 sm:$0xff] %v1186_v16 }
0x11ec   :  { %v1226_v17 = vrot.slane %v1224_v11, 3 }
0x11ee   :  { %v1229_v54 = vsel %vm205_vm5, %v1224_v11, %v1226_v17 }
0x11ef   :  { %1231 = vrot.lane.b32.xlu0 %v1229_v54, %s1513_s25  ;;  %v223_v28 = vpop.permute.xlu2 %222  ;;  %v1221_v20 = vpop.permute.xlu0 %1220 }
0x11f0   :  { %1318 = vst.msk [vmem:[%s1944_s4 + $0x7] sm:$0x1] %vm213_vm10, %v223_v28  ;;  %v1223_v34 = vmul.f32 %v1221_v20, %v1790_v24 }
0x11f1   :  { %v1249_v21 = vld.sshfl [vmem:[#allocation1] sm:$0xff pattern:$0x73625140] }
0x11f2   :  { %v1236_v22 = vpack.c.bf16 %v1223_v34, %v1223_v34  ;;  %1250 = vrot.lane.b32.xlu2 %v1249_v21, %s1513_s25  ;;  %1256 = vst [vmem:[#allocation1] ss:$4 sm:$0xff] %v1180_v50 }
0x11f4   :  { %v1238_v23 = vrot.slane %v1236_v22, 3 }
0x11f6   :  { %v1241_v15 = vsel %vm205_vm5, %v1236_v22, %v1238_v23 }
0x11f7   :  { %v503_v0 = vpop.permute.xlu2 %502  ;;  %1243 = vrot.lane.b32.xlu1 %v1241_v15, %s1513_s25  ;;  %v357_v26 = vpop.permute.xlu0 %356 }
0x11f8   :  { %1333 = vst.msk [vmem:[%s1943_s3 + $0x2] sm:$0x1] %vm213_vm10, %v503_v0 }
0x11f9   :  { %1325 = vst.msk [vmem:[%s1943_s3 + $0x1] sm:$0x1] %vm213_vm10, %v357_v26  ;;  %v1257_v24 = vld.sshfl [vmem:[#allocation1] sm:$0xff pattern:$0x73625140] }
0x11fa   :  { %1258 = vrot.lane.b32.xlu0 %v1257_v24, %s1514_s16  ;;  %1263 = vst [vmem:[#allocation1] ss:$4 sm:$0xff] %v1223_v34 }
0x11ff   :  { %v661_v27 = vpop.permute.xlu2 %660  ;;  %v515_v29 = vpop.permute.xlu0 %514 }
0x1200   :  { %1342 = vst.msk [vmem:[%s1944_s4 + $0x4] sm:$0x1] %vm213_vm10, %v661_v27 }
0x1201   :  { %1334 = vst.msk [vmem:[%s1944_s4 + $0x5] sm:$0x1] %vm213_vm10, %v515_v29  ;;  %v1264_v30 = vld.sshfl [vmem:[#allocation1] sm:$0xff pattern:$0x73625140] }
0x1202   :  { %1270 = vst [vmem:[#allocation1] ss:$4 sm:$0xff] %v1820_v46  ;;  %1265 = vrot.lane.b32.xlu1 %v1264_v30, %s1513_s25 }
0x1207   :  { %v941_v32 = vpop.permute.xlu2 %940  ;;  %v795_v33 = vpop.permute.xlu0 %794 }
0x1208   :  { %1357 = vst.msk [vmem:[%s1943_s3 + $0x5] sm:$0x1] %vm213_vm10, %v941_v32 }
0x1209   :  { %1349 = vst.msk [vmem:[%s1943_s3 + $0x4] sm:$0x1] %vm213_vm10, %v795_v33  ;;  %v1271_v1 = vld.sshfl [vmem:[#allocation1] sm:$0xff pattern:$0x73625140] }
0x120a   :  { %1272 = vrot.lane.b32.xlu2 %v1271_v1, %s1514_s16 }
0x120f   :  { %v1099_v35 = vpop.permute.xlu2 %1098  ;;  %v953_v36 = vpop.permute.xlu0 %952 }
0x1210   :  { %1366 = vst.msk [vmem:[%s1944_s4 + $0x1] sm:$0x1] %vm213_vm10, %v1099_v35 }
0x1211   :  { %1358 = vst.msk [vmem:[%s1944_s4 + $0x2] sm:$0x1] %vm213_vm10, %v953_v36 }
0x124c   :  { %v1251_v37 = vpop.permute.xlu2 %1250 }
0x124d   :  { %1254 = vst.msk [vmem:[#allocation2] sm:$0x3] %vm52_vm0, %v1251_v37 }
0x1261   :  { %v1232_v38 = vpop.permute.xlu0 %1231 }
0x1262   :  { %1372 = vst.msk [vmem:[%s1943_s3 + $0x7] sm:$0x1] %vm213_vm10, %v1232_v38 }
0x1264   :  { %v1273_v39 = vpop.permute.xlu2 %1272 }
0x1265   :  { %1275 = vst.msk [vmem:[#allocation5] sm:$0x3] %vm52_vm0, %v1273_v39 }
0x1269   :  { %v1244_v40 = vpop.permute.xlu1 %1243 }
0x126a   :  { %1246 = vst.msk [vmem:[%s1944_s4] sm:$0x1] %vm213_vm10, %v1244_v40 }
0x126c   :  { %v1259_v6 = vpop.permute.xlu0 %1258 }
0x126d   :  { %1261 = vst.msk [vmem:[#allocation3] sm:$0x3] %vm52_vm0, %v1259_v6 }
0x1274   :  { %v1266_v41 = vpop.permute.xlu1 %1265 }
0x1275   :  { %1268 = vst.msk [vmem:[#allocation4] sm:$0x3] %vm52_vm0, %v1266_v41 }

</bundles_post_ra>
